<compile_context>
chip_gen: v7x
topology: tpu7x:2x2x1
jax: 0.10.0
libtpu: 0.0.40
codegen_flags: <defaults>
</compile_context>

<pallas_src>
import functools
import math

import jax
import jax.numpy as jnp
from jax.experimental import pallas as pl
from jax.experimental.pallas import tpu as pltpu


def _unit_conv2d_kernel(x_ref, w_ref, p_ref, o_ref, xp_ref, *, K, T, pad):
    # x_ref:  (MB, T, Cin)        row block (rows = batch*joint)
    # w_ref:  (K, Cin, Cout)      dense per-tap weights
    # p_ref:  (3, Cout)           [conv bias, BN scale, BN shift], f32
    # o_ref:  (MB, T, Cout)
    # xp_ref: (MB, T + 2*pad, Cin)  VMEM scratch with zero temporal halo
    MB = x_ref.shape[0]
    Cin = x_ref.shape[-1]
    Cout = o_ref.shape[-1]

    # In-kernel temporal zero padding (no HBM pad copy).  Halos are rewritten every
    # step (cheap: 2*pad rows) so correctness does not depend on which TensorCore
    # executes which grid index.
    zeros_halo = jnp.zeros((MB, pad, Cin), dtype=xp_ref.dtype)
    xp_ref[:, :pad, :] = zeros_halo
    xp_ref[:, pad + T:, :] = zeros_halo
    xp_ref[:, pad:pad + T, :] = x_ref[...]

    # K shifted dense matmuls accumulated in f32.  K is small and static; each
    # shifted slice is consumed immediately by its matmul (no im2col intermediates).
    acc = jnp.zeros((MB, T, Cout), jnp.float32)
    for k in range(K):
        acc = acc + jnp.einsum(
            'mtc,cd->mtd', xp_ref[:, k:k + T, :], w_ref[k],
            preferred_element_type=jnp.float32)

    p = p_ref[...]                                   # (3, Cout), f32
    bias = p[0:1, :].reshape(1, 1, Cout)
    scale = p[1:2, :].reshape(1, 1, Cout)
    shift = p[2:3, :].reshape(1, 1, Cout)

    acc = acc + bias                                 # conv bias (f32)

    # Mish: x * tanh(softplus(x)), PyTorch softplus threshold=20 behaviour.
    #   tanh(log(t)) = (t^2 - 1) / (t^2 + 1), t = 1 + exp(x)
    # -> one EUP exp + one approx reciprocal (Newton-refined) instead of
    #    exp + log1p + tanh.
    e = jnp.exp(jnp.minimum(acc, 20.0))
    t = 1.0 + e
    t2 = t * t
    d = t2 + 1.0
    r = pl.reciprocal(d, approx=True)
    r = r * (2.0 - d * r)                            # one Newton step -> ~f32 exact
    y = jnp.where(acc > 20.0, acc, acc * ((t2 - 1.0) * r))

    # BatchNorm2d (eval): folded affine, kept in f32.
    y = y * scale + shift
    o_ref[...] = y.astype(o_ref.dtype)


def _pick_mb(M, T, Tp, Cin, Cout, in_item, out_item, vmem_budget_bytes=12 << 20):
    """Largest divisor of M whose real per-step VMEM footprint fits the budget,
    capped so the grid keeps >= 2 steps (two TensorCores on v7x)."""
    def footprint(mb):
        return (2 * mb * T * Cin * in_item        # double-buffered input block
                + mb * Tp * Cin * in_item         # padded halo scratch
                + 3 * mb * T * Cout * 4           # f32 accumulator + epilogue temps
                + 2 * mb * T * Cout * out_item)   # double-buffered output block

    max_mb = max(1, M // 2) if M >= 2 else 1
    best = 1
    for cand in range(1, max_mb + 1):
        if M % cand == 0 and footprint(cand) <= vmem_budget_bytes:
            best = cand
    return best


def unit_conv2d_forward(x, weight, bias, gamma, beta, running_mean, running_var,
                        *, eps=1e-5, matmul_dtype=jnp.bfloat16):
    """x: NCHW (N, Cin, T, V). weight: (Cout, Cin, K, 1). Returns NCHW (N, Cout, T, V).

    matmul_dtype: dtype of the MXU inputs (default bf16 on all TPU generations);
    accumulation and the Mish/BN epilogue stay in f32.  Pass None for pure f32.
    """
    N, Cin, T, V = x.shape
    Cout, _, K, _ = weight.shape
    pad = (K - 1) // 2
    Tp = T + 2 * pad
    M = N * V

    # Row-packed layout: (N*V, T, Cin).  The conv never mixes joints, so each row is
    # an independent temporal sequence with full channel mixing.
    # TODO(synk): in a full GaitTR stack keep activations in this (N*V, T, C) layout
    #             across consecutive TCN_ST layers so these boundary relayouts vanish.
    x_r = jnp.transpose(x, (0, 3, 2, 1)).reshape(M, T, Cin)
    w_taps = jnp.transpose(weight[..., 0], (2, 1, 0))            # (K, Cin, Cout), dense

    if matmul_dtype is not None:
        x_r = x_r.astype(matmul_dtype)
        w_taps = w_taps.astype(matmul_dtype)

    # Fold BN (eval) into scale/shift; stack with the conv bias into one operand.
    inv_std = 1.0 / jnp.sqrt(running_var.astype(jnp.float32) + eps)
    scale = gamma.astype(jnp.float32) * inv_std
    shift = beta.astype(jnp.float32) - running_mean.astype(jnp.float32) * scale
    params = jnp.stack([bias.astype(jnp.float32), scale, shift], axis=0)  # (3, Cout)

    in_item = jnp.dtype(x_r.dtype).itemsize
    out_item = jnp.dtype(x.dtype).itemsize
    MB = _pick_mb(M, T, Tp, Cin, Cout, in_item, out_item)

    # Note: the weight/params blocks are grid-invariant; their double-buffer cost is
    # negligible at these sizes (single-buffering them only matters at production
    # channel counts).
    out = pl.pallas_call(
        functools.partial(_unit_conv2d_kernel, K=K, T=T, pad=pad),
        out_shape=jax.ShapeDtypeStruct((M, T, Cout), x.dtype),
        grid_spec=pltpu.PrefetchScalarGridSpec(
            num_scalar_prefetch=0,
            grid=(M // MB,),
            in_specs=[
                pl.BlockSpec((MB, T, Cin), lambda m: (m, 0, 0)),
                pl.BlockSpec((K, Cin, Cout), lambda m: (0, 0, 0)),
                pl.BlockSpec((3, Cout), lambda m: (0, 0)),
            ],
            out_specs=pl.BlockSpec((MB, T, Cout), lambda m: (m, 0, 0)),
            scratch_shapes=[pltpu.VMEM((MB, Tp, Cin), x_r.dtype)],
        ),
        compiler_params=pltpu.CompilerParams(
            dimension_semantics=("parallel",),
            vmem_limit_bytes=32 * 1024 * 1024),
    )(x_r, w_taps, params)

    # (N*V, T, Cout) -> NCHW (N, Cout, T, V)
    return jnp.transpose(out.reshape(N, V, T, Cout), (0, 3, 2, 1))


def _reference_forward(x, weight, bias, gamma, beta, running_mean, running_var, eps=1e-5):
    """Pure-JAX reference (NCHW conv via lax.conv_general_dilated)."""
    pad = (weight.shape[2] - 1) // 2
    y = jax.lax.conv_general_dilated(
        x, weight, window_strides=(1, 1), padding=((pad, pad), (0, 0)),
        dimension_numbers=("NCHW", "OIHW", "NCHW"))
    y = y + bias[None, :, None, None]
    sp = jnp.where(y > 20.0, y, jnp.log1p(jnp.exp(jnp.minimum(y, 20.0))))
    y = y * jnp.tanh(sp)
    inv_std = 1.0 / jnp.sqrt(running_var + eps)
    y = (y - running_mean[None, :, None, None]) * (gamma * inv_std)[None, :, None, None] \
        + beta[None, :, None, None]
    return y


if __name__ == "__main__":
    key = jax.random.PRNGKey(0)
    k_x, k_w, k_b, k_g, k_be, k_m, k_v = jax.random.split(key, 7)

    N, Cin, Cout, T, V, K = 2, 4, 8, 16, 16, 9

    x = jax.random.normal(k_x, (N, Cin, T, V), dtype=jnp.float32)

    # Conv init as in UnitConv2D.conv_init: normal(0, sqrt(2 / (Cout * K * 1)))
    n_fan = Cout * K * 1
    weight = jax.random.normal(k_w, (Cout, Cin, K, 1), dtype=jnp.float32) * math.sqrt(2.0 / n_fan)
    bias = jax.random.normal(k_b, (Cout,), dtype=jnp.float32) * 0.1

    # Deterministic (non-trivial) BatchNorm parameters / running stats.
    gamma = 1.0 + 0.1 * jax.random.normal(k_g, (Cout,), dtype=jnp.float32)
    beta = 0.1 * jax.random.normal(k_be, (Cout,), dtype=jnp.float32)
    running_mean = 0.1 * jax.random.normal(k_m, (Cout,), dtype=jnp.float32)
    running_var = 1.0 + 0.1 * jax.random.uniform(k_v, (Cout,), dtype=jnp.float32)

    ref = _reference_forward(x, weight, bias, gamma, beta, running_mean, running_var)

    # TODO(synk): dropout (p=0.1) is identity in eval mode; training-mode RNG masking
    #             and batch-statistics BatchNorm are not implemented.

    # Default path: bf16 MXU inputs, f32 accumulation + epilogue.
    out_bf16 = unit_conv2d_forward(x, weight, bias, gamma, beta, running_mean, running_var)
    out_bf16 = jax.block_until_ready(out_bf16)
    assert out_bf16.shape == (N, Cout, T, V)
    assert jnp.allclose(out_bf16, ref, atol=5e-2, rtol=5e-2), \
        float(jnp.max(jnp.abs(out_bf16 - ref)))

    # Pure-f32 path: tight tolerance.
    out_f32 = unit_conv2d_forward(x, weight, bias, gamma, beta, running_mean, running_var,
                                  matmul_dtype=None)
    out_f32 = jax.block_until_ready(out_f32)
    assert out_f32.shape == (N, Cout, T, V)
    assert jnp.allclose(out_f32, ref, atol=1e-4, rtol=1e-4), \
        float(jnp.max(jnp.abs(out_f32 - ref)))

    print("KERNEL_OK")
</pallas_src>

<mosaic_0001>
module attributes {stable_mosaic.version = 11 : i64} {
  func.func @_unit_conv2d_kernel(%arg0: i32, %arg1: memref<16x16x4xbf16, #tpu.memory_space<vmem>>, %arg2: memref<9x4x8xbf16, #tpu.memory_space<vmem>>, %arg3: memref<3x8xf32, #tpu.memory_space<vmem>>, %arg4: memref<16x16x8xf32, #tpu.memory_space<vmem>>, %arg5: memref<16x24x4xbf16, #tpu.memory_space<vmem>>) attributes {dimension_semantics = [#tpu.dimension_semantics<parallel>], iteration_bounds = array<i64: 2>, scalar_prefetch = 0 : i64, scratch_operands = 1 : i64, tpu.core_type = #tpu.core_type<tc>, window_params = [{transform_indices = @transform_0, window_bounds = array<i64: 16, 16, 4>}, {pipeline_mode = #tpu.pipeline_mode<synchronous>, transform_indices = @transform_1, window_bounds = array<i64: 9, 4, 8>}, {pipeline_mode = #tpu.pipeline_mode<synchronous>, transform_indices = @transform_2, window_bounds = array<i64: 3, 8>}, {transform_indices = @transform_3, window_bounds = array<i64: 16, 16, 8>}]} {
    %cst = arith.constant 0.000000e+00 : bf16
    %0 = vector.broadcast %cst : bf16 to vector<16x4x4xbf16>
    %c0 = arith.constant 0 : index
    %c0_0 = arith.constant 0 : index
    %c0_1 = arith.constant 0 : index
    %1 = vector.load %arg5[%c0, %c0_0, %c0_1] : memref<16x24x4xbf16, #tpu.memory_space<vmem>>, vector<16x4x4xbf16>
    tpu.vector_store %arg5[%c0, %c0_0, %c0_1], %0 {strides = array<i32>} : memref<16x24x4xbf16, #tpu.memory_space<vmem>>, vector<16x4x4xbf16>,
    %c0_2 = arith.constant 0 : index
    %c20 = arith.constant 20 : index
    %c0_3 = arith.constant 0 : index
    %2 = vector.load %arg5[%c0_2, %c20, %c0_3] : memref<16x24x4xbf16, #tpu.memory_space<vmem>>, vector<16x4x4xbf16>
    tpu.vector_store %arg5[%c0_2, %c20, %c0_3], %0 {strides = array<i32>} : memref<16x24x4xbf16, #tpu.memory_space<vmem>>, vector<16x4x4xbf16>,
    %c0_4 = arith.constant 0 : index
    %c0_5 = arith.constant 0 : index
    %c0_6 = arith.constant 0 : index
    %3 = vector.load %arg1[%c0_4, %c0_5, %c0_6] : memref<16x16x4xbf16, #tpu.memory_space<vmem>>, vector<16x16x4xbf16>
    %c0_7 = arith.constant 0 : index
    %c4 = arith.constant 4 : index
    %c0_8 = arith.constant 0 : index
    %4 = vector.load %arg5[%c0_7, %c4, %c0_8] : memref<16x24x4xbf16, #tpu.memory_space<vmem>>, vector<16x16x4xbf16>
    tpu.vector_store %arg5[%c0_7, %c4, %c0_8], %3 {strides = array<i32>} : memref<16x24x4xbf16, #tpu.memory_space<vmem>>, vector<16x16x4xbf16>,
    %cst_9 = arith.constant 0.000000e+00 : f32
    %5 = vector.broadcast %cst_9 : f32 to vector<16x16x8xf32>
    %c0_10 = arith.constant 0 : index
    %c0_11 = arith.constant 0 : index
    %c0_12 = arith.constant 0 : index
    %6 = vector.load %arg5[%c0_10, %c0_11, %c0_12] : memref<16x24x4xbf16, #tpu.memory_space<vmem>>, vector<16x16x4xbf16>
    %c0_13 = arith.constant 0 : index
    %c0_14 = arith.constant 0 : index
    %c0_15 = arith.constant 0 : index
    %7 = vector.load %arg2[%c0_13, %c0_14, %c0_15] : memref<9x4x8xbf16, #tpu.memory_space<vmem>>, vector<1x4x8xbf16>
    %8 = vector.shape_cast %7 : vector<1x4x8xbf16> to vector<4x8xbf16>
    "tpu.trace_start"() <{level = 10 : i32, message = "mtc,cd->mtd"}> : () -> ()
    %cst_16 = arith.constant dense<0.000000e+00> : vector<16x16x8xf32>
    %9 = tpu.matmul %6, %8, %cst_16 {dimension_numbers = #tpu.dot_dimension_numbers<[2], [0], [0, 1], [1], [0, 0, 0, 1, 1, 1], [], []>} : vector<16x16x4xbf16>, vector<4x8xbf16>, vector<16x16x8xf32> -> vector<16x16x8xf32>
    "tpu.trace_stop"() : () -> ()
    %10 = arith.addf %5, %9 : vector<16x16x8xf32>
    %c0_17 = arith.constant 0 : index
    %c1 = arith.constant 1 : index
    %c0_18 = arith.constant 0 : index
    %11 = vector.load %arg5[%c0_17, %c1, %c0_18] : memref<16x24x4xbf16, #tpu.memory_space<vmem>>, vector<16x16x4xbf16>
    %c1_19 = arith.constant 1 : index
    %c0_20 = arith.constant 0 : index
    %c0_21 = arith.constant 0 : index
    %12 = vector.load %arg2[%c1_19, %c0_20, %c0_21] : memref<9x4x8xbf16, #tpu.memory_space<vmem>>, vector<1x4x8xbf16>
    %13 = vector.shape_cast %12 : vector<1x4x8xbf16> to vector<4x8xbf16>
    "tpu.trace_start"() <{level = 10 : i32, message = "mtc,cd->mtd"}> : () -> ()
    %cst_22 = arith.constant dense<0.000000e+00> : vector<16x16x8xf32>
    %14 = tpu.matmul %11, %13, %cst_22 {dimension_numbers = #tpu.dot_dimension_numbers<[2], [0], [0, 1], [1], [0, 0, 0, 1, 1, 1], [], []>} : vector<16x16x4xbf16>, vector<4x8xbf16>, vector<16x16x8xf32> -> vector<16x16x8xf32>
    "tpu.trace_stop"() : () -> ()
    %15 = arith.addf %10, %14 : vector<16x16x8xf32>
    %c0_23 = arith.constant 0 : index
    %c2 = arith.constant 2 : index
    %c0_24 = arith.constant 0 : index
    %16 = vector.load %arg5[%c0_23, %c2, %c0_24] : memref<16x24x4xbf16, #tpu.memory_space<vmem>>, vector<16x16x4xbf16>
    %c2_25 = arith.constant 2 : index
    %c0_26 = arith.constant 0 : index
    %c0_27 = arith.constant 0 : index
    %17 = vector.load %arg2[%c2_25, %c0_26, %c0_27] : memref<9x4x8xbf16, #tpu.memory_space<vmem>>, vector<1x4x8xbf16>
    %18 = vector.shape_cast %17 : vector<1x4x8xbf16> to vector<4x8xbf16>
    "tpu.trace_start"() <{level = 10 : i32, message = "mtc,cd->mtd"}> : () -> ()
    %cst_28 = arith.constant dense<0.000000e+00> : vector<16x16x8xf32>
    %19 = tpu.matmul %16, %18, %cst_28 {dimension_numbers = #tpu.dot_dimension_numbers<[2], [0], [0, 1], [1], [0, 0, 0, 1, 1, 1], [], []>} : vector<16x16x4xbf16>, vector<4x8xbf16>, vector<16x16x8xf32> -> vector<16x16x8xf32>
    "tpu.trace_stop"() : () -> ()
    %20 = arith.addf %15, %19 : vector<16x16x8xf32>
    %c0_29 = arith.constant 0 : index
    %c3 = arith.constant 3 : index
    %c0_30 = arith.constant 0 : index
    %21 = vector.load %arg5[%c0_29, %c3, %c0_30] : memref<16x24x4xbf16, #tpu.memory_space<vmem>>, vector<16x16x4xbf16>
    %c3_31 = arith.constant 3 : index
    %c0_32 = arith.constant 0 : index
    %c0_33 = arith.constant 0 : index
    %22 = vector.load %arg2[%c3_31, %c0_32, %c0_33] : memref<9x4x8xbf16, #tpu.memory_space<vmem>>, vector<1x4x8xbf16>
    %23 = vector.shape_cast %22 : vector<1x4x8xbf16> to vector<4x8xbf16>
    "tpu.trace_start"() <{level = 10 : i32, message = "mtc,cd->mtd"}> : () -> ()
    %cst_34 = arith.constant dense<0.000000e+00> : vector<16x16x8xf32>
    %24 = tpu.matmul %21, %23, %cst_34 {dimension_numbers = #tpu.dot_dimension_numbers<[2], [0], [0, 1], [1], [0, 0, 0, 1, 1, 1], [], []>} : vector<16x16x4xbf16>, vector<4x8xbf16>, vector<16x16x8xf32> -> vector<16x16x8xf32>
    "tpu.trace_stop"() : () -> ()
    %25 = arith.addf %20, %24 : vector<16x16x8xf32>
    %c0_35 = arith.constant 0 : index
    %c4_36 = arith.constant 4 : index
    %c0_37 = arith.constant 0 : index
    %26 = vector.load %arg5[%c0_35, %c4_36, %c0_37] : memref<16x24x4xbf16, #tpu.memory_space<vmem>>, vector<16x16x4xbf16>
    %c4_38 = arith.constant 4 : index
    %c0_39 = arith.constant 0 : index
    %c0_40 = arith.constant 0 : index
    %27 = vector.load %arg2[%c4_38, %c0_39, %c0_40] : memref<9x4x8xbf16, #tpu.memory_space<vmem>>, vector<1x4x8xbf16>
    %28 = vector.shape_cast %27 : vector<1x4x8xbf16> to vector<4x8xbf16>
    "tpu.trace_start"() <{level = 10 : i32, message = "mtc,cd->mtd"}> : () -> ()
    %cst_41 = arith.constant dense<0.000000e+00> : vector<16x16x8xf32>
    %29 = tpu.matmul %26, %28, %cst_41 {dimension_numbers = #tpu.dot_dimension_numbers<[2], [0], [0, 1], [1], [0, 0, 0, 1, 1, 1], [], []>} : vector<16x16x4xbf16>, vector<4x8xbf16>, vector<16x16x8xf32> -> vector<16x16x8xf32>
    "tpu.trace_stop"() : () -> ()
    %30 = arith.addf %25, %29 : vector<16x16x8xf32>
    %c0_42 = arith.constant 0 : index
    %c5 = arith.constant 5 : index
    %c0_43 = arith.constant 0 : index
    %31 = vector.load %arg5[%c0_42, %c5, %c0_43] : memref<16x24x4xbf16, #tpu.memory_space<vmem>>, vector<16x16x4xbf16>
    %c5_44 = arith.constant 5 : index
    %c0_45 = arith.constant 0 : index
    %c0_46 = arith.constant 0 : index
    %32 = vector.load %arg2[%c5_44, %c0_45, %c0_46] : memref<9x4x8xbf16, #tpu.memory_space<vmem>>, vector<1x4x8xbf16>
    %33 = vector.shape_cast %32 : vector<1x4x8xbf16> to vector<4x8xbf16>
    "tpu.trace_start"() <{level = 10 : i32, message = "mtc,cd->mtd"}> : () -> ()
    %cst_47 = arith.constant dense<0.000000e+00> : vector<16x16x8xf32>
    %34 = tpu.matmul %31, %33, %cst_47 {dimension_numbers = #tpu.dot_dimension_numbers<[2], [0], [0, 1], [1], [0, 0, 0, 1, 1, 1], [], []>} : vector<16x16x4xbf16>, vector<4x8xbf16>, vector<16x16x8xf32> -> vector<16x16x8xf32>
    "tpu.trace_stop"() : () -> ()
    %35 = arith.addf %30, %34 : vector<16x16x8xf32>
    %c0_48 = arith.constant 0 : index
    %c6 = arith.constant 6 : index
    %c0_49 = arith.constant 0 : index
    %36 = vector.load %arg5[%c0_48, %c6, %c0_49] : memref<16x24x4xbf16, #tpu.memory_space<vmem>>, vector<16x16x4xbf16>
    %c6_50 = arith.constant 6 : index
    %c0_51 = arith.constant 0 : index
    %c0_52 = arith.constant 0 : index
    %37 = vector.load %arg2[%c6_50, %c0_51, %c0_52] : memref<9x4x8xbf16, #tpu.memory_space<vmem>>, vector<1x4x8xbf16>
    %38 = vector.shape_cast %37 : vector<1x4x8xbf16> to vector<4x8xbf16>
    "tpu.trace_start"() <{level = 10 : i32, message = "mtc,cd->mtd"}> : () -> ()
    %cst_53 = arith.constant dense<0.000000e+00> : vector<16x16x8xf32>
    %39 = tpu.matmul %36, %38, %cst_53 {dimension_numbers = #tpu.dot_dimension_numbers<[2], [0], [0, 1], [1], [0, 0, 0, 1, 1, 1], [], []>} : vector<16x16x4xbf16>, vector<4x8xbf16>, vector<16x16x8xf32> -> vector<16x16x8xf32>
    "tpu.trace_stop"() : () -> ()
    %40 = arith.addf %35, %39 : vector<16x16x8xf32>
    %c0_54 = arith.constant 0 : index
    %c7 = arith.constant 7 : index
    %c0_55 = arith.constant 0 : index
    %41 = vector.load %arg5[%c0_54, %c7, %c0_55] : memref<16x24x4xbf16, #tpu.memory_space<vmem>>, vector<16x16x4xbf16>
    %c7_56 = arith.constant 7 : index
    %c0_57 = arith.constant 0 : index
    %c0_58 = arith.constant 0 : index
    %42 = vector.load %arg2[%c7_56, %c0_57, %c0_58] : memref<9x4x8xbf16, #tpu.memory_space<vmem>>, vector<1x4x8xbf16>
    %43 = vector.shape_cast %42 : vector<1x4x8xbf16> to vector<4x8xbf16>
    "tpu.trace_start"() <{level = 10 : i32, message = "mtc,cd->mtd"}> : () -> ()
    %cst_59 = arith.constant dense<0.000000e+00> : vector<16x16x8xf32>
    %44 = tpu.matmul %41, %43, %cst_59 {dimension_numbers = #tpu.dot_dimension_numbers<[2], [0], [0, 1], [1], [0, 0, 0, 1, 1, 1], [], []>} : vector<16x16x4xbf16>, vector<4x8xbf16>, vector<16x16x8xf32> -> vector<16x16x8xf32>
    "tpu.trace_stop"() : () -> ()
    %45 = arith.addf %40, %44 : vector<16x16x8xf32>
    %c0_60 = arith.constant 0 : index
    %c8 = arith.constant 8 : index
    %c0_61 = arith.constant 0 : index
    %46 = vector.load %arg5[%c0_60, %c8, %c0_61] : memref<16x24x4xbf16, #tpu.memory_space<vmem>>, vector<16x16x4xbf16>
    %c8_62 = arith.constant 8 : index
    %c0_63 = arith.constant 0 : index
    %c0_64 = arith.constant 0 : index
    %47 = vector.load %arg2[%c8_62, %c0_63, %c0_64] : memref<9x4x8xbf16, #tpu.memory_space<vmem>>, vector<1x4x8xbf16>
    %48 = vector.shape_cast %47 : vector<1x4x8xbf16> to vector<4x8xbf16>
    "tpu.trace_start"() <{level = 10 : i32, message = "mtc,cd->mtd"}> : () -> ()
    %cst_65 = arith.constant dense<0.000000e+00> : vector<16x16x8xf32>
    %49 = tpu.matmul %46, %48, %cst_65 {dimension_numbers = #tpu.dot_dimension_numbers<[2], [0], [0, 1], [1], [0, 0, 0, 1, 1, 1], [], []>} : vector<16x16x4xbf16>, vector<4x8xbf16>, vector<16x16x8xf32> -> vector<16x16x8xf32>
    "tpu.trace_stop"() : () -> ()
    %50 = arith.addf %45, %49 : vector<16x16x8xf32>
    %c0_66 = arith.constant 0 : index
    %c0_67 = arith.constant 0 : index
    %51 = vector.load %arg3[%c0_66, %c0_67] : memref<3x8xf32, #tpu.memory_space<vmem>>, vector<3x8xf32>
    %52 = vector.extract_strided_slice %51 {offsets = [0, 0], sizes = [1, 8], strides = [1, 1]} : vector<3x8xf32> to vector<1x8xf32>
    %53 = vector.shape_cast %52 : vector<1x8xf32> to vector<1x1x8xf32>
    %54 = vector.extract_strided_slice %51 {offsets = [1, 0], sizes = [1, 8], strides = [1, 1]} : vector<3x8xf32> to vector<1x8xf32>
    %55 = vector.shape_cast %54 : vector<1x8xf32> to vector<1x1x8xf32>
    %56 = vector.extract_strided_slice %51 {offsets = [2, 0], sizes = [1, 8], strides = [1, 1]} : vector<3x8xf32> to vector<1x8xf32>
    %57 = vector.shape_cast %56 : vector<1x8xf32> to vector<1x1x8xf32>
    %58 = vector.broadcast %53 : vector<1x1x8xf32> to vector<16x16x8xf32>
    %59 = arith.addf %50, %58 : vector<16x16x8xf32>
    %cst_68 = arith.constant 2.000000e+01 : f32
    %60 = vector.broadcast %cst_68 : f32 to vector<16x16x8xf32>
    %61 = arith.minimumf %59, %60 : vector<16x16x8xf32>
    %62 = math.exp %61 : vector<16x16x8xf32>
    %cst_69 = arith.constant 1.000000e+00 : f32
    %63 = vector.broadcast %cst_69 : f32 to vector<16x16x8xf32>
    %64 = arith.addf %63, %62 : vector<16x16x8xf32>
    %65 = arith.mulf %64, %64 : vector<16x16x8xf32>
    %cst_70 = arith.constant 1.000000e+00 : f32
    %66 = vector.broadcast %cst_70 : f32 to vector<16x16x8xf32>
    %67 = arith.addf %65, %66 : vector<16x16x8xf32>
    %68 = tpu.reciprocal %67 {approx = true} : vector<16x16x8xf32> -> vector<16x16x8xf32>
    %69 = arith.mulf %67, %68 : vector<16x16x8xf32>
    %cst_71 = arith.constant 2.000000e+00 : f32
    %70 = vector.broadcast %cst_71 : f32 to vector<16x16x8xf32>
    %71 = arith.subf %70, %69 : vector<16x16x8xf32>
    %72 = arith.mulf %68, %71 : vector<16x16x8xf32>
    %cst_72 = arith.constant 2.000000e+01 : f32
    %73 = vector.broadcast %cst_72 : f32 to vector<16x16x8xf32>
    %74 = arith.cmpf ogt, %59, %73 : vector<16x16x8xf32>
    %cst_73 = arith.constant 1.000000e+00 : f32
    %75 = vector.broadcast %cst_73 : f32 to vector<16x16x8xf32>
    %76 = arith.subf %65, %75 : vector<16x16x8xf32>
    %77 = arith.mulf %76, %72 : vector<16x16x8xf32>
    %78 = arith.mulf %59, %77 : vector<16x16x8xf32>
    %79 = arith.select %74, %59, %78 : vector<16x16x8xi1>, vector<16x16x8xf32>
    %80 = vector.broadcast %55 : vector<1x1x8xf32> to vector<16x16x8xf32>
    %81 = arith.mulf %79, %80 : vector<16x16x8xf32>
    %82 = vector.broadcast %57 : vector<1x1x8xf32> to vector<16x16x8xf32>
    %83 = arith.addf %81, %82 : vector<16x16x8xf32>
    %c0_74 = arith.constant 0 : index
    %c0_75 = arith.constant 0 : index
    %c0_76 = arith.constant 0 : index
    %84 = vector.load %arg4[%c0_74, %c0_75, %c0_76] : memref<16x16x8xf32, #tpu.memory_space<vmem>>, vector<16x16x8xf32>
    tpu.vector_store %arg4[%c0_74, %c0_75, %c0_76], %83 {strides = array<i32>} : memref<16x16x8xf32, #tpu.memory_space<vmem>>, vector<16x16x8xf32>,
    return
  }
  func.func @transform_0(%arg0: i32) -> (i32, i32, i32) {
    %c0_i32 = arith.constant 0 : i32
    %c0_i32_0 = arith.constant 0 : i32
    %c0_i32_1 = arith.constant 0 : i32
    return %arg0, %c0_i32, %c0_i32_0 : i32, i32, i32
  }
  func.func @transform_1(%arg0: i32) -> (i32, i32, i32) {
    %c0_i32 = arith.constant 0 : i32
    %c0_i32_0 = arith.constant 0 : i32
    %c0_i32_1 = arith.constant 0 : i32
    %c0_i32_2 = arith.constant 0 : i32
    return %c0_i32, %c0_i32_0, %c0_i32_1 : i32, i32, i32
  }
  func.func @transform_2(%arg0: i32) -> (i32, i32) {
    %c0_i32 = arith.constant 0 : i32
    %c0_i32_0 = arith.constant 0 : i32
    %c0_i32_1 = arith.constant 0 : i32
    return %c0_i32, %c0_i32_0 : i32, i32
  }
  func.func @transform_3(%arg0: i32) -> (i32, i32, i32) {
    %c0_i32 = arith.constant 0 : i32
    %c0_i32_0 = arith.constant 0 : i32
    %c0_i32_1 = arith.constant 0 : i32
    return %arg0, %c0_i32, %c0_i32_0 : i32, i32, i32
  }
}

</mosaic_0001>

<bundles_post_ra>
// kernel: tpu_custom_call.1
= control target key start
LH: loop header
LB: loop body
LE: loop exit
PB: predicated region body
PF: predicated region fallthrough
CT: control target
= control target key end

     0   :  { %s7649_s12 = smov 0   ;;  %s9548_s0 = inlined_call_operand.vmem [shape: bf16[32,16,4], index: 0, kind: input, shape index: {}]   ;;  %s9549_s1 = inlined_call_operand.vmem [shape: bf16[9,4,8], index: 1, kind: input, shape index: {}]   ;;  %s9550_s2 = inlined_call_operand.vmem [shape: f32[3,8], index: 2, kind: input, shape index: {}]   ;;  %s9551_s3 = inlined_call_operand.vmem [shape: f32[32,16,8], index: 3, kind: output, shape index: {}]  }
   0x1 LB: > { %s6315_s13 = sadd.s32 4294967295, %s7626_s12   ;;  %p6319_p0 = scmp.ge.s32.totalorder %s7626_s12, 1  ;;  %s7626_s12 = sphi %s7649_s12, %s13_s12  }
   0x2   : > { %p139_p1 = scmp.lt.s32.totalorder %s7626_s12, 3 }
   0x4   : > { %p140_p2 = pnand %p6319_p0, %p139_p1 }
   0x5   : > { %vm278_vm0 = vcmask (!%p140_p2), 1041408   ;;  %v6473_v0 = vld [vmem:[%s9549_s1 + $0x8] sm:$0x3] (!%p140_p2)  ;;  %v6326_v1 = vld [vmem:[%s9549_s1 + $0x2] sm:$0x3] (!%p140_p2)  ;;  %s7668_s18 = sshll.u32 (!%p140_p2), %s6315_s13, 4 }
   0x6   : > { %143 = sbr.rel (%p140_p2) target bundleno = 760 (0x2f8), region = 32  ;;  %7443 = vmatprep.subr.msk.bf16.mxu0 (!%p140_p2), %vm278_vm0, %v6473_v0  ;;  %v7665_v2 = vsel (!%p140_p2), %vm278_vm0, %v6473_v0, 0  ;;  %7439 = vmatprep.subr.msk.bf16.mxu1 (!%p140_p2), %vm278_vm0, %v6326_v1  ;;  %vm180_vm1 = vcmask (!%p140_p2), 25600   ;;  %p166_p3 = scmp.lt.s32.totalorder (!%p140_p2), %s7668_s18, 31  ;;  %vm197_vm2 = vcmask (!%p140_p2), 27650   ;;  %v1027_v3 = vsel (!%p140_p2), %vm278_vm0, %v6326_v1, 0 }
   0x7   : > { %7012 = vmatpush3.bf16.msra.mxu0 (!%p140_p2), %v7665_v2  ;;  %6876 = vmatpush3.bf16.msra.mxu1 (!%p140_p2), %v1027_v3  ;;  %v7628_v4 = vmov (!%p140_p2), 0   ;;  %v490_v5 = vld [vmem:[%s9549_s1] sm:$0x3] (!%p140_p2)  ;;  %v6522_v6 = vld [vmem:[%s9549_s1 + $0xa] sm:$0x3] (!%p140_p2)  ;;  %vm279_vm3 = vcmask (!%p140_p2), 1045508  }
   0x8   : > { %181 = vst.msk [vmem:[#allocation2] sm:$0x3] (!%p140_p2), %vm180_vm1, %v7628_v4  ;;  %182 = vst.msk [vmem:[#allocation2 + $0xc] sm:$0x3] (!%p140_p2), %vm180_vm1, %v7628_v4  ;;  %7440 = vmatprep.subr.msk.bf16.mxu1 (!%p140_p2), %vm278_vm0, %v490_v5  ;;  %7445 = vmatprep.subr.msk.bf16.mxu0 (!%p140_p2), %vm278_vm0, %v6522_v6  ;;  %vm410_vm5 = vcmask (!%p140_p2), 27648   ;;  %v7767_v47 = vsel (!%p140_p2), %vm278_vm0, %v490_v5, 0 }
   0x9   : > { %183 = vst.msk [vmem:[#allocation2 + $0x18] sm:$0x3] (!%p140_p2), %vm180_vm1, %v7628_v4  ;;  %184 = vst.msk [vmem:[#allocation2 + $0x24] sm:$0x3] (!%p140_p2), %vm180_vm1, %v7628_v4  ;;  %vm541_vm6 = vsmask.f32 (!%p140_p2), 3328 }
   0xa   : > { %185 = vst.msk [vmem:[#allocation2 + $0x30] sm:$0x3] (!%p140_p2), %vm180_vm1, %v7628_v4  ;;  %186 = vst.msk [vmem:[#allocation2 + $0x3c] sm:$0x3] (!%p140_p2), %vm180_vm1, %v7628_v4  ;;  %vm542_vm7 = vsmask.f32 (!%p140_p2), 7440 }
   0xb   : > { %187 = vst.msk [vmem:[#allocation2 + $0x48] sm:$0x3] (!%p140_p2), %vm180_vm1, %v7628_v4  ;;  %188 = vst.msk [vmem:[#allocation2 + $0x54] sm:$0x3] (!%p140_p2), %vm180_vm1, %v7628_v4  ;;  %v7770_v48 = vsel (!%p140_p2), %vm278_vm0, %v6522_v6, 0  ;;  %vm976_vm8 = vcmask (!%p140_p2), 31744  }
   0xc   : > { %189 = vst.msk [vmem:[#allocation2 + $0x60] sm:$0x3] (!%p140_p2), %vm180_vm1, %v7628_v4  ;;  %190 = vst.msk [vmem:[#allocation2 + $0x6c] sm:$0x3] (!%p140_p2), %vm180_vm1, %v7628_v4  ;;  %vm3332_vm10 = vsmask.f32 (!%p140_p2), 1280 }
   0xd   : > { %191 = vst.msk [vmem:[#allocation2 + $0x78] sm:$0x3] %vm180_vm1, %v7628_v4  ;;  %192 = vst.msk [vmem:[#allocation2 + $0x84] sm:$0x3] %vm180_vm1, %v7628_v4  ;;  %s9569_s18 = smov (!%p166_p3, %s7668_s18), 31  ;;  %vm4173_vm13 = vcmask 1040384  }
   0xe   : > { %193 = vst.msk [vmem:[#allocation2 + $0x90] sm:$0x3] %vm180_vm1, %v7628_v4  ;;  %194 = vst.msk [vmem:[#allocation2 + $0x9c] sm:$0x3] %vm180_vm1, %v7628_v4  ;;  %s6720_s23 = sshll.u32 %s9569_s18, 3  ;;  %vm4174_vm14 = vcmask 1044484  }
   0xf   : > { %195 = vst.msk [vmem:[#allocation2 + $0xa8] sm:$0x3] %vm180_vm1, %v7628_v4  ;;  %196 = vst.msk [vmem:[#allocation2 + $0xb4] sm:$0x3] %vm180_vm1, %v7628_v4  ;;  %s7722_s26 = scalar_lea.vmem %s9548_s0, %s6720_s23  ;;  %vm3333_vm11 = vsmask.f32 5392 }
  0x10   : > { %198 = vst.msk [vmem:[#allocation2 + $0x8] sm:$0xc] %vm197_vm2, %v7628_v4  ;;  %199 = vst.msk [vmem:[#allocation2 + $0x14] sm:$0xc] %vm197_vm2, %v7628_v4  ;;  %v214_v7 = vld [vmem:[%s7722_s26] sm:$0xf] }
  0x11   : > { %200 = vst.msk [vmem:[#allocation2 + $0x20] sm:$0xc] %vm197_vm2, %v7628_v4  ;;  %201 = vst.msk [vmem:[#allocation2 + $0x2c] sm:$0xc] %vm197_vm2, %v7628_v4  ;;  %v215_v8 = vld [vmem:[%s7722_s26 + $0x4] sm:$0xf] }
  0x12   : > { %202 = vst.msk [vmem:[#allocation2 + $0x38] sm:$0xc] %vm197_vm2, %v7628_v4  ;;  %203 = vst.msk [vmem:[#allocation2 + $0x44] sm:$0xc] %vm197_vm2, %v7628_v4  ;;  %v216_v9 = vld [vmem:[%s7722_s26 + $0x8] sm:$0xf] }
  0x13   : > { %204 = vst.msk [vmem:[#allocation2 + $0x50] sm:$0xc] %vm197_vm2, %v7628_v4  ;;  %205 = vst.msk [vmem:[#allocation2 + $0x5c] sm:$0xc] %vm197_vm2, %v7628_v4  ;;  %v281_v10 = vrot.slane %v214_v7, 6  ;;  %v283_v11 = vrot.slane %v215_v8, 6 }
  0x14   : > { %206 = vst.msk [vmem:[#allocation2 + $0x68] sm:$0xc] %vm197_vm2, %v7628_v4  ;;  %207 = vst.msk [vmem:[#allocation2 + $0x74] sm:$0xc] %vm197_vm2, %v7628_v4  ;;  %v217_v12 = vld [vmem:[%s7722_s26 + $0xc] sm:$0xf] }
  0x15   : > { %208 = vst.msk [vmem:[#allocation2 + $0x80] sm:$0xc] %vm197_vm2, %v7628_v4  ;;  %209 = vst.msk [vmem:[#allocation2 + $0x8c] sm:$0xc] %vm197_vm2, %v7628_v4  ;;  %v286_v13 = vrot.slane %v216_v9, 6  ;;  %v288_v15 = vrot.slane %v217_v12, 6 }
  0x16   : > { %210 = vst.msk [vmem:[#allocation2 + $0x98] sm:$0xc] %vm197_vm2, %v7628_v4  ;;  %211 = vst.msk [vmem:[#allocation2 + $0xa4] sm:$0xc] %vm197_vm2, %v7628_v4  ;;  %v218_v16 = vld [vmem:[%s7722_s26 + $0x10] sm:$0xf] }
  0x17   : > { %212 = vst.msk [vmem:[#allocation2 + $0xb0] sm:$0xc] %vm197_vm2, %v7628_v4  ;;  %213 = vst.msk [vmem:[#allocation2 + $0xbc] sm:$0xc] %vm197_vm2, %v7628_v4  ;;  %v219_v17 = vld [vmem:[%s7722_s26 + $0x14] sm:$0xf] }
  0x18   : > { %vm7729_vm4 = vmor %vm278_vm0, %vm279_vm3  ;;  %v282_v18 = vrot.slane %v281_v10, 4  ;;  %v285_v19 = vrot.slane %v283_v11, 4  ;;  %409 = vst.msk [vmem:[#allocation2] sm:$0xc] %vm197_vm2, %v281_v10  ;;  %v287_v20 = vrot.slane %v286_v13, 4  ;;  %v291_v21 = vrot.slane %v218_v16, 6 }
  0x19   : > { %413 = vst.msk [vmem:[#allocation2 + $0xc] sm:$0xc] %vm197_vm2, %v286_v13  ;;  %v220_v22 = vld [vmem:[%s7722_s26 + $0x18] sm:$0xf]  ;;  %v290_v23 = vrot.slane %v288_v15, 4  ;;  %v293_v24 = vrot.slane %v219_v17, 6  ;;  %vm7798_vm9 = vmor %vm541_vm6, %vm542_vm7 }
  0x1a   : > { %v221_v25 = vld [vmem:[%s7722_s26 + $0x1c] sm:$0xf]  ;;  %v296_v26 = vrot.slane %v220_v22, 6  ;;  %v284_v27 = vsel %vm7729_vm4, %v282_v18, %v283_v11  ;;  %412 = vst.msk [vmem:[#allocation2 + $0x8] sm:$0x3] %vm180_vm1, %v285_v19  ;;  %v289_v28 = vsel %vm7729_vm4, %v287_v20, %v288_v15  ;;  %v292_v29 = vrot.slane %v291_v21, 4  ;;  %vm7904_vm12 = vmor %vm3332_vm10, %vm3333_vm11 }
  0x1b   : > { %416 = vst.msk [vmem:[#allocation2 + $0x18] sm:$0xc] %vm197_vm2, %v291_v21  ;;  %v298_v30 = vrot.slane %v221_v25, 6  ;;  %v222_v31 = vld [vmem:[%s7722_s26 + $0x20] sm:$0xf]  ;;  %v295_v33 = vrot.slane %v293_v24, 4  ;;  %vm8141_vm15 = vmor %vm4173_vm13, %vm4174_vm14 }
  0x1c   : > { %v223_v32 = vld [vmem:[%s7722_s26 + $0x24] sm:$0xf]  ;;  %411 = vst.msk [vmem:[#allocation2 + $0x4] sm:$0xf] %vm410_vm5, %v284_v27  ;;  %414 = vst.msk [vmem:[#allocation2 + $0x10] sm:$0xf] %vm410_vm5, %v289_v28  ;;  %v294_v38 = vsel %vm7729_vm4, %v292_v29, %v293_v24 }
  0x1d   : > { %415 = vst.msk [vmem:[#allocation2 + $0x14] sm:$0x3] %vm180_vm1, %v290_v23  ;;  %v297_v34 = vrot.slane %v296_v26, 4  ;;  %v301_v35 = vrot.slane %v222_v31, 6  ;;  %v303_v36 = vrot.slane %v223_v32, 6  ;;  %v300_v39 = vrot.slane %v298_v30, 4 }
  0x1e   : > { %419 = vst.msk [vmem:[#allocation2 + $0x24] sm:$0xc] %vm197_vm2, %v296_v26  ;;  %v224_v37 = vld [vmem:[%s7722_s26 + $0x28] sm:$0xf]  ;;  %v7755_v40 = vld [vmem:[%s7722_s26 + $0x2c] sm:$0xf] }
  0x1f   : > { %v306_v41 = vrot.slane %v224_v37, 6  ;;  %v7758_v42 = vld [vmem:[%s7722_s26 + $0x30] sm:$0xf]  ;;  %417 = vst.msk [vmem:[#allocation2 + $0x1c] sm:$0xf] %vm410_vm5, %v294_v38  ;;  %v299_v43 = vsel %vm7729_vm4, %v297_v34, %v298_v30  ;;  %v302_v44 = vrot.slane %v301_v35, 4 }
  0x20   : > { %418 = vst.msk [vmem:[#allocation2 + $0x20] sm:$0x3] %vm180_vm1, %v295_v33  ;;  %v305_v45 = vrot.slane %v303_v36, 4  ;;  %v308_v46 = vrot.slane %v7755_v40, 6  ;;  %421 = vst.msk [vmem:[#allocation2 + $0x2c] sm:$0x3] %vm180_vm1, %v300_v39 }
  0x21   : > { %422 = vst.msk [vmem:[#allocation2 + $0x30] sm:$0xc] %vm197_vm2, %v301_v35  ;;  %v307_v49 = vrot.slane %v306_v41, 4  ;;  %425 = vst.msk [vmem:[#allocation2 + $0x3c] sm:$0xc] %vm197_vm2, %v306_v41  ;;  %v311_v50 = vrot.slane %v7758_v42, 6  ;;  %v304_v54 = vsel %vm7729_vm4, %v302_v44, %v303_v36 }
  0x22   : > { %420 = vst.msk [vmem:[#allocation2 + $0x28] sm:$0xf] %vm410_vm5, %v299_v43  ;;  %v2780_v51 = vld [vmem:[#allocation2] sm:$0xc]  ;;  %v2783_v52 = vld [vmem:[#allocation2 + $0xc] sm:$0xc] }
  0x23   : > { %v491_v53 = vld [vmem:[#allocation2] sm:$0xf]  ;;  %424 = vst.msk [vmem:[#allocation2 + $0x38] sm:$0x3] %vm180_vm1, %v305_v45  ;;  %v6474_v55 = vrot.slane %v2780_v51, 10  ;;  %v6475_v56 = vrot.slane %v2783_v52, 10  ;;  %v309_v0 = vsel %vm7729_vm4, %v307_v49, %v308_v46 }
  0x24   : > { %v545_v57 = vshrl.u32 %v491_v53, 16  ;;  %v548_v58 = vshll.u32 %v491_v53, 16  ;;  %v494_v59 = vld [vmem:[#allocation2 + $0xc] sm:$0xf]  ;;  %423 = vst.msk [vmem:[#allocation2 + $0x34] sm:$0xf] %vm410_vm5, %v304_v54 }
  0x25   : > { %428 = vst.msk [vmem:[#allocation2 + $0x48] sm:$0xc] %vm197_vm2, %v311_v50  ;;  %v2782_v60 = vld [vmem:[#allocation2 + $0x8] sm:$0x3]  ;;  %v569_v62 = vshrl.u32 %v494_v59, 16  ;;  %v572_v63 = vshll.u32 %v494_v59, 16 }
  0x26   : > { %v493_v61 = vld [vmem:[#allocation2 + $0x8] sm:$0x1]  ;;  %v2781_v1 = vld [vmem:[#allocation2 + $0x4] sm:$0xf]  ;;  %v2883_v3 = vrot.slane %v2782_v60, 6  ;;  %v547_v5 = vrot.slane %v545_v57, 4 }
  0x27   : > { %v2784_v4 = vld [vmem:[#allocation2 + $0x10] sm:$0xf]  ;;  %426 = vst.msk [vmem:[#allocation2 + $0x40] sm:$0xf] %vm410_vm5, %v309_v0  ;;  %v2880_v6 = vrot.slane %v2781_v1, 6  ;;  %v550_v11 = vrot.slane %v548_v58, 5 }
  0x28   : > { %v2785_v7 = vld [vmem:[#allocation2 + $0x14] sm:$0x3]  ;;  %v2887_v8 = vrot.slane %v2784_v4, 6  ;;  %v492_v9 = vld [vmem:[#allocation2 + $0x4] sm:$0xf]  ;;  %v564_v23 = vshll.u32 %v493_v61, 16 }
  0x29   : > { %v2890_v10 = vrot.slane %v2785_v7, 6  ;;  %v554_v12 = vshll.u32 %v492_v9, 16  ;;  %v558_v13 = vshrl.u32 %v492_v9, 16  ;;  %v2881_v15 = vsel %vm7729_vm4, %v6474_v55, %v2880_v6  ;;  %v495_v19 = vld [vmem:[#allocation2 + $0x10] sm:$0xf]  ;;  %s6721_s17 = sshll.u32 %s9569_s18, 4 }
  0x2a   : > { %v2882_v16 = vrot.slane %v2880_v6, 4  ;;  %v2888_v17 = vsel %vm7729_vm4, %v6475_v56, %v2887_v8  ;;  %v2889_v18 = vrot.slane %v2887_v8, 4  ;;  %v551_v20 = vor.u32 %v550_v11, %v547_v5  ;;  %v496_v24 = vld [vmem:[#allocation2 + $0x14] sm:$0x1]  ;;  %v2786_v30 = vld [vmem:[#allocation2 + $0x18] sm:$0xc]  ;;  %s9060_s20 = scalar_lea.vmem %s9551_s3, %s6721_s17 }
  0x2b   : > { %v556_v21 = vrot.slane %v554_v12, 5  ;;  %v560_v22 = vrot.slane %v558_v13, 4  ;;  %v571_v28 = vrot.slane %v569_v62, 4  ;;  %v574_v29 = vrot.slane %v572_v63, 5  ;;  %v2787_v31 = vld [vmem:[#allocation2 + $0x1c] sm:$0xf] }
  0x2c   : > { %v2884_v25 = vsel %vm7729_vm4, %v2882_v16, %v2883_v3  ;;  %v2891_v26 = vsel %vm7729_vm4, %v2889_v18, %v2890_v10  ;;  %v552_v34 = vrot.slane %v551_v20, 4  ;;  %v2788_v36 = vld [vmem:[#allocation2 + $0x20] sm:$0x3]  ;;  %v2789_v37 = vld [vmem:[#allocation2 + $0x24] sm:$0xc]  ;;  %v566_v39 = vrot.slane %v564_v23, 5 }
  0x2d   : > { %v6490_v32 = vcombine.low %v2881_v15, %v2884_v25  ;;  %v6491_v33 = vcombine.low %v2888_v17, %v2891_v26  ;;  %v561_v35 = vor.u32 %v560_v22, %v556_v21  ;;  %v7805_v38 = vld [vmem:[%s9549_s1 + $0xc] sm:$0x3]  ;;  %v575_v41 = vor.u32 %v574_v29, %v571_v28  ;;  %v2790_v45 = vld [vmem:[#allocation2 + $0x28] sm:$0xf]  ;;  %v497_v59 = vld [vmem:[#allocation2 + $0x18] sm:$0xf] }
  0x2e   : > { %v578_v43 = vshll.u32 %v495_v19, 16  ;;  %v582_v44 = vshrl.u32 %v495_v19, 16  ;;  %v557_v49 = vsel %vm7798_vm9, %v552_v34, %v556_v21  ;;  %v588_v52 = vshll.u32 %v496_v24, 16  ;;  %v2791_v54 = vld [vmem:[#allocation2 + $0x2c] sm:$0x3] }
  0x2f   : > { %7013 = vmatprep.mubr.msk.bf16.mxu0 %vm976_vm8, %v6490_v32  ;;  %v562_v51 = vrot.slane %v561_v35, 4  ;;  %v6476_v53 = vrot.slane %v2786_v30, 10  ;;  %v576_v55 = vrot.slane %v575_v41, 4  ;;  %v2894_v58 = vrot.slane %v2787_v31, 6  ;;  %v498_v0 = vld [vmem:[#allocation2 + $0x1c] sm:$0xf] }
  0x30   : > { %7014 = vmatmul.mubr.msk.bf16.vlgmr.msra.gmra.mrb[0].mxu0 %vm976_vm8, %v6491_v33  ;;  %v580_v56 = vrot.slane %v578_v43, 5  ;;  %v584_v57 = vrot.slane %v582_v44, 4  ;;  %v590_v61 = vrot.slane %v588_v52, 5  ;;  %v2897_v62 = vrot.slane %v2788_v36, 6  ;;  %v499_v10 = vld [vmem:[#allocation2 + $0x20] sm:$0x1] }
  0x31   : > { %v567_v60 = vsel %vm7798_vm9, %v562_v51, %v566_v39  ;;  %7046 = vmatpush3.bf16.msra.mxu0 %v7770_v48  ;;  %v6477_v63 = vrot.slane %v2789_v37, 10  ;;  %v2895_v5 = vsel %vm7729_vm4, %v6476_v53, %v2894_v58  ;;  %v2896_v6 = vrot.slane %v2894_v58, 4  ;;  %v500_v19 = vld [vmem:[#allocation2 + $0x24] sm:$0xf]  ;;  %v501_v24 = vld [vmem:[#allocation2 + $0x28] sm:$0xf] }
  0x32   : > { %v6327_v1 = vcombine.low %v557_v49, %v567_v60  ;;  %v581_v3 = vsel %vm7798_vm9, %v576_v55, %v580_v56  ;;  %v585_v4 = vor.u32 %v584_v57, %v580_v56  ;;  %7446 = vmatprep.subr.msk.bf16.mxu0 %vm278_vm0, %v7805_v38  ;;  %v2901_v7 = vrot.slane %v2790_v45, 6  ;;  %v502_v30 = vld [vmem:[#allocation2 + $0x2c] sm:$0x1]  ;;  %v2792_v35 = vld [vmem:[#allocation2 + $0x30] sm:$0xc] }
  0x33   : > { %v2904_v8 = vrot.slane %v2791_v54, 6  ;;  %v593_v9 = vshrl.u32 %v497_v59, 16  ;;  %v596_v11 = vshll.u32 %v497_v59, 16  ;;  %v602_v12 = vshll.u32 %v498_v0, 16  ;;  %v2793_v43 = vld [vmem:[#allocation2 + $0x34] sm:$0xf] }
  0x34   : > { %6877 = vmatprep.mubr.msk.bf16.mxu1 %vm976_vm8, %v6327_v1  ;;  %v586_v48 = vrot.slane %v585_v4, 4  ;;  %v606_v13 = vshrl.u32 %v498_v0, 16  ;;  %v2898_v15 = vsel %vm7729_vm4, %v2896_v6, %v2897_v62  ;;  %v2902_v16 = vsel %vm7729_vm4, %v6477_v63, %v2901_v7  ;;  %v2794_v52 = vld [vmem:[#allocation2 + $0x38] sm:$0x3]  ;;  %v7834_v57 = vld [vmem:[%s7722_s26 + $0x34] sm:$0xf] }
  0x35   : > { %v2903_v17 = vrot.slane %v2901_v7, 4  ;;  %v595_v18 = vrot.slane %v593_v9, 4  ;;  %v6492_v21 = vcombine.low %v2895_v5, %v2898_v15  ;;  %v598_v22 = vrot.slane %v596_v11, 5  ;;  %v503_v62 = vld [vmem:[#allocation2 + $0x30] sm:$0xf] }
  0x36   : > { %v591_v20 = vsel %vm7798_vm9, %v586_v48, %v590_v61  ;;  %v604_v23 = vrot.slane %v602_v12, 5  ;;  %v608_v28 = vrot.slane %v606_v13, 4  ;;  %v612_v29 = vshll.u32 %v499_v10, 16  ;;  %v504_v4 = vld [vmem:[#allocation2 + $0x34] sm:$0xf] }
  0x37   : > { %v6328_v25 = vcombine.low %v581_v3, %v591_v20  ;;  %v2905_v26 = vsel %vm7729_vm4, %v2903_v17, %v2904_v8  ;;  %7017 = vmatprep.mubr.msk.bf16.mxu0 %vm976_vm8, %v6492_v21  ;;  %v599_v32 = vor.u32 %v598_v22, %v595_v18  ;;  %v617_v33 = vshrl.u32 %v500_v19, 16  ;;  %v2795_v9 = vld [vmem:[#allocation2 + $0x3c] sm:$0xc]  ;;  %v505_v13 = vld [vmem:[#allocation2 + $0x38] sm:$0x1] }
  0x38   : > { %v6493_v31 = vcombine.low %v2902_v16, %v2905_v26  ;;  %v620_v34 = vshll.u32 %v500_v19, 16  ;;  %v609_v36 = vor.u32 %v608_v28, %v604_v23  ;;  %v614_v37 = vrot.slane %v612_v29, 5  ;;  %v506_v17 = vld [vmem:[#allocation2 + $0x3c] sm:$0xf]  ;;  %v507_v22 = vld [vmem:[#allocation2 + $0x40] sm:$0xf] }
  0x39   : > { %6878 = vmatmul.mubr.msk.bf16.vlgmr.msra.gmra.mrb[0].mxu1 %vm976_vm8, %v6328_v25  ;;  %v626_v39 = vshll.u32 %v501_v24, 16  ;;  %v630_v41 = vshrl.u32 %v501_v24, 16  ;;  %v600_v44 = vrot.slane %v599_v32, 4  ;;  %v619_v45 = vrot.slane %v617_v33, 4 }
  0x3a   : > { %6910 = vmatpush3.bf16.msra.mxu1 %v7767_v47  ;;  %7018 = vmatmul.mubr.msk.bf16.gmra.mrb[4].mxu0 %vm976_vm8, %v6493_v31  ;;  %v622_v49 = vrot.slane %v620_v34, 5  ;;  %v636_v51 = vshll.u32 %v502_v30, 16  ;;  %v610_v53 = vrot.slane %v609_v36, 4  ;;  %v6478_v56 = vrot.slane %v2792_v35, 10  ;;  %v2796_v47 = vld [vmem:[#allocation2 + $0x40] sm:$0xf] }
  0x3b   : > { %v628_v54 = vrot.slane %v626_v39, 5  ;;  %v632_v55 = vrot.slane %v630_v41, 4  ;;  %v605_v58 = vsel %vm7798_vm9, %v600_v44, %v604_v23  ;;  %v2908_v61 = vrot.slane %v2793_v43, 6  ;;  %v7857_v43 = vld [vmem:[#allocation2 + $0x48] sm:$0xc] }
  0x3c   : > { %v623_v59 = vor.u32 %v622_v49, %v619_v45  ;;  %v638_v60 = vrot.slane %v636_v51, 5  ;;  %v615_v63 = vsel %vm7798_vm9, %v610_v53, %v614_v37  ;;  %v2911_v1 = vrot.slane %v2794_v52, 6 }
  0x3d   : > { %v633_v0 = vor.u32 %v632_v55, %v628_v54  ;;  %v310_v3 = vrot.slane %v308_v46, 4  ;;  %v6329_v5 = vcombine.low %v605_v58, %v615_v63  ;;  %v2909_v7 = vsel %vm7729_vm4, %v6478_v56, %v2908_v61  ;;  %v228_v56 = vld [vmem:[%s7722_s26 + $0x38] sm:$0xf] }
  0x3e   : > { %v624_v6 = vrot.slane %v623_v59, 4  ;;  %v2910_v8 = vrot.slane %v2908_v61, 4  ;;  %v2915_v10 = vrot.slane %v2796_v47, 6  ;;  %v641_v11 = vshrl.u32 %v503_v62, 16  ;;  %v509_v47 = vld [vmem:[#allocation2 + $0x48] sm:$0xf] }
  0x3f   : > { %v634_v48 = vrot.slane %v633_v0, 4  ;;  %427 = vst.msk [vmem:[#allocation2 + $0x44] sm:$0x3] %vm180_vm1, %v310_v3  ;;  %v313_v12 = vrot.slane %v7834_v57, 6  ;;  %6881 = vmatprep.mubr.msk.bf16.mxu1 %vm976_vm8, %v6329_v5  ;;  %v644_v15 = vshll.u32 %v503_v62, 16  ;;  %v650_v16 = vshll.u32 %v504_v4, 16 }
  0x40   : > { %v629_v40 = vsel %vm7798_vm9, %v624_v6, %v628_v54  ;;  %v2912_v46 = vsel %vm7729_vm4, %v2910_v8, %v2911_v1  ;;  %v6479_v20 = vrot.slane %v2795_v9, 10  ;;  %v2917_v21 = vrot.slane %v2915_v10, 4  ;;  %v229_v57 = vld [vmem:[%s7722_s26 + $0x3c] sm:$0xf] }
  0x41   : > { %v639_v18 = vsel %vm7798_vm9, %v634_v48, %v638_v60  ;;  %v6494_v19 = vcombine.low %v2909_v7, %v2912_v46  ;;  %v643_v24 = vrot.slane %v641_v11, 4  ;;  %v646_v25 = vrot.slane %v644_v15, 5  ;;  %v3282_v7 = vld [vmem:[#allocation2] sm:$0xc]  ;;  %v3283_v11 = vld [vmem:[#allocation2 + $0x4] sm:$0xf] }
  0x42   : > { %v6330_v23 = vcombine.low %v629_v40, %v639_v18  ;;  %v652_v26 = vrot.slane %v650_v16, 5  ;;  %v654_v28 = vshrl.u32 %v504_v4, 16  ;;  %v660_v29 = vshll.u32 %v505_v13, 16 }
  0x43   : > { %7021 = vmatprep.mubr.msk.bf16.mxu0 %vm976_vm8, %v6494_v19  ;;  %v665_v30 = vshrl.u32 %v506_v17, 16  ;;  %v668_v31 = vshll.u32 %v506_v17, 16  ;;  %v647_v32 = vor.u32 %v646_v25, %v643_v24  ;;  %v674_v33 = vshll.u32 %v507_v22, 16 }
  0x44   : > { %6882 = vmatmul.mubr.msk.bf16.gmra.mrb[4].mxu1 %vm976_vm8, %v6330_v23  ;;  %v678_v34 = vshrl.u32 %v507_v22, 16  ;;  %v312_v35 = vrot.slane %v311_v50, 4  ;;  %v656_v36 = vrot.slane %v654_v28, 4  ;;  %v662_v37 = vrot.slane %v660_v29, 5 }
  0x45   : > { %v667_v39 = vrot.slane %v665_v30, 4  ;;  %v670_v41 = vrot.slane %v668_v31, 5  ;;  %v2916_v45 = vsel %vm7729_vm4, %v6479_v20, %v2915_v10  ;;  %v648_v49 = vrot.slane %v647_v32, 4  ;;  %v7886_v31 = vld [vmem:[#allocation2 + $0x8] sm:$0x7] }
  0x46   : > { %v2797_v44 = vld [vmem:[#allocation2 + $0x44] sm:$0x3]  ;;  %v676_v52 = vrot.slane %v674_v33, 5  ;;  %v314_v53 = vsel %vm7729_vm4, %v312_v35, %v313_v12  ;;  %v657_v50 = vor.u32 %v656_v36, %v652_v26  ;;  %v680_v55 = vrot.slane %v678_v34, 4 }
  0x47   : > { %v508_v51 = vld [vmem:[#allocation2 + $0x44] sm:$0x1]  ;;  %v2918_v42 = vrot.slane %v2797_v44, 6  ;;  %v671_v54 = vor.u32 %v670_v41, %v667_v39  ;;  %429 = vst.msk [vmem:[#allocation2 + $0x4c] sm:$0xf] %vm410_vm5, %v314_v53  ;;  %v653_v58 = vsel %vm7798_vm9, %v648_v49, %v652_v26  ;;  %v315_v60 = vrot.slane %v313_v12, 4 }
  0x48   : > { %v684_v59 = vshll.u32 %v508_v51, 16  ;;  %v6480_v61 = vrot.slane %v7857_v43, 10  ;;  %v658_v63 = vrot.slane %v657_v50, 4  ;;  %v681_v1 = vor.u32 %v680_v55, %v676_v52 }
  0x49   : > { %v2919_v62 = vsel %vm7729_vm4, %v2917_v21, %v2918_v42  ;;  %v672_v0 = vrot.slane %v671_v54, 4  ;;  %430 = vst.msk [vmem:[#allocation2 + $0x50] sm:$0x3] %vm180_vm1, %v315_v60  ;;  %v316_v5 = vrot.slane %v228_v56, 6  ;;  %v318_v6 = vrot.slane %v229_v57, 6 }
  0x4a   : > { %v6495_v3 = vcombine.low %v2916_v45, %v2919_v62  ;;  %v686_v4 = vrot.slane %v684_v59, 5  ;;  %v663_v8 = vsel %vm7798_vm9, %v658_v63, %v662_v37  ;;  %v682_v48 = vrot.slane %v681_v1, 4 }
  0x4b   : > { %v677_v9 = vsel %vm7798_vm9, %v672_v0, %v676_v52  ;;  %v689_v10 = vshrl.u32 %v509_v47, 16  ;;  %v6331_v12 = vcombine.low %v653_v58, %v663_v8  ;;  %v317_v40 = vrot.slane %v316_v5, 4  ;;  %431 = vst.msk [vmem:[#allocation2 + $0x54] sm:$0xc] %vm197_vm2, %v316_v5 }
  0x4c   : > { %7022 = vmatmul.mubr.msk.bf16.gmra.mrb[8].mxu0 %vm976_vm8, %v6495_v3  ;;  %v320_v46 = vrot.slane %v318_v6, 4  ;;  %v692_v13 = vshll.u32 %v509_v47, 16  ;;  %v687_v15 = vsel %vm7798_vm9, %v682_v48, %v686_v4  ;;  %v3336_v17 = vshrl.u32 %v3282_v7, 16 }
  0x4d   : > { %v691_v16 = vrot.slane %v689_v10, 4  ;;  %v3339_v18 = vshll.u32 %v3282_v7, 16  ;;  %6885 = vmatprep.mubr.msk.bf16.mxu1 %vm976_vm8, %v6331_v12  ;;  %v6332_v19 = vcombine.low %v677_v9, %v687_v15  ;;  %v319_v21 = vsel %vm7729_vm4, %v317_v40, %v318_v6  ;;  %v3285_v15 = vld [vmem:[#allocation2 + $0xc] sm:$0xc] }
  0x4e   : > { %v2799_v20 = vld [vmem:[#allocation2 + $0x4c] sm:$0xf]  ;;  %433 = vst.msk [vmem:[#allocation2 + $0x5c] sm:$0x3] %vm180_vm1, %v320_v46  ;;  %v694_v23 = vrot.slane %v692_v13, 5  ;;  %v3345_v24 = vshrl.u32 %v3283_v11, 16 }
  0x4f   : > { %v510_v22 = vld [vmem:[#allocation2 + $0x4c] sm:$0xf]  ;;  %v2922_v25 = vrot.slane %v2799_v20, 6  ;;  %432 = vst.msk [vmem:[#allocation2 + $0x58] sm:$0xf] %vm410_vm5, %v319_v21  ;;  %v3338_v29 = vrot.slane %v3336_v17, 6  ;;  %6886 = vmatmul.mubr.msk.bf16.gmra.mrb[8].mxu1 %vm976_vm8, %v6332_v19 }
  0x50   : > { %v698_v26 = vshll.u32 %v510_v22, 16  ;;  %v702_v28 = vshrl.u32 %v510_v22, 16  ;;  %v695_v30 = vor.u32 %v694_v23, %v691_v16  ;;  %v3341_v32 = vrot.slane %v3339_v18, 7  ;;  %v2800_v35 = vld [vmem:[#allocation2 + $0x50] sm:$0x3] }
  0x51   : > { %v3347_v33 = vrot.slane %v3345_v24, 6  ;;  %v3348_v34 = vshll.u32 %v3283_v11, 16  ;;  %v2923_v36 = vsel %vm7729_vm4, %v6480_v61, %v2922_v25  ;;  %v2924_v37 = vrot.slane %v2922_v25, 4  ;;  %v511_v39 = vld [vmem:[#allocation2 + $0x50] sm:$0x1] }
  0x52   : > { %v700_v41 = vrot.slane %v698_v26, 5  ;;  %v2925_v43 = vrot.slane %v2800_v35, 6  ;;  %v696_v44 = vrot.slane %v695_v30, 4  ;;  %v704_v45 = vrot.slane %v702_v28, 4  ;;  %v2801_v51 = vld [vmem:[#allocation2 + $0x54] sm:$0xc] }
  0x53   : > { %v708_v49 = vshll.u32 %v511_v39, 16  ;;  %v512_v52 = vld [vmem:[#allocation2 + $0x54] sm:$0xf]  ;;  %v3342_v53 = vor.u32 %v3341_v32, %v3338_v29  ;;  %v3350_v42 = vrot.slane %v3348_v34, 7  ;;  %v7892_v50 = vsel %vm278_vm0, %v7805_v38, 0 }
  0x54   : > { %v2926_v54 = vsel %vm7729_vm4, %v2924_v37, %v2925_v43  ;;  %v6481_v55 = vrot.slane %v2801_v51, 10  ;;  %v705_v56 = vor.u32 %v704_v45, %v700_v41  ;;  %v3355_v57 = vshrl.u32 %v7886_v31, 16  ;;  %v3286_v20 = vld [vmem:[#allocation2 + $0x10] sm:$0xf]  ;;  %v3287_v25 = vld [vmem:[#allocation2 + $0x14] sm:$0x7] }
  0x55   : > { %v6496_v58 = vcombine.low %v2923_v36, %v2926_v54  ;;  %v2803_v59 = vld [vmem:[#allocation2 + $0x5c] sm:$0x3]  ;;  %v710_v60 = vrot.slane %v708_v49, 5  ;;  %v713_v47 = vshrl.u32 %v512_v52, 16  ;;  %v701_v0 = vsel %vm7798_vm9, %v696_v44, %v700_v41  ;;  %v230_v32 = vld [vmem:[%s7722_s26 + $0x40] sm:$0xf] }
  0x56   : > { %v514_v61 = vld [vmem:[#allocation2 + $0x5c] sm:$0x1]  ;;  %v2802_v62 = vld [vmem:[#allocation2 + $0x58] sm:$0xf]  ;;  %v2932_v63 = vrot.slane %v2803_v59, 6  ;;  %v706_v1 = vrot.slane %v705_v56, 4  ;;  %v7899_v3 = vor.u32 %v3350_v42, %v3347_v33 }
  0x57   : > { %v513_v38 = vld [vmem:[#allocation2 + $0x58] sm:$0xf]  ;;  %7025 = vmatprep.mubr.msk.bf16.mxu0 %vm976_vm8, %v6496_v58  ;;  %v2929_v4 = vrot.slane %v2802_v62, 6  ;;  %v715_v5 = vrot.slane %v713_v47, 4  ;;  %v716_v6 = vshll.u32 %v512_v52, 16  ;;  %v732_v10 = vshll.u32 %v514_v61, 16 }
  0x58   : > { %v722_v7 = vshll.u32 %v513_v38, 16  ;;  %v711_v9 = vsel %vm7798_vm9, %v706_v1, %v710_v60  ;;  %v726_v48 = vshrl.u32 %v513_v38, 16  ;;  %v3343_v11 = vrot.slane %v3342_v53, 4  ;;  %v231_v37 = vld [vmem:[%s7722_s26 + $0x44] sm:$0xf] }
  0x59   : > { %v2930_v12 = vsel %vm7729_vm4, %v6481_v55, %v2929_v4  ;;  %v2931_v40 = vrot.slane %v2929_v4, 4  ;;  %v6333_v46 = vcombine.low %v701_v0, %v711_v9  ;;  %v718_v13 = vrot.slane %v716_v6, 5  ;;  %v232_v39 = vld [vmem:[%s7722_s26 + $0x48] sm:$0xf]  ;;  %v233_v53 = vld [vmem:[%s7722_s26 + $0x4c] sm:$0xf] }
  0x5a   : > { %v724_v16 = vrot.slane %v722_v7, 5  ;;  %v728_v17 = vrot.slane %v726_v48, 4  ;;  %v734_v18 = vrot.slane %v732_v10, 5  ;;  %v3352_v19 = vsel %vm7904_vm12, %v3343_v11, %v7899_v3  ;;  %v7930_v42 = vld [vmem:[%s9549_s1 + $0x4] sm:$0x3] }
  0x5b   : > { %v2933_v21 = vsel %vm7729_vm4, %v2931_v40, %v2932_v63  ;;  %6889 = vmatprep.mubr.msk.bf16.mxu1 %vm976_vm8, %v6333_v46  ;;  %v719_v22 = vor.u32 %v718_v13, %v715_v5  ;;  %v3353_v23 = vrot.slane %v7899_v3, 4  ;;  %v3357_v24 = vrot.slane %v3355_v57, 6  ;;  %v3288_v58 = vld [vmem:[#allocation2 + $0x18] sm:$0xc]  ;;  %7441 = vmatprep.subr.msk.bf16.mxu1 %vm278_vm0, %v7930_v42  ;;  %v3289_v62 = vld [vmem:[#allocation2 + $0x1c] sm:$0xf] }
  0x5c   : > { %v6497_v26 = vcombine.low %v2930_v12, %v2933_v21  ;;  %v729_v28 = vor.u32 %v728_v17, %v724_v16  ;;  %v3358_v29 = vshll.u32 %v7886_v31, 16  ;;  %v3364_v30 = vshrl.u32 %v3285_v15, 16  ;;  %v3290_v7 = vld [vmem:[#allocation2 + $0x20] sm:$0x7]  ;;  %v3291_v9 = vld [vmem:[#allocation2 + $0x24] sm:$0xc] }
  0x5d   : > { %v720_v33 = vrot.slane %v719_v22, 4  ;;  %v3367_v34 = vshll.u32 %v3285_v15, 16  ;;  %v3373_v35 = vshrl.u32 %v3286_v20, 16  ;;  %v3376_v36 = vshll.u32 %v3286_v20, 16 }
  0x5e   : > { %7026 = vmatmul.mubr.msk.bf16.gmra.mrb[12].mxu0 %vm976_vm8, %v6497_v26  ;;  %v730_v41 = vrot.slane %v729_v28, 4  ;;  %v3360_v43 = vrot.slane %v3358_v29, 7  ;;  %v3366_v44 = vrot.slane %v3364_v30, 6  ;;  %v3383_v45 = vshrl.u32 %v3287_v25, 16 }
  0x5f   : > { %v725_v49 = vsel %vm7798_vm9, %v720_v33, %v724_v16  ;;  %v3369_v51 = vrot.slane %v3367_v34, 7  ;;  %v3375_v31 = vrot.slane %v3373_v35, 6  ;;  %v3378_v52 = vrot.slane %v3376_v36, 7  ;;  %v7946_v16 = vld [vmem:[#allocation2 + $0x28] sm:$0xf] }
  0x60   : > { %v735_v54 = vsel %vm7798_vm9, %v730_v41, %v734_v18  ;;  %v3361_v55 = vor.u32 %v3360_v43, %v3357_v24  ;;  %v3385_v56 = vrot.slane %v3383_v45, 6  ;;  %v3386_v57 = vshll.u32 %v3287_v25, 16 }
  0x61   : > { %v6334_v59 = vcombine.low %v725_v49, %v735_v54  ;;  %v3370_v60 = vor.u32 %v3369_v51, %v3366_v44  ;;  %v3379_v61 = vor.u32 %v3378_v52, %v3375_v31  ;;  %v321_v47 = vrot.slane %v230_v32, 6 }
  0x62   : > { %v3362_v63 = vsel %vm7904_vm12, %v3353_v23, %v3361_v55  ;;  %v3388_v0 = vrot.slane %v3386_v57, 7  ;;  %v323_v1 = vrot.slane %v231_v37, 6  ;;  %v326_v38 = vrot.slane %v232_v39, 6 }
  0x63   : > { %6890 = vmatmul.mubr.msk.bf16.gmra.mrb[12].mxu1 %vm976_vm8, %v6334_v59  ;;  %v6523_v3 = vcombine.low %v3352_v19, %v3362_v63  ;;  %v3371_v4 = vrot.slane %v3370_v60, 4  ;;  %v3381_v5 = vrot.slane %v3379_v61, 4  ;;  %v322_v6 = vrot.slane %v321_v47, 4  ;;  %434 = vst.msk [vmem:[#allocation2 + $0x60] sm:$0xc] %vm197_vm2, %v321_v47 }
  0x64   : > { %v3389_v48 = vor.u32 %v3388_v0, %v3385_v56  ;;  %v325_v10 = vrot.slane %v323_v1, 4  ;;  %v327_v11 = vrot.slane %v326_v38, 4  ;;  %v328_v12 = vrot.slane %v233_v53, 6  ;;  %437 = vst.msk [vmem:[#allocation2 + $0x6c] sm:$0xc] %vm197_vm2, %v326_v38 }
  0x65   : > { %7047 = vmatprep.mubr.msk.bf16.mxu0 %vm976_vm8, %v6523_v3  ;;  %v3380_v40 = vsel %vm7904_vm12, %v3371_v4, %v3379_v61  ;;  %v324_v46 = vsel %vm7729_vm4, %v322_v6, %v323_v1  ;;  %v3392_v13 = vshrl.u32 %v3288_v58, 16  ;;  %v3395_v15 = vshll.u32 %v3288_v58, 16 }
  0x66   : > { %v3390_v17 = vsel %vm7904_vm12, %v3381_v5, %v3389_v48  ;;  %435 = vst.msk [vmem:[#allocation2 + $0x64] sm:$0xf] %vm410_vm5, %v324_v46  ;;  %v329_v18 = vsel %vm7729_vm4, %v327_v11, %v328_v12  ;;  %v330_v19 = vrot.slane %v328_v12, 4  ;;  %v3401_v20 = vshrl.u32 %v3289_v62, 16 }
  0x67   : > { %436 = vst.msk [vmem:[#allocation2 + $0x68] sm:$0x3] %vm180_vm1, %v325_v10  ;;  %v6524_v21 = vcombine.low %v3380_v40, %v3390_v17  ;;  %v3394_v22 = vrot.slane %v3392_v13, 6  ;;  %v3397_v23 = vrot.slane %v3395_v15, 7  ;;  %v3404_v24 = vshll.u32 %v3289_v62, 16 }
  0x68   : > { %438 = vst.msk [vmem:[#allocation2 + $0x70] sm:$0xf] %vm410_vm5, %v329_v18  ;;  %v3403_v25 = vrot.slane %v3401_v20, 6  ;;  %v3411_v26 = vshrl.u32 %v3290_v7, 16  ;;  %v3414_v28 = vshll.u32 %v3290_v7, 16  ;;  %v3420_v29 = vshrl.u32 %v3291_v9, 16 }
  0x69   : > { %439 = vst.msk [vmem:[#allocation2 + $0x74] sm:$0x3] %vm180_vm1, %v330_v19  ;;  %7048 = vmatmul.mubr.msk.bf16.vlgmr.msra.gmra.mrb[0].mxu0 %vm976_vm8, %v6524_v21  ;;  %v3398_v30 = vor.u32 %v3397_v23, %v3394_v22  ;;  %v3406_v32 = vrot.slane %v3404_v24, 7  ;;  %v3423_v33 = vshll.u32 %v3291_v9, 16  ;;  %v3429_v39 = vshrl.u32 %v7946_v16, 16 }
  0x6a   : > { %v515_v34 = vld [vmem:[#allocation2 + $0x60] sm:$0xf]  ;;  %7080 = vmatpush3.bf16.msra.mxu0 %v7892_v50  ;;  %v3413_v35 = vrot.slane %v3411_v26, 6  ;;  %v3416_v36 = vrot.slane %v3414_v28, 7  ;;  %v3422_v37 = vrot.slane %v3420_v29, 6  ;;  %v3432_v53 = vshll.u32 %v7946_v16, 16 }
  0x6b   : > { %v737_v41 = vshrl.u32 %v515_v34, 16  ;;  %v740_v43 = vshll.u32 %v515_v34, 16  ;;  %v518_v44 = vld [vmem:[#allocation2 + $0x6c] sm:$0xf]  ;;  %v3399_v45 = vrot.slane %v3398_v30, 4  ;;  %v3407_v49 = vor.u32 %v3406_v32, %v3403_v25 }
  0x6c   : > { %v761_v51 = vshrl.u32 %v518_v44, 16  ;;  %v764_v31 = vshll.u32 %v518_v44, 16  ;;  %v3425_v52 = vrot.slane %v3423_v33, 7  ;;  %v3417_v58 = vor.u32 %v3416_v36, %v3413_v35  ;;  %v3293_v13 = vld [vmem:[#allocation2 + $0x2c] sm:$0x7] }
  0x6d   : > { %v516_v54 = vld [vmem:[#allocation2 + $0x64] sm:$0xf]  ;;  %v739_v56 = vrot.slane %v737_v41, 4  ;;  %v742_v57 = vrot.slane %v740_v43, 5  ;;  %v3408_v50 = vsel %vm7904_vm12, %v3399_v45, %v3407_v49  ;;  %v3409_v46 = vrot.slane %v3407_v49, 4 }
  0x6e   : > { %v517_v55 = vld [vmem:[#allocation2 + $0x68] sm:$0x1]  ;;  %v746_v59 = vshll.u32 %v516_v54, 16  ;;  %v750_v60 = vshrl.u32 %v516_v54, 16  ;;  %v763_v62 = vrot.slane %v761_v51, 4  ;;  %v766_v1 = vrot.slane %v764_v31, 5 }
  0x6f   : > { %v756_v61 = vshll.u32 %v517_v55, 16  ;;  %v519_v47 = vld [vmem:[#allocation2 + $0x70] sm:$0xf]  ;;  %v743_v63 = vor.u32 %v742_v57, %v739_v56  ;;  %v3426_v15 = vor.u32 %v3425_v52, %v3422_v37  ;;  %v3431_v19 = vrot.slane %v3429_v39, 6  ;;  %v235_v25 = vld [vmem:[%s7722_s26 + $0x54] sm:$0xf] }
  0x70   : > { %v520_v0 = vld [vmem:[#allocation2 + $0x74] sm:$0x1]  ;;  %v770_v38 = vshll.u32 %v519_v47, 16  ;;  %v774_v3 = vshrl.u32 %v519_v47, 16  ;;  %v748_v4 = vrot.slane %v746_v59, 5  ;;  %v752_v5 = vrot.slane %v750_v60, 4 }
  0x71   : > { %v758_v6 = vrot.slane %v756_v61, 5  ;;  %v780_v7 = vshll.u32 %v520_v0, 16  ;;  %v744_v9 = vrot.slane %v743_v63, 4  ;;  %v767_v48 = vor.u32 %v766_v1, %v763_v62  ;;  %v234_v20 = vld [vmem:[%s7722_s26 + $0x50] sm:$0xf] }
  0x72   : > { %v772_v10 = vrot.slane %v770_v38, 5  ;;  %v776_v11 = vrot.slane %v774_v3, 4  ;;  %v753_v12 = vor.u32 %v752_v5, %v748_v4  ;;  %v3418_v22 = vsel %vm7904_vm12, %v3409_v46, %v3417_v58  ;;  %v236_v32 = vld [vmem:[%s7722_s26 + $0x58] sm:$0xf]  ;;  %v237_v33 = vld [vmem:[%s7722_s26 + $0x5c] sm:$0xf] }
  0x73   : > { %v782_v40 = vrot.slane %v780_v7, 5  ;;  %v749_v16 = vsel %vm7798_vm9, %v744_v9, %v748_v4  ;;  %v768_v17 = vrot.slane %v767_v48, 4  ;;  %v3427_v23 = vrot.slane %v3426_v15, 4  ;;  %v3294_v39 = vld [vmem:[#allocation2 + $0x30] sm:$0xc] }
  0x74   : > { %v777_v18 = vor.u32 %v776_v11, %v772_v10  ;;  %v754_v21 = vrot.slane %v753_v12, 4  ;;  %v3434_v24 = vrot.slane %v3432_v53, 7  ;;  %v6525_v29 = vcombine.low %v3408_v50, %v3418_v22  ;;  %v3295_v41 = vld [vmem:[#allocation2 + $0x34] sm:$0xf]  ;;  %v6604_v54 = vld [vmem:[%s9549_s1 + $0xe] sm:$0x3] }
  0x75   : > { %v773_v26 = vsel %vm7798_vm9, %v768_v17, %v772_v10  ;;  %v3439_v30 = vshrl.u32 %v3293_v13, 16  ;;  %v3442_v36 = vshll.u32 %v3293_v13, 16  ;;  %v331_v37 = vrot.slane %v234_v20, 6  ;;  %7447 = vmatprep.subr.msk.bf16.mxu0 %vm278_vm0, %v6604_v54  ;;  %v3296_v59 = vld [vmem:[#allocation2 + $0x38] sm:$0x7] }
  0x76   : > { %v778_v28 = vrot.slane %v777_v18, 4  ;;  %v759_v34 = vsel %vm7798_vm9, %v754_v21, %v758_v6  ;;  %v3435_v35 = vor.u32 %v3434_v24, %v3431_v19  ;;  %7051 = vmatprep.mubr.msk.bf16.mxu0 %vm976_vm8, %v6525_v29  ;;  %v333_v49 = vrot.slane %v235_v25, 6  ;;  %v3297_v38 = vld [vmem:[#allocation2 + $0x3c] sm:$0xc]  ;;  %v7993_v7 = vld [vmem:[#allocation2 + $0x40] sm:$0xf] }
  0x77   : > { %v6335_v43 = vcombine.low %v749_v16, %v759_v34  ;;  %v3441_v45 = vrot.slane %v3439_v30, 6  ;;  %v3444_v53 = vrot.slane %v3442_v36, 7  ;;  %440 = vst.msk [vmem:[#allocation2 + $0x78] sm:$0xc] %vm197_vm2, %v331_v37  ;;  %v332_v55 = vrot.slane %v331_v37, 4 }
  0x78   : > { %v783_v44 = vsel %vm7798_vm9, %v778_v28, %v782_v40  ;;  %v3436_v31 = vsel %vm7904_vm12, %v3427_v23, %v3435_v35  ;;  %v3437_v52 = vrot.slane %v3435_v35, 4  ;;  %v335_v56 = vrot.slane %v333_v49, 4 }
  0x79   : > { %v6336_v51 = vcombine.low %v773_v26, %v783_v44  ;;  %6893 = vmatprep.mubr.msk.bf16.mxu1 %vm976_vm8, %v6335_v43  ;;  %v336_v57 = vrot.slane %v236_v32, 6  ;;  %v338_v50 = vrot.slane %v237_v33, 6  ;;  %v3445_v58 = vor.u32 %v3444_v53, %v3441_v45 }
  0x7a   : > { %v3448_v60 = vshrl.u32 %v3294_v39, 16  ;;  %v3451_v61 = vshll.u32 %v3294_v39, 16  ;;  %v3457_v47 = vshrl.u32 %v3295_v41, 16  ;;  %v334_v62 = vsel %vm7729_vm4, %v332_v55, %v333_v49  ;;  %442 = vst.msk [vmem:[#allocation2 + $0x80] sm:$0x3] %vm180_vm1, %v335_v56 }
  0x7b   : > { %6894 = vmatmul.mubr.msk.bf16.gmra.mrb[16].mxu1 %vm976_vm8, %v6336_v51  ;;  %v337_v63 = vrot.slane %v336_v57, 4  ;;  %v340_v0 = vrot.slane %v338_v50, 4  ;;  %443 = vst.msk [vmem:[#allocation2 + $0x84] sm:$0xc] %vm197_vm2, %v336_v57  ;;  %v3460_v1 = vshll.u32 %v3295_v41, 16  ;;  %v3446_v3 = vsel %vm7904_vm12, %v3437_v52, %v3445_v58 }
  0x7c   : > { %441 = vst.msk [vmem:[#allocation2 + $0x7c] sm:$0xf] %vm410_vm5, %v334_v62  ;;  %v3450_v4 = vrot.slane %v3448_v60, 6  ;;  %v3453_v5 = vrot.slane %v3451_v61, 7  ;;  %v3459_v6 = vrot.slane %v3457_v47, 6  ;;  %v6526_v9 = vcombine.low %v3436_v31, %v3446_v3 }
  0x7d   : > { %v339_v48 = vsel %vm7729_vm4, %v337_v63, %v338_v50  ;;  %445 = vst.msk [vmem:[#allocation2 + $0x8c] sm:$0x3] %vm180_vm1, %v340_v0  ;;  %v3462_v10 = vrot.slane %v3460_v1, 7  ;;  %v3467_v11 = vshrl.u32 %v3296_v59, 16  ;;  %v3470_v40 = vshll.u32 %v3296_v59, 16 }
  0x7e   : > { %444 = vst.msk [vmem:[#allocation2 + $0x88] sm:$0xf] %vm410_vm5, %v339_v48  ;;  %v3454_v12 = vor.u32 %v3453_v5, %v3450_v4  ;;  %v3476_v46 = vshrl.u32 %v3297_v38, 16  ;;  %v3479_v13 = vshll.u32 %v3297_v38, 16  ;;  %7052 = vmatmul.mubr.msk.bf16.gmra.mrb[4].mxu0 %vm976_vm8, %v6526_v9  ;;  %v521_v15 = vld [vmem:[#allocation2 + $0x78] sm:$0xf] }
  0x7f   : > { %v3463_v16 = vor.u32 %v3462_v10, %v3459_v6  ;;  %v3469_v17 = vrot.slane %v3467_v11, 6  ;;  %v3485_v18 = vshrl.u32 %v7993_v7, 16  ;;  %v3488_v19 = vshll.u32 %v7993_v7, 16  ;;  %v3299_v60 = vld [vmem:[#allocation2 + $0x44] sm:$0x7] }
  0x80   : > { %v785_v20 = vshrl.u32 %v521_v15, 16  ;;  %v788_v21 = vshll.u32 %v521_v15, 16  ;;  %v3455_v22 = vrot.slane %v3454_v12, 4  ;;  %v3472_v23 = vrot.slane %v3470_v40, 7  ;;  %v238_v0 = vld [vmem:[%s7722_s26 + $0x60] sm:$0xf] }
  0x81   : > { %v3465_v24 = vrot.slane %v3463_v16, 4  ;;  %v3478_v25 = vrot.slane %v3476_v46, 6  ;;  %v3481_v26 = vrot.slane %v3479_v13, 7  ;;  %v3487_v28 = vrot.slane %v3485_v18, 6  ;;  %v523_v29 = vld [vmem:[#allocation2 + $0x80] sm:$0x1] }
  0x82   : > { %v787_v30 = vrot.slane %v785_v20, 4  ;;  %v790_v32 = vrot.slane %v788_v21, 5  ;;  %v524_v33 = vld [vmem:[#allocation2 + $0x84] sm:$0xf]  ;;  %v3464_v34 = vsel %vm7904_vm12, %v3455_v22, %v3463_v16  ;;  %v3473_v35 = vor.u32 %v3472_v23, %v3469_v17  ;;  %v240_v10 = vld [vmem:[%s7722_s26 + $0x68] sm:$0xf] }
  0x83   : > { %v522_v36 = vld [vmem:[#allocation2 + $0x7c] sm:$0xf]  ;;  %v804_v37 = vshll.u32 %v523_v29, 16  ;;  %v809_v39 = vshrl.u32 %v524_v33, 16  ;;  %v812_v41 = vshll.u32 %v524_v33, 16  ;;  %v3482_v43 = vor.u32 %v3481_v26, %v3478_v25 }
  0x84   : > { %v791_v44 = vor.u32 %v790_v32, %v787_v30  ;;  %v794_v45 = vshll.u32 %v522_v36, 16  ;;  %v798_v49 = vshrl.u32 %v522_v36, 16  ;;  %v526_v51 = vld [vmem:[#allocation2 + $0x8c] sm:$0x1]  ;;  %v3474_v31 = vsel %vm7904_vm12, %v3465_v24, %v3473_v35  ;;  %v239_v1 = vld [vmem:[%s7722_s26 + $0x64] sm:$0xf] }
  0x85   : > { %v806_v52 = vrot.slane %v804_v37, 5  ;;  %v525_v53 = vld [vmem:[#allocation2 + $0x88] sm:$0xf]  ;;  %v811_v54 = vrot.slane %v809_v39, 4  ;;  %v814_v55 = vrot.slane %v812_v41, 5  ;;  %v828_v56 = vshll.u32 %v526_v51, 16 }
  0x86   : > { %v792_v57 = vrot.slane %v791_v44, 4  ;;  %v796_v50 = vrot.slane %v794_v45, 5  ;;  %v800_v58 = vrot.slane %v798_v49, 4  ;;  %v818_v59 = vshll.u32 %v525_v53, 16  ;;  %v241_v18 = vld [vmem:[%s7722_s26 + $0x6c] sm:$0xf] }
  0x87   : > { %v815_v61 = vor.u32 %v814_v55, %v811_v54  ;;  %v822_v47 = vshrl.u32 %v525_v53, 16  ;;  %v830_v62 = vrot.slane %v828_v56, 5  ;;  %v6527_v63 = vcombine.low %v3464_v34, %v3474_v31  ;;  %v3300_v20 = vld [vmem:[#allocation2 + $0x48] sm:$0xc]  ;;  %v3301_v24 = vld [vmem:[#allocation2 + $0x4c] sm:$0xf] }
  0x88   : > { %v797_v38 = vsel %vm7798_vm9, %v792_v57, %v796_v50  ;;  %v801_v3 = vor.u32 %v800_v58, %v796_v50  ;;  %v820_v4 = vrot.slane %v818_v59, 5  ;;  %v3483_v5 = vrot.slane %v3482_v43, 4  ;;  %v3302_v36 = vld [vmem:[#allocation2 + $0x50] sm:$0x7]  ;;  %v3303_v51 = vld [vmem:[#allocation2 + $0x54] sm:$0xc] }
  0x89   : > { %v816_v6 = vrot.slane %v815_v61, 4  ;;  %v824_v7 = vrot.slane %v822_v47, 4  ;;  %7055 = vmatprep.mubr.msk.bf16.mxu0 %vm976_vm8, %v6527_v63  ;;  %v3490_v9 = vrot.slane %v3488_v19, 7  ;;  %v3495_v48 = vshrl.u32 %v3299_v60, 16  ;;  %v8030_v31 = vld [vmem:[#allocation2 + $0x58] sm:$0xf] }
  0x8a   : > { %v802_v11 = vrot.slane %v801_v3, 4  ;;  %v3498_v12 = vshll.u32 %v3299_v60, 16  ;;  %v341_v40 = vrot.slane %v238_v0, 6  ;;  %v343_v46 = vrot.slane %v239_v1, 6 }
  0x8b   : > { %v821_v13 = vsel %vm7798_vm9, %v816_v6, %v820_v4  ;;  %v825_v15 = vor.u32 %v824_v7, %v820_v4  ;;  %v3491_v16 = vor.u32 %v3490_v9, %v3487_v28  ;;  %v3497_v17 = vrot.slane %v3495_v48, 6 }
  0x8c   : > { %v807_v21 = vsel %vm7798_vm9, %v802_v11, %v806_v52  ;;  %v3500_v22 = vrot.slane %v3498_v12, 7  ;;  %v342_v23 = vrot.slane %v341_v40, 4  ;;  %v345_v19 = vrot.slane %v343_v46, 4  ;;  %446 = vst.msk [vmem:[#allocation2 + $0x90] sm:$0xc] %vm197_vm2, %v341_v40 }
  0x8d   : > { %v6337_v25 = vcombine.low %v797_v38, %v807_v21  ;;  %v826_v26 = vrot.slane %v825_v15, 4  ;;  %v3492_v29 = vsel %vm7904_vm12, %v3483_v5, %v3491_v16  ;;  %v3493_v30 = vrot.slane %v3491_v16, 4 }
  0x8e   : > { %v3501_v32 = vor.u32 %v3500_v22, %v3497_v17  ;;  %v344_v28 = vsel %vm7729_vm4, %v342_v23, %v343_v46  ;;  %448 = vst.msk [vmem:[#allocation2 + $0x98] sm:$0x3] %vm180_vm1, %v345_v19  ;;  %v346_v33 = vrot.slane %v240_v10, 6  ;;  %v348_v34 = vrot.slane %v241_v18, 6 }
  0x8f   : > { %6897 = vmatprep.mubr.msk.bf16.mxu1 %vm976_vm8, %v6337_v25  ;;  %v831_v35 = vsel %vm7798_vm9, %v826_v26, %v830_v62  ;;  %447 = vst.msk [vmem:[#allocation2 + $0x94] sm:$0xf] %vm410_vm5, %v344_v28  ;;  %v3504_v37 = vshrl.u32 %v3300_v20, 16  ;;  %v3507_v39 = vshll.u32 %v3300_v20, 16  ;;  %v3513_v41 = vshrl.u32 %v3301_v24, 16 }
  0x90   : > { %v6338_v43 = vcombine.low %v821_v13, %v831_v35  ;;  %v3502_v44 = vsel %vm7904_vm12, %v3493_v30, %v3501_v32  ;;  %v347_v45 = vrot.slane %v346_v33, 4  ;;  %v350_v49 = vrot.slane %v348_v34, 4  ;;  %449 = vst.msk [vmem:[#allocation2 + $0x9c] sm:$0xc] %vm197_vm2, %v346_v33 }
  0x91   : > { %v6528_v52 = vcombine.low %v3492_v29, %v3502_v44  ;;  %v3506_v53 = vrot.slane %v3504_v37, 6  ;;  %v3509_v54 = vrot.slane %v3507_v39, 7  ;;  %v3515_v55 = vrot.slane %v3513_v41, 6  ;;  %v3305_v37 = vld [vmem:[#allocation2 + $0x5c] sm:$0x7] }
  0x92   : > { %6898 = vmatmul.mubr.msk.bf16.gmra.mrb[20].mxu1 %vm976_vm8, %v6338_v43  ;;  %v349_v56 = vsel %vm7729_vm4, %v347_v45, %v348_v34  ;;  %451 = vst.msk [vmem:[#allocation2 + $0xa4] sm:$0x3] %vm180_vm1, %v350_v49  ;;  %v3516_v57 = vshll.u32 %v3301_v24, 16  ;;  %v3523_v50 = vshrl.u32 %v3302_v36, 16  ;;  %v3526_v58 = vshll.u32 %v3302_v36, 16 }
  0x93   : > { %7056 = vmatmul.mubr.msk.bf16.gmra.mrb[8].mxu0 %vm976_vm8, %v6528_v52  ;;  %v527_v59 = vld [vmem:[#allocation2 + $0x90] sm:$0xf]  ;;  %450 = vst.msk [vmem:[#allocation2 + $0xa0] sm:$0xf] %vm410_vm5, %v349_v56  ;;  %v3510_v60 = vor.u32 %v3509_v54, %v3506_v53  ;;  %v3532_v61 = vshrl.u32 %v3303_v51, 16  ;;  %v3535_v47 = vshll.u32 %v3303_v51, 16 }
  0x94   : > { %v3541_v62 = vshrl.u32 %v8030_v31, 16  ;;  %v833_v63 = vshrl.u32 %v527_v59, 16  ;;  %v836_v0 = vshll.u32 %v527_v59, 16  ;;  %v3518_v1 = vrot.slane %v3516_v57, 7  ;;  %v242_v39 = vld [vmem:[%s7722_s26 + $0x70] sm:$0xf] }
  0x95   : > { %v3525_v38 = vrot.slane %v3523_v50, 6  ;;  %v529_v3 = vld [vmem:[#allocation2 + $0x98] sm:$0x1]  ;;  %v3511_v4 = vrot.slane %v3510_v60, 4  ;;  %v3528_v5 = vrot.slane %v3526_v58, 7  ;;  %v3534_v6 = vrot.slane %v3532_v61, 6 }
  0x96   : > { %v3537_v7 = vrot.slane %v3535_v47, 7  ;;  %v528_v9 = vld [vmem:[#allocation2 + $0x94] sm:$0xf]  ;;  %v835_v48 = vrot.slane %v833_v63, 4  ;;  %v838_v10 = vrot.slane %v836_v0, 5  ;;  %v852_v11 = vshll.u32 %v529_v3, 16 }
  0x97   : > { %v3519_v12 = vor.u32 %v3518_v1, %v3515_v55  ;;  %v842_v40 = vshll.u32 %v528_v9, 16  ;;  %v846_v46 = vshrl.u32 %v528_v9, 16  ;;  %v530_v13 = vld [vmem:[#allocation2 + $0x9c] sm:$0xf]  ;;  %v3529_v15 = vor.u32 %v3528_v5, %v3525_v38  ;;  %v243_v49 = vld [vmem:[%s7722_s26 + $0x74] sm:$0xf] }
  0x98   : > { %v3538_v16 = vor.u32 %v3537_v7, %v3534_v6  ;;  %v839_v17 = vor.u32 %v838_v10, %v835_v48  ;;  %v854_v18 = vrot.slane %v852_v11, 5  ;;  %v857_v20 = vshrl.u32 %v530_v13, 16  ;;  %v244_v55 = vld [vmem:[%s7722_s26 + $0x78] sm:$0xf]  ;;  %v245_v56 = vld [vmem:[%s7722_s26 + $0x7c] sm:$0xf] }
  0x99   : > { %v860_v21 = vshll.u32 %v530_v13, 16  ;;  %v844_v22 = vrot.slane %v842_v40, 5  ;;  %v848_v23 = vrot.slane %v846_v46, 4  ;;  %v532_v19 = vld [vmem:[#allocation2 + $0xa4] sm:$0x1]  ;;  %v3520_v24 = vsel %vm7904_vm12, %v3511_v4, %v3519_v12 }
  0x9a   : > { %v3521_v25 = vrot.slane %v3519_v12, 4  ;;  %v840_v26 = vrot.slane %v839_v17, 4  ;;  %v531_v29 = vld [vmem:[#allocation2 + $0xa0] sm:$0xf]  ;;  %v859_v30 = vrot.slane %v857_v20, 4  ;;  %v876_v28 = vshll.u32 %v532_v19, 16 }
  0x9b   : > { %v862_v32 = vrot.slane %v860_v21, 5  ;;  %v849_v33 = vor.u32 %v848_v23, %v844_v22  ;;  %v866_v34 = vshll.u32 %v531_v29, 16  ;;  %v870_v35 = vshrl.u32 %v531_v29, 16  ;;  %v3306_v0 = vld [vmem:[#allocation2 + $0x60] sm:$0xc] }
  0x9c   : > { %v3530_v36 = vsel %vm7904_vm12, %v3521_v25, %v3529_v15  ;;  %v845_v41 = vsel %vm7798_vm9, %v840_v26, %v844_v22  ;;  %v878_v44 = vrot.slane %v876_v28, 5  ;;  %v3539_v54 = vrot.slane %v3538_v16, 4  ;;  %v3307_v10 = vld [vmem:[#allocation2 + $0x64] sm:$0xf]  ;;  %v3308_v15 = vld [vmem:[#allocation2 + $0x68] sm:$0x7] }
  0x9d   : > { %v863_v43 = vor.u32 %v862_v32, %v859_v30  ;;  %v6529_v45 = vcombine.low %v3520_v24, %v3530_v36  ;;  %v850_v51 = vrot.slane %v849_v33, 4  ;;  %v868_v52 = vrot.slane %v866_v34, 5  ;;  %v3309_v24 = vld [vmem:[#allocation2 + $0x6c] sm:$0xc] }
  0x9e   : > { %v872_v53 = vrot.slane %v870_v35, 4  ;;  %v3543_v50 = vrot.slane %v3541_v62, 6  ;;  %v3544_v58 = vshll.u32 %v8030_v31, 16  ;;  %v3551_v59 = vshrl.u32 %v3305_v37, 16  ;;  %v8073_v35 = vld [vmem:[#allocation2 + $0x70] sm:$0xf] }
  0x9f   : > { %v864_v57 = vrot.slane %v863_v43, 4  ;;  %7059 = vmatprep.mubr.msk.bf16.mxu0 %vm976_vm8, %v6529_v45  ;;  %v855_v60 = vsel %vm7798_vm9, %v850_v51, %v854_v18  ;;  %v3554_v47 = vshll.u32 %v3305_v37, 16  ;;  %v351_v63 = vrot.slane %v242_v39, 6 }
  0xa0   : > { %v873_v61 = vor.u32 %v872_v53, %v868_v52  ;;  %v6339_v1 = vcombine.low %v845_v41, %v855_v60  ;;  %v3546_v3 = vrot.slane %v3544_v58, 7  ;;  %v3553_v4 = vrot.slane %v3551_v59, 6 }
  0xa1   : > { %v869_v38 = vsel %vm7798_vm9, %v864_v57, %v868_v52  ;;  %v3556_v6 = vrot.slane %v3554_v47, 7  ;;  %v352_v7 = vrot.slane %v351_v63, 4  ;;  %v353_v62 = vrot.slane %v243_v49, 6  ;;  %452 = vst.msk [vmem:[#allocation2 + $0xa8] sm:$0xc] %vm197_vm2, %v351_v63 }
  0xa2   : > { %v874_v5 = vrot.slane %v873_v61, 4  ;;  %6901 = vmatprep.mubr.msk.bf16.mxu1 %vm976_vm8, %v6339_v1  ;;  %v3547_v31 = vor.u32 %v3546_v3, %v3543_v50  ;;  %v356_v9 = vrot.slane %v244_v55, 6  ;;  %v358_v48 = vrot.slane %v245_v56, 6 }
  0xa3   : > { %v3560_v11 = vshrl.u32 %v3306_v0, 16  ;;  %v3557_v40 = vor.u32 %v3556_v6, %v3553_v4  ;;  %v354_v46 = vsel %vm7729_vm4, %v352_v7, %v353_v62  ;;  %v355_v13 = vrot.slane %v353_v62, 4 }
  0xa4   : > { %v879_v12 = vsel %vm7798_vm9, %v874_v5, %v878_v44  ;;  %v3548_v17 = vsel %vm7904_vm12, %v3539_v54, %v3547_v31  ;;  %v3549_v18 = vrot.slane %v3547_v31, 4  ;;  %453 = vst.msk [vmem:[#allocation2 + $0xac] sm:$0xf] %vm410_vm5, %v354_v46  ;;  %v357_v20 = vrot.slane %v356_v9, 4 }
  0xa5   : > { %v6340_v16 = vcombine.low %v869_v38, %v879_v12  ;;  %455 = vst.msk [vmem:[#allocation2 + $0xb4] sm:$0xc] %vm197_vm2, %v356_v9  ;;  %v360_v21 = vrot.slane %v358_v48, 4  ;;  %v3562_v22 = vrot.slane %v3560_v11, 6  ;;  %v3563_v23 = vshll.u32 %v3306_v0, 16 }
  0xa6   : > { %454 = vst.msk [vmem:[#allocation2 + $0xb0] sm:$0x3] %vm180_vm1, %v355_v13  ;;  %v3569_v19 = vshrl.u32 %v3307_v10, 16  ;;  %v3558_v25 = vsel %vm7904_vm12, %v3549_v18, %v3557_v40  ;;  %v359_v26 = vsel %vm7729_vm4, %v357_v20, %v358_v48  ;;  %v3572_v29 = vshll.u32 %v3307_v10, 16  ;;  %v3311_v20 = vld [vmem:[#allocation2 + $0x74] sm:$0x7] }
  0xa7   : > { %6902 = vmatmul.mubr.msk.bf16.gmra.mrb[24].mxu1 %vm976_vm8, %v6340_v16  ;;  %v3579_v30 = vshrl.u32 %v3308_v15, 16  ;;  %v6530_v32 = vcombine.low %v3548_v17, %v3558_v25  ;;  %456 = vst.msk [vmem:[#allocation2 + $0xb8] sm:$0xf] %vm410_vm5, %v359_v26  ;;  %v3565_v28 = vrot.slane %v3563_v23, 7  ;;  %v3582_v34 = vshll.u32 %v3308_v15, 16 }
  0xa8   : > { %457 = vst.msk [vmem:[#allocation2 + $0xbc] sm:$0x3] %vm180_vm1, %v360_v21  ;;  %v3571_v33 = vrot.slane %v3569_v19, 6  ;;  %v533_v36 = vld [vmem:[#allocation2 + $0xa8] sm:$0xf]  ;;  %v3574_v37 = vrot.slane %v3572_v29, 7 }
  0xa9   : > { %v3581_v39 = vrot.slane %v3579_v30, 6  ;;  %v3588_v41 = vshrl.u32 %v3309_v24, 16  ;;  %v3591_v43 = vshll.u32 %v3309_v24, 16  ;;  %7060 = vmatmul.mubr.msk.bf16.gmra.mrb[12].mxu0 %vm976_vm8, %v6530_v32  ;;  %v881_v44 = vshrl.u32 %v533_v36, 16  ;;  %v3312_v21 = vld [vmem:[#allocation2 + $0x78] sm:$0xc] }
  0xaa   : > { %v884_v45 = vshll.u32 %v533_v36, 16  ;;  %v3566_v49 = vor.u32 %v3565_v28, %v3562_v22  ;;  %v3584_v51 = vrot.slane %v3582_v34, 7  ;;  %v3575_v52 = vor.u32 %v3574_v37, %v3571_v33  ;;  %v3313_v36 = vld [vmem:[#allocation2 + $0x7c] sm:$0xf] }
  0xab   : > { %v3590_v53 = vrot.slane %v3588_v41, 6  ;;  %v3593_v54 = vrot.slane %v3591_v43, 7  ;;  %v3597_v55 = vshrl.u32 %v8073_v35, 16  ;;  %v534_v56 = vld [vmem:[#allocation2 + $0xac] sm:$0xf]  ;;  %v883_v57 = vrot.slane %v881_v44, 4 }
  0xac   : > { %v886_v50 = vrot.slane %v884_v45, 5  ;;  %v536_v58 = vld [vmem:[#allocation2 + $0xb4] sm:$0xf]  ;;  %v3585_v59 = vor.u32 %v3584_v51, %v3581_v39  ;;  %v890_v61 = vshll.u32 %v534_v56, 16  ;;  %v894_v47 = vshrl.u32 %v534_v56, 16 }
  0xad   : > { %v535_v60 = vld [vmem:[#allocation2 + $0xb0] sm:$0x1]  ;;  %v905_v63 = vshrl.u32 %v536_v58, 16  ;;  %v908_v0 = vshll.u32 %v536_v58, 16  ;;  %v3567_v3 = vrot.slane %v3566_v49, 4  ;;  %v3577_v4 = vrot.slane %v3575_v52, 4 }
  0xae   : > { %v887_v1 = vor.u32 %v886_v50, %v883_v57  ;;  %v900_v38 = vshll.u32 %v535_v60, 16  ;;  %v892_v5 = vrot.slane %v890_v61, 5  ;;  %v896_v6 = vrot.slane %v894_v47, 4  ;;  %v537_v7 = vld [vmem:[#allocation2 + $0xb8] sm:$0xf]  ;;  %v7458_v50 = vld [vmem:[#allocation2] sm:$0xff]  }
  0xaf   : > { %v538_v62 = vld [vmem:[#allocation2 + $0xbc] sm:$0x1]  ;;  %v3594_v31 = vor.u32 %v3593_v54, %v3590_v53  ;;  %v907_v10 = vrot.slane %v905_v63, 4  ;;  %v910_v11 = vrot.slane %v908_v0, 5  ;;  %v914_v40 = vshll.u32 %v537_v7, 16 }
  0xb0   : > { %v888_v9 = vrot.slane %v887_v1, 4  ;;  %v902_v48 = vrot.slane %v900_v38, 5  ;;  %v897_v12 = vor.u32 %v896_v6, %v892_v5  ;;  %v918_v46 = vshrl.u32 %v537_v7, 16  ;;  %v3314_v44 = vld [vmem:[#allocation2 + $0x80] sm:$0x7] }
  0xb1   : > { %v924_v13 = vshll.u32 %v538_v62, 16  ;;  %v911_v16 = vor.u32 %v910_v11, %v907_v10  ;;  %v3576_v17 = vsel %vm7904_vm12, %v3567_v3, %v3575_v52  ;;  %v3586_v18 = vsel %vm7904_vm12, %v3577_v4, %v3585_v59  ;;  %v3316_v0 = vld [vmem:[#allocation2 + $0x88] sm:$0xf] }
  0xb2   : > { %v893_v15 = vsel %vm7798_vm9, %v888_v9, %v892_v5  ;;  %v898_v22 = vrot.slane %v897_v12, 4  ;;  %v916_v23 = vrot.slane %v914_v40, 5  ;;  %v920_v19 = vrot.slane %v918_v46, 4  ;;  %v3317_v9 = vld [vmem:[#allocation2 + $0x8c] sm:$0x7] }
  0xb3   : > { %v926_v24 = vrot.slane %v924_v13, 5  ;;  %v912_v25 = vrot.slane %v911_v16, 4  ;;  %v6531_v26 = vcombine.low %v3576_v17, %v3586_v18  ;;  %v3595_v29 = vrot.slane %v3594_v31, 4  ;;  %v3318_v13 = vld [vmem:[#allocation2 + $0x90] sm:$0xc] }
  0xb4   : > { %v3599_v30 = vrot.slane %v3597_v55, 6  ;;  %v903_v32 = vsel %vm7798_vm9, %v898_v22, %v902_v48  ;;  %v921_v28 = vor.u32 %v920_v19, %v916_v23  ;;  %v3600_v33 = vshll.u32 %v8073_v35, 16 }
  0xb5   : > { %v3607_v34 = vshrl.u32 %v3311_v20, 16  ;;  %v6341_v37 = vcombine.low %v893_v15, %v903_v32  ;;  %v917_v39 = vsel %vm7798_vm9, %v912_v25, %v916_v23  ;;  %7063 = vmatprep.mubr.msk.bf16.mxu0 %vm976_vm8, %v6531_v26  ;;  %v3610_v41 = vshll.u32 %v3311_v20, 16  ;;  %v3319_v20 = vld [vmem:[#allocation2 + $0x94] sm:$0xf] }
  0xb6   : > { %v8091_v43 = vsel %vm278_vm0, %v7930_v42, 0  ;;  %v922_v45 = vrot.slane %v921_v28, 4  ;;  %v3602_v49 = vrot.slane %v3600_v33, 7  ;;  %v3616_v52 = vshrl.u32 %v3312_v21, 16  ;;  %v3315_v42 = vld [vmem:[#allocation2 + $0x84] sm:$0xc] }
  0xb7   : > { %v3609_v51 = vrot.slane %v3607_v34, 6  ;;  %6905 = vmatprep.mubr.msk.bf16.mxu1 %vm976_vm8, %v6341_v37  ;;  %v3612_v35 = vrot.slane %v3610_v41, 7  ;;  %v3619_v53 = vshll.u32 %v3312_v21, 16  ;;  %v3625_v54 = vshrl.u32 %v3313_v36, 16  ;;  %v7459_v21 = vld [vmem:[#allocation2 + $0xc] sm:$0xff]  }
  0xb8   : > { %v3628_v55 = vshll.u32 %v3313_v36, 16  ;;  %v927_v56 = vsel %vm7798_vm9, %v922_v45, %v926_v24  ;;  %v3603_v57 = vor.u32 %v3602_v49, %v3599_v30  ;;  %v3618_v58 = vrot.slane %v3616_v52, 6  ;;  %v7460_v36 = vld [vmem:[#allocation2 + $0x18] sm:$0xff]  }
  0xb9   : > { %v3635_v59 = vshrl.u32 %v3314_v44, 16  ;;  %v6342_v60 = vcombine.low %v917_v39, %v927_v56  ;;  %v3613_v61 = vor.u32 %v3612_v35, %v3609_v51  ;;  %v3621_v47 = vrot.slane %v3619_v53, 7  ;;  %v3321_v39 = vld [vmem:[#allocation2 + $0x9c] sm:$0xc]  ;;  %v8110_v51 = vld [vmem:[%s9549_s1 + $0x6] sm:$0x3] }
  0xba   : > { %v3627_v63 = vrot.slane %v3625_v54, 6  ;;  %v3604_v1 = vsel %vm7904_vm12, %v3595_v29, %v3603_v57  ;;  %v3605_v38 = vrot.slane %v3603_v57, 4  ;;  %v3630_v3 = vrot.slane %v3628_v55, 7  ;;  %v3320_v29 = vld [vmem:[#allocation2 + $0x98] sm:$0x7] }
  0xbb   : > { %v3637_v4 = vrot.slane %v3635_v59, 6  ;;  %6906 = vmatmul.mubr.msk.bf16.gmra.mrb[28].mxu1 %vm976_vm8, %v6342_v60  ;;  %v3622_v27 = vor.u32 %v3621_v47, %v3618_v58  ;;  %v3638_v5 = vshll.u32 %v3314_v44, 16  ;;  %v3644_v6 = vshrl.u32 %v3315_v42, 16 }
  0xbc   : > { %v3647_v7 = vshll.u32 %v3315_v42, 16  ;;  %v3614_v62 = vsel %vm7904_vm12, %v3605_v38, %v3613_v61  ;;  %6911 = vmatprep.mubr.msk.bf16.mxu1 %vm976_vm8, %v7458_v50  ;;  %v3631_v31 = vor.u32 %v3630_v3, %v3627_v63  ;;  %v3653_v48 = vshrl.u32 %v3316_v0, 16  ;;  %v3322_v50 = vld [vmem:[#allocation2 + $0xa0] sm:$0xf]  ;;  %v3323_v61 = vld [vmem:[#allocation2 + $0xa4] sm:$0x7] }
  0xbd   : > { %v3656_v10 = vshll.u32 %v3316_v0, 16  ;;  %v6532_v11 = vcombine.low %v3604_v1, %v3614_v62  ;;  %v3623_v12 = vrot.slane %v3622_v27, 4  ;;  %v3640_v40 = vrot.slane %v3638_v5, 7  ;;  %v7461_v38 = vld [vmem:[#allocation2 + $0x24] sm:$0xff]  }
  0xbe   : > { %v3646_v46 = vrot.slane %v3644_v6, 6  ;;  %v3633_v15 = vrot.slane %v3631_v31, 4  ;;  %v3649_v16 = vrot.slane %v3647_v7, 7  ;;  %v3655_v17 = vrot.slane %v3653_v48, 6  ;;  %v3324_v6 = vld [vmem:[#allocation2 + $0xa8] sm:$0xc] }
  0xbf   : > { %v3658_v18 = vrot.slane %v3656_v10, 7  ;;  %7064 = vmatmul.mubr.msk.bf16.gmra.mrb[16].mxu0 %vm976_vm8, %v6532_v11  ;;  %v3632_v22 = vsel %vm7904_vm12, %v3623_v12, %v3631_v31  ;;  %v3641_v23 = vor.u32 %v3640_v40, %v3637_v4  ;;  %v3663_v19 = vshrl.u32 %v3317_v9, 16  ;;  %v7462_v48 = vld [vmem:[#allocation2 + $0x30] sm:$0xff]   ;;  %v3325_v10 = vld [vmem:[#allocation2 + $0xac] sm:$0xf] }
  0xc0   : > { %v3666_v24 = vshll.u32 %v3317_v9, 16  ;;  %v3650_v25 = vor.u32 %v3649_v16, %v3646_v46  ;;  %v3672_v30 = vshrl.u32 %v3318_v13, 16  ;;  %v3675_v32 = vshll.u32 %v3318_v13, 16 }
  0xc1   : > { %v3659_v26 = vor.u32 %v3658_v18, %v3655_v17  ;;  %v3642_v28 = vsel %vm7904_vm12, %v3633_v15, %v3641_v23  ;;  %v3665_v33 = vrot.slane %v3663_v19, 6  ;;  %v3681_v37 = vshrl.u32 %v3319_v20, 16  ;;  %v3326_v17 = vld [vmem:[#allocation2 + $0xb0] sm:$0x7]  ;;  %v3327_v19 = vld [vmem:[#allocation2 + $0xb4] sm:$0xc] }
  0xc2   : > { %v3668_v34 = vrot.slane %v3666_v24, 7  ;;  %v6533_v41 = vcombine.low %v3632_v22, %v3642_v28  ;;  %v3651_v44 = vrot.slane %v3650_v25, 4  ;;  %v3674_v49 = vrot.slane %v3672_v30, 6 }
  0xc3   : > { %v3661_v45 = vrot.slane %v3659_v26, 4  ;;  %6912 = vmatmul.mubr.msk.bf16.vlgmr.msra.gmra.mrb[0].mxu1 %vm976_vm8, %v7459_v21  ;;  %v3677_v35 = vrot.slane %v3675_v32, 7  ;;  %v3683_v53 = vrot.slane %v3681_v37, 6  ;;  %v3684_v54 = vshll.u32 %v3319_v20, 16 }
  0xc4   : > { %v3669_v52 = vor.u32 %v3668_v34, %v3665_v33  ;;  %6944 = vmatpush3.bf16.msra.mxu1 %v8091_v43  ;;  %7067 = vmatprep.mubr.msk.bf16.mxu0 %vm976_vm8, %v6533_v41  ;;  %v3660_v55 = vsel %vm7904_vm12, %v3651_v44, %v3659_v26  ;;  %v3691_v56 = vshrl.u32 %v3320_v29, 16  ;;  %v3694_v57 = vshll.u32 %v3320_v29, 16  ;;  %v3328_v34 = vld [vmem:[#allocation2 + $0xb8] sm:$0xf]  ;;  %v7463_v44 = vld [vmem:[#allocation2 + $0x3c] sm:$0xff]  }
  0xc5   : > { %v3700_v58 = vshrl.u32 %v3321_v39, 16  ;;  %6915 = vmatprep.mubr.msk.bf16.mxu1 %vm976_vm8, %v7460_v36  ;;  %v3678_v42 = vor.u32 %v3677_v35, %v3674_v49  ;;  %v3686_v60 = vrot.slane %v3684_v54, 7  ;;  %v3703_v47 = vshll.u32 %v3321_v39, 16  ;;  %7442 = vmatprep.subr.msk.bf16.mxu1 %vm278_vm0, %v8110_v51  ;;  %v3329_v35 = vld [vmem:[#allocation2 + $0xbc] sm:$0x7] }
  0xc6   : > { %v3670_v59 = vsel %vm7904_vm12, %v3661_v45, %v3669_v52  ;;  %v3693_v63 = vrot.slane %v3691_v56, 6  ;;  %v3696_v0 = vrot.slane %v3694_v57, 7  ;;  %v3709_v5 = vshrl.u32 %v3322_v50, 16 }
  0xc7   : > { %v6534_v43 = vcombine.low %v3660_v55, %v3670_v59  ;;  %v3702_v1 = vrot.slane %v3700_v58, 6  ;;  %v3679_v3 = vrot.slane %v3678_v42, 4  ;;  %v3687_v4 = vor.u32 %v3686_v60, %v3683_v53 }
  0xc8   : > { %v3705_v27 = vrot.slane %v3703_v47, 7  ;;  %v3697_v7 = vor.u32 %v3696_v0, %v3693_v63  ;;  %v3712_v62 = vshll.u32 %v3322_v50, 16  ;;  %v3719_v31 = vshrl.u32 %v3323_v61, 16  ;;  %v7464_v50 = vld [vmem:[#allocation2 + $0x48] sm:$0xff]   ;;  %v4076_v47 = vld [vmem:[#allocation2 + $0x4] sm:$0xf] }
  0xc9   : > { %7068 = vmatmul.mubr.msk.bf16.gmra.mrb[20].mxu0 %vm976_vm8, %v6534_v43  ;;  %v3722_v9 = vshll.u32 %v3323_v61, 16  ;;  %v3688_v11 = vsel %vm7904_vm12, %v3679_v3, %v3687_v4  ;;  %v3689_v12 = vrot.slane %v3687_v4, 4  ;;  %v3711_v46 = vrot.slane %v3709_v5, 6  ;;  %v4075_v61 = vld [vmem:[#allocation2] sm:$0x8] }
  0xca   : > { %v3706_v40 = vor.u32 %v3705_v27, %v3702_v1  ;;  %v3714_v13 = vrot.slane %v3712_v62, 7  ;;  %v3721_v15 = vrot.slane %v3719_v31, 6  ;;  %v3728_v18 = vshrl.u32 %v3324_v6, 16 }
  0xcb   : > { %v3724_v16 = vrot.slane %v3722_v9, 7  ;;  %6916 = vmatmul.mubr.msk.bf16.gmra.mrb[4].mxu1 %vm976_vm8, %v7461_v38  ;;  %v3698_v20 = vsel %vm7904_vm12, %v3689_v12, %v3697_v7  ;;  %v3731_v22 = vshll.u32 %v3324_v6, 16  ;;  %v3737_v23 = vshrl.u32 %v3325_v10, 16  ;;  %v4077_v38 = vld [vmem:[#allocation2 + $0x8] sm:$0x7]  ;;  %v7465_v12 = vld [vmem:[#allocation2 + $0x54] sm:$0xff]  }
  0xcc   : > { %v3707_v21 = vrot.slane %v3706_v40, 4  ;;  %v6535_v24 = vcombine.low %v3688_v11, %v3698_v20  ;;  %v3715_v25 = vor.u32 %v3714_v13, %v3711_v46  ;;  %6919 = vmatprep.mubr.msk.bf16.mxu1 %vm976_vm8, %v7462_v48  ;;  %v3730_v29 = vrot.slane %v3728_v18, 6  ;;  %v4078_v6 = vld [vmem:[#allocation2 + $0xc] sm:$0x8]  ;;  %v4079_v7 = vld [vmem:[#allocation2 + $0x10] sm:$0xf] }
  0xcd   : > { %v3725_v26 = vor.u32 %v3724_v16, %v3721_v15  ;;  %v3733_v30 = vrot.slane %v3731_v22, 7  ;;  %v3739_v32 = vrot.slane %v3737_v23, 6  ;;  %v3740_v28 = vshll.u32 %v3325_v10, 16  ;;  %v4080_v9 = vld [vmem:[#allocation2 + $0x14] sm:$0x7] }
  0xce   : > { %v3747_v33 = vshrl.u32 %v3326_v17, 16  ;;  %7071 = vmatprep.mubr.msk.bf16.mxu0 %vm976_vm8, %v6535_v24  ;;  %v3716_v36 = vsel %vm7904_vm12, %v3707_v21, %v3715_v25  ;;  %v3717_v37 = vrot.slane %v3715_v25, 4  ;;  %v3750_v39 = vshll.u32 %v3326_v17, 16  ;;  %v4081_v13 = vld [vmem:[#allocation2 + $0x18] sm:$0x8]  ;;  %v7466_v25 = vld [vmem:[#allocation2 + $0x60] sm:$0xff]  }
  0xcf   : > { %v3756_v41 = vshrl.u32 %v3327_v19, 16  ;;  %v3734_v45 = vor.u32 %v3733_v30, %v3730_v29  ;;  %v3742_v49 = vrot.slane %v3740_v28, 7  ;;  %v3759_v53 = vshll.u32 %v3327_v19, 16  ;;  %v4082_v20 = vld [vmem:[#allocation2 + $0x1c] sm:$0xf] }
  0xd0   : > { %v3749_v52 = vrot.slane %v3747_v33, 6  ;;  %v3726_v54 = vsel %vm7904_vm12, %v3717_v37, %v3725_v26  ;;  %v3752_v55 = vrot.slane %v3750_v39, 7  ;;  %v3765_v57 = vshrl.u32 %v3328_v34, 16  ;;  %v4083_v21 = vld [vmem:[#allocation2 + $0x20] sm:$0x7] }
  0xd1   : > { %v3758_v56 = vrot.slane %v3756_v41, 6  ;;  %v6536_v58 = vcombine.low %v3716_v36, %v3726_v54  ;;  %v3735_v59 = vrot.slane %v3734_v45, 4  ;;  %v3743_v42 = vor.u32 %v3742_v49, %v3739_v32  ;;  %v4084_v26 = vld [vmem:[#allocation2 + $0x24] sm:$0x8]  ;;  %v4085_v33 = vld [vmem:[#allocation2 + $0x28] sm:$0xf] }
  0xd2   : > { %v3761_v60 = vrot.slane %v3759_v53, 7  ;;  %v3753_v43 = vor.u32 %v3752_v55, %v3749_v52  ;;  %v3767_v63 = vrot.slane %v3765_v57, 6  ;;  %v3768_v0 = vshll.u32 %v3328_v34, 16  ;;  %v4086_v34 = vld [vmem:[#allocation2 + $0x2c] sm:$0x7] }
  0xd3   : > { %v3775_v1 = vshrl.u32 %v3329_v35, 16  ;;  %7072 = vmatmul.mubr.msk.bf16.gmra.mrb[24].mxu0 %vm976_vm8, %v6536_v58  ;;  %6920 = vmatmul.mubr.msk.bf16.gmra.mrb[8].mxu1 %vm976_vm8, %v7463_v44  ;;  %v3744_v3 = vsel %vm7904_vm12, %v3735_v59, %v3743_v42  ;;  %v3745_v4 = vrot.slane %v3743_v42, 4  ;;  %v3778_v5 = vshll.u32 %v3329_v35, 16  ;;  %v7618_v39 = vld [vmem:[%s9549_s1 + $0xe] sm:$0x3] }
  0xd4   : > { %v3762_v27 = vor.u32 %v3761_v60, %v3758_v56  ;;  %v3770_v62 = vrot.slane %v3768_v0, 7  ;;  %6923 = vmatprep.mubr.msk.bf16.mxu1 %vm976_vm8, %v7464_v50  ;;  %v6556_v46 = vrot.slane %v4075_v61, 11  ;;  %v4178_v17 = vrot.slane %v4076_v47, 7  ;;  %v4087_v45 = vld [vmem:[#allocation2 + $0x30] sm:$0x8] }
  0xd5   : > { %v3777_v31 = vrot.slane %v3775_v1, 6  ;;  %v3754_v48 = vsel %vm7904_vm12, %v3745_v4, %v3753_v43  ;;  %v3780_v11 = vrot.slane %v3778_v5, 7  ;;  %v4181_v18 = vrot.slane %v4077_v38, 7  ;;  %v4088_v54 = vld [vmem:[#allocation2 + $0x34] sm:$0xf]  ;;  %v7467_v0 = vld [vmem:[#allocation2 + $0x6c] sm:$0xff]  }
  0xd6   : > { %v3763_v10 = vrot.slane %v3762_v27, 4  ;;  %v6537_v15 = vcombine.low %v3744_v3, %v3754_v48  ;;  %v3771_v16 = vor.u32 %v3770_v62, %v3767_v63  ;;  %v6557_v23 = vrot.slane %v4078_v6, 11  ;;  %v4089_v55 = vld [vmem:[#allocation2 + $0x38] sm:$0x7]  ;;  %v4090_v59 = vld [vmem:[#allocation2 + $0x3c] sm:$0x8] }
  0xd7   : > { %v3781_v22 = vor.u32 %v3780_v11, %v3777_v31  ;;  %v4185_v19 = vrot.slane %v4079_v7, 7  ;;  %v4188_v24 = vrot.slane %v4080_v9, 7  ;;  %v4179_v32 = vsel %vm8141_vm15, %v6556_v46, %v4178_v17  ;;  %v4091_v42 = vld [vmem:[#allocation2 + $0x40] sm:$0xf]  ;;  %v4092_v43 = vld [vmem:[#allocation2 + $0x44] sm:$0x7] }
  0xd8   : > { %7075 = vmatprep.mubr.msk.bf16.mxu0 %vm976_vm8, %v6537_v15  ;;  %v3772_v29 = vsel %vm7904_vm12, %v3763_v10, %v3771_v16  ;;  %v3773_v30 = vrot.slane %v3771_v16, 4  ;;  %v4180_v28 = vrot.slane %v4178_v17, 4  ;;  %v8158_v41 = vsel %vm278_vm0, %v7618_v39, 0  ;;  %v4093_v63 = vld [vmem:[#allocation2 + $0x48] sm:$0x8]  ;;  %v7468_v16 = vld [vmem:[#allocation2 + $0x78] sm:$0xff]  }
  0xd9   : > { %v8152_v36 = vsel %vm8141_vm15, %v6557_v23, %v4185_v19  ;;  %v4187_v37 = vrot.slane %v4185_v19, 4  ;;  %v6558_v44 = vrot.slane %v4081_v13, 11  ;;  %v4192_v35 = vrot.slane %v4082_v20, 7  ;;  %v4094_v27 = vld [vmem:[#allocation2 + $0x4c] sm:$0xf] }
  0xda   : > { %v3782_v49 = vsel %vm7904_vm12, %v3773_v30, %v3781_v22  ;;  %v4182_v52 = vsel %vm8141_vm15, %v4180_v28, %v4181_v18  ;;  %v4195_v53 = vrot.slane %v4083_v21, 7  ;;  %v6559_v58 = vrot.slane %v4084_v26, 11  ;;  %v4095_v31 = vld [vmem:[#allocation2 + $0x50] sm:$0x7]  ;;  %v4096_v9 = vld [vmem:[#allocation2 + $0x54] sm:$0x8] }
  0xdb   : > { %v6538_v56 = vcombine.low %v3772_v29, %v3782_v49  ;;  %6924 = vmatmul.mubr.msk.bf16.gmra.mrb[12].mxu1 %vm976_vm8, %v7465_v12  ;;  %v6572_v57 = vcombine.low %v4179_v32, %v4182_v52  ;;  %v8167_v50 = vsel %vm8141_vm15, %v4187_v37, %v4188_v24  ;;  %v8174_v60 = vsel %vm8141_vm15, %v6558_v44, %v4192_v35  ;;  %v4097_v46 = vld [vmem:[#allocation2 + $0x58] sm:$0xf]  ;;  %v4098_v13 = vld [vmem:[#allocation2 + $0x5c] sm:$0x7]  ;;  %v4099_v21 = vld [vmem:[#allocation2 + $0x60] sm:$0x8] }
  0xdc   : > { %v6573_v8 = vcombine.low %v8152_v36, %v8167_v50  ;;  %6927 = vmatprep.mubr.msk.bf16.mxu1 %vm976_vm8, %v7466_v25  ;;  %v4194_v61 = vrot.slane %v4192_v35, 4  ;;  %v4199_v47 = vrot.slane %v4085_v33, 7  ;;  %v4202_v1 = vrot.slane %v4086_v34, 7  ;;  %v4100_v25 = vld [vmem:[#allocation2 + $0x64] sm:$0xf] }
  0xdd   : > { %7076 = vmatmul.mubr.msk.bf16.gmra.mrb[28].mxu0 %vm976_vm8, %v6538_v56  ;;  %v6560_v38 = vrot.slane %v4087_v45, 11  ;;  %v4206_v3 = vrot.slane %v4088_v54, 7  ;;  %v4209_v4 = vrot.slane %v4089_v55, 7  ;;  %v6561_v62 = vrot.slane %v4090_v59, 11  ;;  %v4101_v26 = vld [vmem:[#allocation2 + $0x68] sm:$0x7] }
  0xde   : > { %7081 = vmatprep.mubr.msk.bf16.mxu0 %vm976_vm8, %v6572_v57  ;;  %v4196_v5 = vsel %vm8141_vm15, %v4194_v61, %v4195_v53  ;;  %v8182_v6 = vsel %vm8141_vm15, %v6559_v58, %v4199_v47  ;;  %v4201_v7 = vrot.slane %v4199_v47, 4  ;;  %v4213_v12 = vrot.slane %v4091_v42, 7  ;;  %v4102_v33 = vld [vmem:[#allocation2 + $0x6c] sm:$0x8]  ;;  %v4103_v34 = vld [vmem:[#allocation2 + $0x70] sm:$0xf] }
  0xdf   : > { %v6574_v48 = vcombine.low %v8174_v60, %v4196_v5  ;;  %v8187_v10 = vsel %vm8141_vm15, %v6560_v38, %v4206_v3  ;;  %v4208_v11 = vrot.slane %v4206_v3, 4  ;;  %v4216_v17 = vrot.slane %v4092_v43, 7  ;;  %v4104_v45 = vld [vmem:[#allocation2 + $0x74] sm:$0x7]  ;;  %v1482_v54 = vld [vmem:[#allocation2] sm:$0xe] }
  0xe0   : > { %v8191_v15 = vsel %vm8141_vm15, %v4201_v7, %v4202_v1  ;;  %v6562_v18 = vrot.slane %v4093_v63, 11  ;;  %v4220_v20 = vrot.slane %v4094_v27, 7  ;;  %v8201_v19 = vsel %vm8141_vm15, %v6561_v62, %v4213_v12  ;;  %v1483_v55 = vld [vmem:[#allocation2 + $0x4] sm:$0xf]  ;;  %v1484_v56 = vld [vmem:[#allocation2 + $0x8] sm:$0x1] }
  0xe1   : > { %v6575_v22 = vcombine.low %v8182_v6, %v8191_v15  ;;  %v8197_v23 = vsel %vm8141_vm15, %v4208_v11, %v4209_v4  ;;  %v4215_v24 = vrot.slane %v4213_v12, 4  ;;  %v4223_v28 = vrot.slane %v4095_v31, 7  ;;  %v8224_v57 = vld [vmem:[%s9549_s1 + $0x10] sm:$0x3]  ;;  %v1485_v60 = vld [vmem:[#allocation2 + $0xc] sm:$0xe] }
  0xe2   : > { %v6576_v29 = vcombine.low %v8187_v10, %v8197_v23  ;;  %v8207_v30 = vsel %vm8141_vm15, %v6562_v18, %v4220_v20  ;;  %v4222_v32 = vrot.slane %v4220_v20, 4  ;;  %v6563_v37 = vrot.slane %v4096_v9, 11  ;;  %v1486_v61 = vld [vmem:[#allocation2 + $0x10] sm:$0xf]  ;;  %v7469_v47 = vld [vmem:[#allocation2 + $0x84] sm:$0xff]  }
  0xe3   : > { %6928 = vmatmul.mubr.msk.bf16.gmra.mrb[16].mxu1 %vm976_vm8, %v7467_v0  ;;  %v8212_v36 = vsel %vm8141_vm15, %v4215_v24, %v4216_v17  ;;  %v4227_v39 = vrot.slane %v4097_v46, 7  ;;  %v4230_v44 = vrot.slane %v4098_v13, 7  ;;  %v6564_v35 = vrot.slane %v4099_v21, 11  ;;  %v1487_v1 = vld [vmem:[#allocation2 + $0x14] sm:$0x1] }
  0xe4   : > { %6931 = vmatprep.mubr.msk.bf16.mxu1 %vm976_vm8, %v7468_v16  ;;  %v6577_v49 = vcombine.low %v8201_v19, %v8212_v36  ;;  %v8219_v52 = vsel %vm8141_vm15, %v4222_v32, %v4223_v28  ;;  %v4234_v53 = vrot.slane %v4100_v25, 7  ;;  %v4237_v42 = vrot.slane %v4101_v26, 7  ;;  %v7470_v38 = vld [vmem:[#allocation2 + $0x90] sm:$0xff]   ;;  %v4106_v27 = vld [vmem:[#allocation2 + $0x7c] sm:$0xf] }
  0xe5   : > { %7082 = vmatmul.mubr.msk.bf16.vlgmr.msra.gmra.mrb[0].mxu0 %vm976_vm8, %v6573_v8  ;;  %v6578_v50 = vcombine.low %v8207_v30, %v8219_v52  ;;  %v8231_v58 = vsel %vm8141_vm15, %v6563_v37, %v4227_v39  ;;  %v4229_v59 = vrot.slane %v4227_v39, 4  ;;  %v6565_v63 = vrot.slane %v4102_v33, 11  ;;  %v4108_v11 = vld [vmem:[#allocation2 + $0x84] sm:$0x8]  ;;  %v4109_v17 = vld [vmem:[#allocation2 + $0x88] sm:$0xf] }
  0xe6   : > { %7114 = vmatpush3.bf16.msra.mxu0 %v8158_v41  ;;  %7085 = vmatprep.mubr.msk.bf16.mxu0 %vm976_vm8, %v6574_v48  ;;  %v8237_v43 = vsel %vm8141_vm15, %v6564_v35, %v4234_v53  ;;  %v4236_v8 = vrot.slane %v4234_v53, 4  ;;  %v4241_v0 = vrot.slane %v4103_v34, 7  ;;  %v4244_v4 = vrot.slane %v4104_v45, 7  ;;  %v4105_v41 = vld [vmem:[#allocation2 + $0x78] sm:$0x8] }
  0xe7   : > { %v8241_v3 = vsel %vm8141_vm15, %v4229_v59, %v4230_v44  ;;  %vm1580_vm1 = vcmask 1042432   ;;  %vm1581_vm2 = vcmask 1046532   ;;  %7448 = vmatprep.subr.msk.bf16.mxu0 %vm278_vm0, %v8224_v57  ;;  %v4107_v48 = vld [vmem:[#allocation2 + $0x80] sm:$0x7]  ;;  %v6392_v46 = vrot.slane %v1482_v54, 9 }
  0xe8   : > { %v6579_v5 = vcombine.low %v8231_v58, %v8241_v3  ;;  %v8249_v7 = vsel %vm8141_vm15, %v4236_v8, %v4237_v42  ;;  %v8253_v62 = vsel %vm8141_vm15, %v6565_v63, %v4241_v0  ;;  %v4243_v31 = vrot.slane %v4241_v0, 4  ;;  %vm8255_vm3 = vmor %vm1580_vm1, %vm1581_vm2  ;;  %v4110_v25 = vld [vmem:[#allocation2 + $0x8c] sm:$0x7]  ;;  %v1488_v34 = vld [vmem:[#allocation2 + $0x18] sm:$0xe] }
  0xe9   : > { %v6580_v12 = vcombine.low %v8237_v43, %v8249_v7  ;;  %v1585_v13 = vrot.slane %v1483_v55, 5  ;;  %v1588_v16 = vrot.slane %v1484_v56, 5  ;;  %v6393_v20 = vrot.slane %v1485_v60, 9  ;;  %v1489_v37 = vld [vmem:[#allocation2 + $0x1c] sm:$0xf] }
  0xea   : > { %v8263_v18 = vsel %vm8141_vm15, %v4243_v31, %v4244_v4  ;;  %v1592_v21 = vrot.slane %v1486_v61, 5  ;;  %v1595_v24 = vrot.slane %v1487_v1, 5  ;;  %v8274_v33 = vsel %vm278_vm0, %v8110_v51, 0  ;;  %v1490_v39 = vld [vmem:[#allocation2 + $0x20] sm:$0x1] }
  0xeb   : > { %6932 = vmatmul.mubr.msk.bf16.gmra.mrb[20].mxu1 %vm976_vm8, %v7469_v47  ;;  %v6581_v26 = vcombine.low %v8253_v62, %v8263_v18  ;;  %v8270_v32 = vsel %vm8255_vm3, %v6392_v46, %v1585_v13  ;;  %v1587_v28 = vrot.slane %v1585_v13, 4  ;;  %v6566_v35 = vrot.slane %v4105_v41, 11  ;;  %v1491_v54 = vld [vmem:[#allocation2 + $0x24] sm:$0xe]  ;;  %v1492_v42 = vld [vmem:[#allocation2 + $0x28] sm:$0xf] }
  0xec   : > { %6935 = vmatprep.mubr.msk.bf16.mxu1 %vm976_vm8, %v7470_v38  ;;  %v8279_v44 = vsel %vm8255_vm3, %v6393_v20, %v1592_v21  ;;  %v1594_v45 = vrot.slane %v1592_v21, 4  ;;  %v4248_v53 = vrot.slane %v4106_v27, 7  ;;  %v4251_v55 = vrot.slane %v4107_v48, 7  ;;  %v7471_v60 = vld [vmem:[#allocation2 + $0x9c] sm:$0xff]   ;;  %v1493_v47 = vld [vmem:[#allocation2 + $0x2c] sm:$0x1] }
  0xed   : > { %7086 = vmatmul.mubr.msk.bf16.gmra.mrb[4].mxu0 %vm976_vm8, %v6575_v22  ;;  %v8287_v51 = vsel %vm8255_vm3, %v1587_v28, %v1588_v16  ;;  %v6567_v56 = vrot.slane %v4108_v11, 11  ;;  %v4255_v59 = vrot.slane %v4109_v17, 7  ;;  %v4111_v8 = vld [vmem:[#allocation2 + $0x90] sm:$0x8]  ;;  %v4258_v63 = vrot.slane %v4110_v25, 7  ;;  %v7472_v38 = vld [vmem:[#allocation2 + $0xa8] sm:$0xff]  }
  0xee   : > { %7089 = vmatprep.mubr.msk.bf16.mxu0 %vm976_vm8, %v6576_v29  ;;  %v6408_v61 = vcombine.low %v8270_v32, %v8287_v51  ;;  %v8297_v6 = vsel %vm8255_vm3, %v1594_v45, %v1595_v24  ;;  %v8301_v15 = vsel %vm8141_vm15, %v6566_v35, %v4248_v53  ;;  %v4250_v22 = vrot.slane %v4248_v53, 4  ;;  %v4112_v0 = vld [vmem:[#allocation2 + $0x94] sm:$0xf]  ;;  %v4113_v1 = vld [vmem:[#allocation2 + $0x98] sm:$0x7] }
  0xef   : > { %v6409_v10 = vcombine.low %v8279_v44, %v8297_v6  ;;  %v8307_v23 = vsel %vm8141_vm15, %v6567_v56, %v4255_v59  ;;  %v4257_v29 = vrot.slane %v4255_v59, 4  ;;  %v6394_v41 = vrot.slane %v1488_v34, 9  ;;  %v4114_v48 = vld [vmem:[#allocation2 + $0x9c] sm:$0x8]  ;;  %v4115_v17 = vld [vmem:[#allocation2 + $0xa0] sm:$0xf] }
  0xf0   : > { %v8311_v4 = vsel %vm8141_vm15, %v4250_v22, %v4251_v55  ;;  %v1599_v27 = vrot.slane %v1489_v37, 5  ;;  %v1602_v31 = vrot.slane %v1490_v39, 5  ;;  %v6395_v13 = vrot.slane %v1491_v54, 9  ;;  %v4116_v20 = vld [vmem:[#allocation2 + $0xa4] sm:$0x7] }
  0xf1   : > { %v6582_v11 = vcombine.low %v8301_v15, %v8311_v4  ;;  %v8317_v46 = vsel %vm8141_vm15, %v4257_v29, %v4258_v63  ;;  %v1606_v16 = vrot.slane %v1492_v42, 5  ;;  %v1609_v28 = vrot.slane %v1493_v47, 5  ;;  %v1494_v34 = vld [vmem:[#allocation2 + $0x30] sm:$0xe]  ;;  %v1495_v37 = vld [vmem:[#allocation2 + $0x34] sm:$0xf] }
  0xf2   : > { %v6583_v21 = vcombine.low %v8307_v23, %v8317_v46  ;;  %v8323_v24 = vsel %vm8255_vm3, %v6394_v41, %v1599_v27  ;;  %v1601_v25 = vrot.slane %v1599_v27, 4  ;;  %v6568_v35 = vrot.slane %v4111_v8, 11  ;;  %v1496_v54 = vld [vmem:[#allocation2 + $0x38] sm:$0x1]  ;;  %v1497_v22 = vld [vmem:[#allocation2 + $0x3c] sm:$0xe] }
  0xf3   : > { %6936 = vmatmul.mubr.msk.bf16.gmra.mrb[24].mxu1 %vm976_vm8, %v7471_v60  ;;  %v8328_v39 = vsel %vm8255_vm3, %v6395_v13, %v1606_v16  ;;  %v1608_v45 = vrot.slane %v1606_v16, 4  ;;  %v4262_v53 = vrot.slane %v4112_v0, 7  ;;  %v4265_v56 = vrot.slane %v4113_v1, 7  ;;  %v1498_v63 = vld [vmem:[#allocation2 + $0x40] sm:$0xf]  ;;  %v7473_v27 = vld [vmem:[#allocation2 + $0xb4] sm:$0xff]  }
  0xf4   : > { %6939 = vmatprep.mubr.msk.bf16.mxu1 %vm976_vm8, %v7472_v38  ;;  %v8333_v55 = vsel %vm8255_vm3, %v1601_v25, %v1602_v31  ;;  %v6569_v59 = vrot.slane %v4114_v48, 11  ;;  %v4269_v42 = vrot.slane %v4115_v17, 7  ;;  %v1499_v0 = vld [vmem:[#allocation2 + $0x44] sm:$0x1]  ;;  %v4272_v1 = vrot.slane %v4116_v20, 7 }
  0xf5   : > { %7090 = vmatmul.mubr.msk.bf16.gmra.mrb[8].mxu0 %vm976_vm8, %v6577_v49  ;;  %v6410_v60 = vcombine.low %v8323_v24, %v8333_v55  ;;  %v8343_v47 = vsel %vm8255_vm3, %v1608_v45, %v1609_v28  ;;  %v8347_v8 = vsel %vm8141_vm15, %v6568_v35, %v4262_v53  ;;  %v4264_v29 = vrot.slane %v4262_v53, 4  ;;  %v4117_v38 = vld [vmem:[#allocation2 + $0xa8] sm:$0x8]  ;;  %v4118_v41 = vld [vmem:[#allocation2 + $0xac] sm:$0xf] }
  0xf6   : > { %7093 = vmatprep.mubr.msk.bf16.mxu0 %vm976_vm8, %v6578_v50  ;;  %v6411_v19 = vcombine.low %v8328_v39, %v8343_v47  ;;  %v8357_v36 = vsel %vm8141_vm15, %v6569_v59, %v4269_v42  ;;  %v4271_v49 = vrot.slane %v4269_v42, 4  ;;  %v6396_v48 = vrot.slane %v1494_v34, 9  ;;  %v4119_v50 = vld [vmem:[#allocation2 + $0xb0] sm:$0x7]  ;;  %v4120_v25 = vld [vmem:[#allocation2 + $0xb4] sm:$0x8] }
  0xf7   : > { %v8361_v31 = vsel %vm8141_vm15, %v4264_v29, %v4265_v56  ;;  %v1613_v30 = vrot.slane %v1495_v37, 5  ;;  %v1616_v52 = vrot.slane %v1496_v54, 5  ;;  %v6397_v17 = vrot.slane %v1497_v22, 9  ;;  %v4121_v28 = vld [vmem:[#allocation2 + $0xb8] sm:$0xf] }
  0xf8   : > { %v6584_v13 = vcombine.low %v8347_v8, %v8361_v31  ;;  %v8367_v16 = vsel %vm8141_vm15, %v4271_v49, %v4272_v1  ;;  %v1620_v20 = vrot.slane %v1498_v63, 5  ;;  %v1623_v35 = vrot.slane %v1499_v0, 5  ;;  %v4122_v53 = vld [vmem:[#allocation2 + $0xbc] sm:$0x7]  ;;  %v1500_v54 = vld [vmem:[#allocation2 + $0x48] sm:$0xe] }
  0xf9   : > { %v6585_v45 = vcombine.low %v8357_v36, %v8367_v16  ;;  %v8373_v34 = vsel %vm8255_vm3, %v6396_v48, %v1613_v30  ;;  %v1615_v37 = vrot.slane %v1613_v30, 4  ;;  %v6570_v42 = vrot.slane %v4117_v38, 11  ;;  %v1501_v29 = vld [vmem:[#allocation2 + $0x4c] sm:$0xf]  ;;  %v1502_v0 = vld [vmem:[#allocation2 + $0x50] sm:$0x1] }
  0xfa   : > { %v8377_v56 = vsel %vm8255_vm3, %v6397_v17, %v1620_v20  ;;  %v1622_v59 = vrot.slane %v1620_v20, 4  ;;  %v4276_v22 = vrot.slane %v4118_v41, 7  ;;  %v4279_v49 = vrot.slane %v4119_v50, 7  ;;  %v1504_v50 = vld [vmem:[#allocation2 + $0x58] sm:$0xf] }
  0xfb   : > { %6940 = vmatmul.mubr.msk.bf16.gmra.mrb[28].mxu1 %vm976_vm8, %v7473_v27  ;;  %v8382_v63 = vsel %vm8255_vm3, %v1615_v37, %v1616_v52  ;;  %v6571_v1 = vrot.slane %v4120_v25, 11  ;;  %v4283_v48 = vrot.slane %v4121_v28, 7  ;;  %v1503_v52 = vld [vmem:[#allocation2 + $0x54] sm:$0xe]  ;;  %v4286_v17 = vrot.slane %v4122_v53, 7 }
  0xfc   : > { %6945 = vmatprep.mubr.msk.bf16.mxu1 %vm976_vm8, %v6408_v61  ;;  %v6412_v38 = vcombine.low %v8373_v34, %v8382_v63  ;;  %v8392_v41 = vsel %vm8255_vm3, %v1622_v59, %v1623_v35  ;;  %v8396_v27 = vsel %vm8141_vm15, %v6570_v42, %v4276_v22  ;;  %v4278_v30 = vrot.slane %v4276_v22, 4  ;;  %v1505_v20 = vld [vmem:[#allocation2 + $0x5c] sm:$0x1]  ;;  %v4580_v28 = vld [vmem:[#allocation2] sm:$0x8] }
  0xfd   : > { %7094 = vmatmul.mubr.msk.bf16.gmra.mrb[12].mxu0 %vm976_vm8, %v6579_v5  ;;  %v6413_v32 = vcombine.low %v8377_v56, %v8392_v41  ;;  %v8406_v51 = vsel %vm8141_vm15, %v6571_v1, %v4283_v48  ;;  %v4285_v61 = vrot.slane %v4283_v48, 4  ;;  %v6398_v3 = vrot.slane %v1500_v54, 9  ;;  %v4581_v43 = vld [vmem:[#allocation2 + $0x4] sm:$0xf]  ;;  %v4582_v7 = vld [vmem:[#allocation2 + $0x8] sm:$0xf] }
  0xfe   : > { %7097 = vmatprep.mubr.msk.bf16.mxu0 %vm976_vm8, %v6580_v12  ;;  %v8414_v58 = vsel %vm8141_vm15, %v4278_v30, %v4279_v49  ;;  %v1627_v5 = vrot.slane %v1501_v29, 5  ;;  %v1630_v25 = vrot.slane %v1502_v0, 5  ;;  %v6399_v53 = vrot.slane %v1503_v52, 9  ;;  %v4583_v29 = vld [vmem:[#allocation2 + $0xc] sm:$0x8] }
  0xff   : > { %v6586_v37 = vcombine.low %v8396_v27, %v8414_v58  ;;  %v8420_v35 = vsel %vm8141_vm15, %v4285_v61, %v4286_v17  ;;  %v1634_v59 = vrot.slane %v1504_v50, 5  ;;  %v1637_v22 = vrot.slane %v1505_v20, 5  ;;  %v4584_v49 = vld [vmem:[#allocation2 + $0x10] sm:$0xf]  ;;  %v4585_v50 = vld [vmem:[#allocation2 + $0x14] sm:$0xf] }
 0x100   : > { %v8426_v54 = vsel %vm8255_vm3, %v6398_v3, %v1627_v5  ;;  %v1629_v42 = vrot.slane %v1627_v5, 4  ;;  %vm4630_vm5 = vsmask.f32 256  ;;  %vm4631_vm6 = vsmask.f32 4368 }
 0x101   : > { %v8430_v40 = vsel %vm8255_vm3, %v6399_v53, %v1634_v59  ;;  %v1636_v1 = vrot.slane %v1634_v59, 4  ;;  %v4634_v0 = vshrl.u32 %v4580_v28, 16  ;;  %v4639_v30 = vshrl.u32 %v4581_v43, 16  ;;  %v1506_v5 = vld [vmem:[#allocation2 + $0x60] sm:$0xe]  ;;  %vm8459_vm7 = vmor %vm4630_vm5, %vm4631_vm6 }
 0x102   : > { %v8434_v48 = vsel %vm8255_vm3, %v1629_v42, %v1630_v25  ;;  %v4642_v52 = vshll.u32 %v4581_v43, 16  ;;  %v4648_v20 = vshrl.u32 %v4582_v7, 16  ;;  %v4651_v3 = vshll.u32 %v4582_v7, 16  ;;  %v1507_v25 = vld [vmem:[#allocation2 + $0x64] sm:$0xf] }
 0x103   : > { %6946 = vmatmul.mubr.msk.bf16.vlgmr.msra.gmra.mrb[0].mxu1 %vm976_vm8, %v6409_v10  ;;  %v6414_v61 = vcombine.low %v8426_v54, %v8434_v48  ;;  %v8444_v17 = vsel %vm8255_vm3, %v1636_v1, %v1637_v22  ;;  %v6605_v6 = vrot.slane %v4634_v0, 11  ;;  %v4641_v10 = vrot.slane %v4639_v30, 7  ;;  %v1508_v53 = vld [vmem:[#allocation2 + $0x68] sm:$0x1]  ;;  %v1509_v43 = vld [vmem:[#allocation2 + $0x6c] sm:$0xe] }
 0x104   : > { %6978 = vmatpush3.bf16.msra.mxu1 %v8274_v33  ;;  %6949 = vmatprep.mubr.msk.bf16.mxu1 %vm976_vm8, %v6410_v60  ;;  %v4656_v28 = vshrl.u32 %v4583_v29, 16  ;;  %v4650_v24 = vrot.slane %v4648_v20, 7  ;;  %v4661_v55 = vshrl.u32 %v4584_v49, 16  ;;  %v4664_v60 = vshll.u32 %v4584_v49, 16  ;;  %v7619_v7 = vld [vmem:[%s9549_s1 + $0x8] sm:$0x3] }
 0x105   : > { %7098 = vmatmul.mubr.msk.bf16.gmra.mrb[16].mxu0 %vm976_vm8, %v6581_v26  ;;  %v4670_v59 = vshrl.u32 %v4585_v50, 16  ;;  %7444 = vmatprep.subr.msk.bf16.mxu1 %vm278_vm0, %v7619_v7  ;;  %v4644_v62 = vor.u32 %v4642_v52, %v4641_v10  ;;  %v4646_v18 = vrot.slane %v4641_v10, 4  ;;  %v4673_v42 = vshll.u32 %v4585_v50, 16  ;;  %v1510_v0 = vld [vmem:[#allocation2 + $0x70] sm:$0xf] }
 0x106   : > { %7101 = vmatprep.mubr.msk.bf16.mxu0 %vm976_vm8, %v6582_v11  ;;  %v6606_v26 = vrot.slane %v4656_v28, 11  ;;  %v4653_v22 = vor.u32 %v4651_v3, %v4650_v24  ;;  %v4663_v29 = vrot.slane %v4661_v55, 7  ;;  %v6400_v1 = vrot.slane %v1506_v5, 9  ;;  %v1511_v7 = vld [vmem:[#allocation2 + $0x74] sm:$0x1] }
 0x107   : > { %v4672_v49 = vrot.slane %v4670_v59, 7  ;;  %v4645_v30 = vsel %vm8459_vm7, %v6605_v6, %v4644_v62  ;;  %v1641_v20 = vrot.slane %v1507_v25, 5  ;;  %v1644_v12 = vrot.slane %v1508_v53, 5  ;;  %v4586_v28 = vld [vmem:[#allocation2 + $0x18] sm:$0x8] }
 0x108   : > { %v6401_v44 = vrot.slane %v1509_v43, 9  ;;  %v4654_v15 = vsel %vm8459_vm7, %v4646_v18, %v4653_v22  ;;  %v4666_v4 = vor.u32 %v4664_v60, %v4663_v29  ;;  %v4668_v11 = vrot.slane %v4663_v29, 4  ;;  %v4587_v6 = vld [vmem:[#allocation2 + $0x1c] sm:$0xf]  ;;  %v4588_v60 = vld [vmem:[#allocation2 + $0x20] sm:$0xf] }
 0x109   : > { %v4675_v52 = vor.u32 %v4673_v42, %v4672_v49  ;;  %v8475_v10 = vcombine.low %v4645_v30, %v4654_v15  ;;  %v8479_v50 = vsel %vm8255_vm3, %v6400_v1, %v1641_v20  ;;  %v1643_v3 = vrot.slane %v1641_v20, 4  ;;  %v4589_v59 = vld [vmem:[#allocation2 + $0x24] sm:$0x8]  ;;  %v4591_v62 = vld [vmem:[#allocation2 + $0x2c] sm:$0xf] }
 0x10a   : > { %v1648_v5 = vrot.slane %v1510_v0, 5  ;;  %v4667_v25 = vsel %vm8459_vm7, %v6606_v26, %v4666_v4  ;;  %v1651_v24 = vrot.slane %v1511_v7, 5  ;;  %v8491_v55 = vsel %vm278_vm0, %v8224_v57, 0  ;;  %v4590_v57 = vld [vmem:[#allocation2 + $0x28] sm:$0xf] }
 0x10b   : > { %6950 = vmatmul.mubr.msk.bf16.gmra.mrb[4].mxu1 %vm976_vm8, %v6411_v19  ;;  %v4676_v53 = vsel %vm8459_vm7, %v4668_v11, %v4675_v52  ;;  %v8501_v47 = vsel %vm8255_vm3, %v1643_v3, %v1644_v12  ;;  %v4678_v63 = vshrl.u32 %v4586_v28, 16  ;;  %v4686_v18 = vshll.u32 %v4587_v6, 16  ;;  %v1512_v12 = vld [vmem:[#allocation2 + $0x78] sm:$0xe]  ;;  %v1514_v1 = vld [vmem:[#allocation2 + $0x80] sm:$0x1] }
 0x10c   : > { %6953 = vmatprep.mubr.msk.bf16.mxu1 %vm976_vm8, %v6412_v38  ;;  %v8497_v39 = vcombine.low %v4667_v25, %v4676_v53  ;;  %v8505_v19 = vsel %vm8255_vm3, %v6401_v44, %v1648_v5  ;;  %v1650_v43 = vrot.slane %v1648_v5, 4  ;;  %v6416_v34 = vcombine.low %v8479_v50, %v8501_v47  ;;  %v1516_v20 = vld [vmem:[#allocation2 + $0x88] sm:$0xf]  ;;  %v1517_v52 = vld [vmem:[#allocation2 + $0x8c] sm:$0x1] }
 0x10d   : > { %7102 = vmatmul.mubr.msk.bf16.gmra.mrb[20].mxu0 %vm976_vm8, %v6583_v21  ;;  %v4683_v38 = vshrl.u32 %v4587_v6, 16  ;;  %v4692_v26 = vshrl.u32 %v4588_v60, 16  ;;  %v4695_v23 = vshll.u32 %v4588_v60, 16  ;;  %v4700_v46 = vshrl.u32 %v4589_v59, 16  ;;  %v1513_v21 = vld [vmem:[#allocation2 + $0x7c] sm:$0xf] }
 0x10e   : > { %7105 = vmatprep.mubr.msk.bf16.mxu0 %vm976_vm8, %v6584_v13  ;;  %v8519_v44 = vsel %vm8255_vm3, %v1650_v43, %v1651_v24  ;;  %v6607_v22 = vrot.slane %v4678_v63, 11  ;;  %v4705_v49 = vshrl.u32 %v4590_v57, 16  ;;  %v4708_v8 = vshll.u32 %v4590_v57, 16  ;;  %v1515_v13 = vld [vmem:[#allocation2 + $0x84] sm:$0xe] }
 0x10f   : > { %v6417_v42 = vcombine.low %v8505_v19, %v8519_v44  ;;  %v4685_v29 = vrot.slane %v4683_v38, 7  ;;  %v4694_v0 = vrot.slane %v4692_v26, 7  ;;  %v6608_v30 = vrot.slane %v4700_v46, 11  ;;  %v4592_v59 = vld [vmem:[#allocation2 + $0x30] sm:$0x8] }
 0x110   : > { %v4714_v31 = vshrl.u32 %v4591_v62, 16  ;;  %v4707_v4 = vrot.slane %v4705_v49, 7  ;;  %v4717_v11 = vshll.u32 %v4591_v62, 16  ;;  %v6402_v28 = vrot.slane %v1512_v12, 9  ;;  %v4594_v62 = vld [vmem:[#allocation2 + $0x38] sm:$0xf] }
 0x111   : > { %v4688_v7 = vor.u32 %v4686_v18, %v4685_v29  ;;  %v4690_v15 = vrot.slane %v4685_v29, 4  ;;  %v4697_v3 = vor.u32 %v4695_v23, %v4694_v0  ;;  %v1655_v6 = vrot.slane %v1513_v21, 5  ;;  %v4595_v38 = vld [vmem:[#allocation2 + $0x3c] sm:$0x8]  ;;  %v4596_v18 = vld [vmem:[#allocation2 + $0x40] sm:$0xf] }
 0x112   : > { %v4716_v5 = vrot.slane %v4714_v31, 7  ;;  %v4710_v53 = vor.u32 %v4708_v8, %v4707_v4  ;;  %v4712_v24 = vrot.slane %v4707_v4, 4  ;;  %v1658_v60 = vrot.slane %v1514_v1, 5  ;;  %v4597_v26 = vld [vmem:[#allocation2 + $0x44] sm:$0xf] }
 0x113   : > { %6954 = vmatmul.mubr.msk.bf16.gmra.mrb[8].mxu1 %vm976_vm8, %v6413_v32  ;;  %v4689_v25 = vsel %vm8459_vm7, %v6607_v22, %v4688_v7  ;;  %v4698_v43 = vsel %vm8459_vm7, %v4690_v15, %v4697_v3  ;;  %v8537_v56 = vsel %vm8255_vm3, %v6402_v28, %v1655_v6  ;;  %v1657_v41 = vrot.slane %v1655_v6, 4  ;;  %v4593_v32 = vld [vmem:[#allocation2 + $0x34] sm:$0xf]  ;;  %v1526_v44 = vld [vmem:[#allocation2 + $0xb0] sm:$0x1] }
 0x114   : > { %6957 = vmatprep.mubr.msk.bf16.mxu1 %vm976_vm8, %v6414_v61  ;;  %v4719_v57 = vor.u32 %v4717_v11, %v4716_v5  ;;  %v8543_v63 = vcombine.low %v4689_v25, %v4698_v43  ;;  %v4711_v54 = vsel %vm8459_vm7, %v6608_v30, %v4710_v53  ;;  %v6403_v48 = vrot.slane %v1515_v13, 9  ;;  %v1519_v1 = vld [vmem:[#allocation2 + $0x94] sm:$0xf]  ;;  %v1520_v13 = vld [vmem:[#allocation2 + $0x98] sm:$0x1] }
 0x115   : > { %7106 = vmatmul.mubr.msk.bf16.gmra.mrb[24].mxu0 %vm976_vm8, %v6585_v45  ;;  %v1662_v61 = vrot.slane %v1516_v20, 5  ;;  %v8555_v36 = vsel %vm8255_vm3, %v1657_v41, %v1658_v60  ;;  %v1665_v16 = vrot.slane %v1517_v52, 5  ;;  %v4722_v45 = vshrl.u32 %v4592_v59, 16  ;;  %v1521_v11 = vld [vmem:[#allocation2 + $0x9c] sm:$0xe] }
 0x116   : > { %7109 = vmatprep.mubr.msk.bf16.mxu0 %vm976_vm8, %v6586_v37  ;;  %v4720_v12 = vsel %vm8459_vm7, %v4712_v24, %v4719_v57  ;;  %v6418_v46 = vcombine.low %v8537_v56, %v8555_v36  ;;  %v1518_v37 = vld [vmem:[#allocation2 + $0x90] sm:$0xe]  ;;  %v4727_v22 = vshrl.u32 %v4593_v32, 16  ;;  %v4730_v29 = vshll.u32 %v4593_v32, 16  ;;  %v1522_v25 = vld [vmem:[#allocation2 + $0xa0] sm:$0xf] }
 0x117   : > { %v8557_v23 = vcombine.low %v4711_v54, %v4720_v12  ;;  %v8563_v27 = vsel %vm8255_vm3, %v6403_v48, %v1662_v61  ;;  %v1664_v58 = vrot.slane %v1662_v61, 4  ;;  %v6609_v21 = vrot.slane %v4722_v45, 11  ;;  %v1523_v53 = vld [vmem:[#allocation2 + $0xa4] sm:$0x1]  ;;  %v4598_v57 = vld [vmem:[#allocation2 + $0x48] sm:$0x8] }
 0x118   : > { %v4736_v49 = vshrl.u32 %v4594_v62, 16  ;;  %v4739_v30 = vshll.u32 %v4594_v62, 16  ;;  %v4744_v8 = vshrl.u32 %v4595_v38, 16  ;;  %v4749_v31 = vshrl.u32 %v4596_v18, 16  ;;  %v4599_v41 = vld [vmem:[#allocation2 + $0x4c] sm:$0xf] }
 0x119   : > { %v8567_v0 = vsel %vm8255_vm3, %v1664_v58, %v1665_v16  ;;  %v4729_v7 = vrot.slane %v4727_v22, 7  ;;  %v4752_v4 = vshll.u32 %v4596_v18, 16  ;;  %v9564_v52 = vcombine.low %v8430_v40, %v8444_v17  ;;  %v4600_v48 = vld [vmem:[#allocation2 + $0x50] sm:$0xf]  ;;  %v1527_v56 = vld [vmem:[#allocation2 + $0xb4] sm:$0xe] }
 0x11a   : > { %v6419_v20 = vcombine.low %v8563_v27, %v8567_v0  ;;  %v4738_v15 = vrot.slane %v4736_v49, 7  ;;  %v6610_v3 = vrot.slane %v4744_v8, 11  ;;  %v4751_v5 = vrot.slane %v4749_v31, 7  ;;  %v4603_v31 = vld [vmem:[#allocation2 + $0x5c] sm:$0xf] }
 0x11b   : > { %6958 = vmatmul.mubr.msk.bf16.gmra.mrb[12].mxu1 %vm976_vm8, %v9564_v52  ;;  %v4758_v28 = vshrl.u32 %v4597_v26, 16  ;;  %v4761_v6 = vshll.u32 %v4597_v26, 16  ;;  %v4732_v24 = vor.u32 %v4730_v29, %v4729_v7  ;;  %v4734_v60 = vrot.slane %v4729_v7, 4  ;;  %v4601_v26 = vld [vmem:[#allocation2 + $0x54] sm:$0x8] }
 0x11c   : > { %6961 = vmatprep.mubr.msk.bf16.mxu1 %vm976_vm8, %v6416_v34  ;;  %v4741_v59 = vor.u32 %v4739_v30, %v4738_v15  ;;  %v6404_v43 = vrot.slane %v1518_v37, 9  ;;  %v9565_v40 = vcombine.low %v8406_v51, %v8420_v35  ;;  %v4754_v17 = vor.u32 %v4752_v4, %v4751_v5  ;;  %v4602_v29 = vld [vmem:[#allocation2 + $0x58] sm:$0xf]  ;;  %v1525_v52 = vld [vmem:[#allocation2 + $0xac] sm:$0xf] }
 0x11d   : > { %v4756_v32 = vrot.slane %v4751_v5, 4  ;;  %v4760_v62 = vrot.slane %v4758_v28, 7  ;;  %v1669_v54 = vrot.slane %v1519_v1, 5  ;;  %v4733_v50 = vsel %vm8459_vm7, %v6609_v21, %v4732_v24  ;;  %v1528_v36 = vld [vmem:[#allocation2 + $0xb8] sm:$0xf] }
 0x11e   : > { %7110 = vmatmul.mubr.msk.bf16.gmra.mrb[28].mxu0 %vm976_vm8, %v9565_v40  ;;  %v4742_v47 = vsel %vm8459_vm7, %v4734_v60, %v4741_v59  ;;  %v1672_v34 = vrot.slane %v1520_v13, 5  ;;  %v6405_v61 = vrot.slane %v1521_v11, 9  ;;  %v4755_v51 = vsel %vm8459_vm7, %v6610_v3, %v4754_v17  ;;  %v1524_v13 = vld [vmem:[#allocation2 + $0xa8] sm:$0xe]  ;;  %v1529_v40 = vld [vmem:[#allocation2 + $0xbc] sm:$0x1] }
 0x11f   : > { %7115 = vmatprep.mubr.msk.bf16.mxu0 %vm976_vm8, %v8475_v10  ;;  %v8589_v38 = vcombine.low %v4733_v50, %v4742_v47  ;;  %v4763_v35 = vor.u32 %v4761_v6, %v4760_v62  ;;  %v8595_v18 = vsel %vm8255_vm3, %v6404_v43, %v1669_v54  ;;  %v1671_v12 = vrot.slane %v1669_v54, 4  ;;  %v4604_v54 = vld [vmem:[#allocation2 + $0x60] sm:$0x8] }
 0x120   : > { %v1676_v10 = vrot.slane %v1522_v25, 5  ;;  %v1679_v16 = vrot.slane %v1523_v53, 5  ;;  %v4766_v45 = vshrl.u32 %v4598_v57, 16  ;;  %v4771_v37 = vshrl.u32 %v4599_v41, 16 }
 0x121   : > { %v4764_v58 = vsel %vm8459_vm7, %v4756_v32, %v4763_v35  ;;  %v4774_v21 = vshll.u32 %v4599_v41, 16  ;;  %v4780_v22 = vshrl.u32 %v4600_v48, 16  ;;  %v1673_v1 = vsel %vm8255_vm3, %v1671_v12, %v1672_v34 }
 0x122   : > { %v8599_v49 = vcombine.low %v4755_v51, %v4764_v58  ;;  %v8605_v30 = vsel %vm8255_vm3, %v6405_v61, %v1676_v10  ;;  %v1678_v8 = vrot.slane %v1676_v10, 4  ;;  %v6420_v7 = vcombine.low %v8595_v18, %v1673_v1  ;;  %v4606_v61 = vld [vmem:[#allocation2 + $0x68] sm:$0xf]  ;;  %v4607_v51 = vld [vmem:[#allocation2 + $0x6c] sm:$0x8] }
 0x123   : > { %6962 = vmatmul.mubr.msk.bf16.gmra.mrb[16].mxu1 %vm976_vm8, %v6417_v42  ;;  %v6611_v15 = vrot.slane %v4766_v45, 11  ;;  %v4773_v4 = vrot.slane %v4771_v37, 7  ;;  %v4782_v11 = vrot.slane %v4780_v22, 7  ;;  %v4783_v5 = vshll.u32 %v4600_v48, 16  ;;  %v4605_v48 = vld [vmem:[#allocation2 + $0x64] sm:$0xf] }
 0x124   : > { %6965 = vmatprep.mubr.msk.bf16.mxu1 %vm976_vm8, %v6418_v46  ;;  %v8618_v3 = vsel %vm8255_vm3, %v1678_v8, %v1679_v16  ;;  %v4788_v28 = vshrl.u32 %v4601_v26, 16  ;;  %v4793_v19 = vshrl.u32 %v4602_v29, 16  ;;  %v4796_v53 = vshll.u32 %v4602_v29, 16  ;;  %v4608_v16 = vld [vmem:[#allocation2 + $0x70] sm:$0xf] }
 0x125   : > { %v6421_v42 = vcombine.low %v8605_v30, %v8618_v3  ;;  %v4776_v6 = vor.u32 %v4774_v21, %v4773_v4  ;;  %v4778_v25 = vrot.slane %v4773_v4, 4  ;;  %v4785_v46 = vor.u32 %v4783_v5, %v4782_v11 }
 0x126   : > { %7116 = vmatmul.mubr.msk.bf16.vlgmr.msra.gmra.mrb[0].mxu0 %vm976_vm8, %v8497_v39  ;;  %v6612_v24 = vrot.slane %v4788_v28, 11  ;;  %v4795_v60 = vrot.slane %v4793_v19, 7  ;;  %v4802_v59 = vshrl.u32 %v4603_v31, 16  ;;  %v4805_v43 = vshll.u32 %v4603_v31, 16  ;;  %v4609_v31 = vld [vmem:[#allocation2 + $0x74] sm:$0xf] }
 0x127   : > { %7148 = vmatpush3.bf16.msra.mxu0 %v8491_v55  ;;  %7119 = vmatprep.mubr.msk.bf16.mxu0 %vm976_vm8, %v8543_v63  ;;  %v4777_v39 = vsel %vm8459_vm7, %v6611_v15, %v4776_v6  ;;  %v6406_v57 = vrot.slane %v1524_v13, 9  ;;  %v1683_v41 = vrot.slane %v1525_v52, 5  ;;  %v4786_v17 = vsel %vm8459_vm7, %v4778_v25, %v4785_v46  ;;  %v1987_v28 = vld [vmem:[#allocation2] sm:$0xe] }
 0x128   : > { %v4798_v32 = vor.u32 %v4796_v53, %v4795_v60  ;;  %v4800_v62 = vrot.slane %v4795_v60, 4  ;;  %v4804_v55 = vrot.slane %v4802_v59, 7  ;;  %v8631_v63 = vcombine.low %v4777_v39, %v4786_v17  ;;  %v1988_v53 = vld [vmem:[#allocation2 + $0x4] sm:$0xf]  ;;  %v1990_v59 = vld [vmem:[#allocation2 + $0xc] sm:$0xe] }
 0x129   : > { %v1684_v50 = vsel %vm8255_vm3, %v6406_v57, %v1683_v41  ;;  %v1685_v47 = vrot.slane %v1683_v41, 4  ;;  %v1686_v34 = vrot.slane %v1526_v44, 5  ;;  %v6407_v12 = vrot.slane %v1527_v56, 9 }
 0x12a   : > { %v4799_v35 = vsel %vm8459_vm7, %v6612_v24, %v4798_v32  ;;  %v4807_v18 = vor.u32 %v4805_v43, %v4804_v55  ;;  %v1690_v10 = vrot.slane %v1528_v36, 5  ;;  %v1693_v26 = vrot.slane %v1529_v40, 5  ;;  %v1989_v36 = vld [vmem:[#allocation2 + $0x8] sm:$0x3] }
 0x12b   : > { %6966 = vmatmul.mubr.msk.bf16.gmra.mrb[20].mxu1 %vm976_vm8, %v6419_v20  ;;  %v1687_v45 = vsel %vm8255_vm3, %v1685_v47, %v1686_v34  ;;  %v4810_v58 = vshrl.u32 %v4604_v54, 16  ;;  %v4815_v37 = vshrl.u32 %v4605_v48, 16  ;;  %v4818_v8 = vshll.u32 %v4605_v48, 16  ;;  %v1991_v54 = vld [vmem:[#allocation2 + $0x10] sm:$0xf] }
 0x12c   : > { %6969 = vmatprep.mubr.msk.bf16.mxu1 %vm976_vm8, %v6420_v7  ;;  %v4808_v21 = vsel %vm8459_vm7, %v4800_v62, %v4807_v18  ;;  %v6422_v22 = vcombine.low %v1684_v50, %v1687_v45  ;;  %v8648_v29 = vsel %vm8255_vm3, %v6407_v12, %v1690_v10  ;;  %v1692_v1 = vrot.slane %v1690_v10, 4  ;;  %v4610_v12 = vld [vmem:[#allocation2 + $0x78] sm:$0x8] }
 0x12d   : > { %v8652_v27 = vcombine.low %v4799_v35, %v4808_v21  ;;  %v6613_v0 = vrot.slane %v4810_v58, 11  ;;  %v4817_v20 = vrot.slane %v4815_v37, 7  ;;  %v4824_v7 = vshrl.u32 %v4606_v61, 16  ;;  %v4611_v58 = vld [vmem:[#allocation2 + $0x7c] sm:$0xf] }
 0x12e   : > { %7120 = vmatmul.mubr.msk.bf16.gmra.mrb[4].mxu0 %vm976_vm8, %v8557_v23  ;;  %v8658_v13 = vsel %vm8255_vm3, %v1692_v1, %v1693_v26  ;;  %v4827_v15 = vshll.u32 %v4606_v61, 16  ;;  %v4832_v4 = vshrl.u32 %v4607_v51, 16  ;;  %v4837_v5 = vshrl.u32 %v4608_v16, 16  ;;  %v4612_v1 = vld [vmem:[#allocation2 + $0x80] sm:$0xf] }
 0x12f   : > { %7123 = vmatprep.mubr.msk.bf16.mxu0 %vm976_vm8, %v8589_v38  ;;  %v6423_v11 = vcombine.low %v8648_v29, %v8658_v13  ;;  %v4820_v23 = vor.u32 %v4818_v8, %v4817_v20  ;;  %v4822_v52 = vrot.slane %v4817_v20, 4  ;;  %v4826_v19 = vrot.slane %v4824_v7, 7 }
 0x130   : > { %v6614_v44 = vrot.slane %v4832_v4, 11  ;;  %v4840_v6 = vshll.u32 %v4608_v16, 16  ;;  %v4846_v25 = vshrl.u32 %v4609_v31, 16  ;;  %v4839_v38 = vrot.slane %v4837_v5, 7 }
 0x131   : > { %v4821_v9 = vsel %vm8459_vm7, %v6613_v0, %v4820_v23  ;;  %v4849_v56 = vshll.u32 %v4609_v31, 16  ;;  %vm2037_vm0 = vsmask.f32 2304  ;;  %v4829_v46 = vor.u32 %v4827_v15, %v4826_v19 }
 0x132   : > { %v4848_v24 = vrot.slane %v4846_v25, 7  ;;  %vm2038_vm9 = vsmask.f32 6416  ;;  %v2041_v60 = vshrl.u32 %v1987_v28, 16  ;;  %v4842_v39 = vor.u32 %v4840_v6, %v4839_v38 }
 0x133   : > { %6970 = vmatmul.mubr.msk.bf16.gmra.mrb[24].mxu1 %vm976_vm8, %v6421_v42  ;;  %v4844_v43 = vrot.slane %v4839_v38, 4  ;;  %v2044_v57 = vshll.u32 %v1987_v28, 16  ;;  %v2050_v41 = vshrl.u32 %v1988_v53, 16  ;;  %v4830_v40 = vsel %vm8459_vm7, %v4822_v52, %v4829_v46  ;;  %vm8683_vm10 = vmor %vm2037_vm0, %vm2038_vm9  ;;  %v4615_v46 = vld [vmem:[#allocation2 + $0x8c] sm:$0xf] }
 0x134   : > { %6973 = vmatprep.mubr.msk.bf16.mxu1 %vm976_vm8, %v6422_v22  ;;  %v4851_v17 = vor.u32 %v4849_v56, %v4848_v24  ;;  %v2043_v32 = vrot.slane %v2041_v60, 5  ;;  %v2053_v62 = vshll.u32 %v1988_v53, 16  ;;  %v6629_v55 = vcombine.low %v4821_v9, %v4830_v40  ;;  %v4614_v53 = vld [vmem:[#allocation2 + $0x88] sm:$0xf] }
 0x135   : > { %v4843_v30 = vsel %vm8459_vm7, %v6614_v44, %v4842_v39  ;;  %v2046_v3 = vrot.slane %v2044_v57, 6  ;;  %v2052_v42 = vrot.slane %v2050_v41, 5  ;;  %v2060_v47 = vshrl.u32 %v1989_v36, 16  ;;  %v1993_v39 = vld [vmem:[#allocation2 + $0x18] sm:$0xe] }
 0x136   : > { %7124 = vmatmul.mubr.msk.bf16.gmra.mrb[8].mxu0 %vm976_vm8, %v8599_v49  ;;  %v4852_v48 = vsel %vm8459_vm7, %v4844_v43, %v4851_v17  ;;  %v2055_v50 = vrot.slane %v2053_v62, 6  ;;  %v2063_v34 = vshll.u32 %v1989_v36, 16  ;;  %v1992_v49 = vld [vmem:[#allocation2 + $0x14] sm:$0x3]  ;;  %v2069_v35 = vshrl.u32 %v1990_v59, 16 }
 0x137   : > { %7127 = vmatprep.mubr.msk.bf16.mxu0 %vm976_vm8, %v8631_v63  ;;  %v8679_v61 = vcombine.low %v4843_v30, %v4852_v48  ;;  %v2047_v51 = vor.u32 %v2046_v3, %v2043_v32  ;;  %v2072_v18 = vshll.u32 %v1990_v59, 16  ;;  %v2062_v16 = vrot.slane %v2060_v47, 5  ;;  %v1994_v43 = vld [vmem:[#allocation2 + $0x1c] sm:$0xf] }
 0x138   : > { %v2056_v63 = vor.u32 %v2055_v50, %v2052_v42  ;;  %v2065_v45 = vrot.slane %v2063_v34, 6  ;;  %v2078_v26 = vshrl.u32 %v1991_v54, 16  ;;  %v2071_v21 = vrot.slane %v2069_v35, 5  ;;  %v1995_v35 = vld [vmem:[#allocation2 + $0x20] sm:$0x3] }
 0x139   : > { %v2048_v37 = vrot.slane %v2047_v51, 4  ;;  %v2074_v22 = vrot.slane %v2072_v18, 6  ;;  %v2081_v29 = vshll.u32 %v1991_v54, 16  ;;  %v2088_v31 = vshrl.u32 %v1992_v49, 16 }
 0x13a   : > { %v2058_v0 = vrot.slane %v2056_v63, 4  ;;  %v2066_v20 = vor.u32 %v2065_v45, %v2062_v16  ;;  %v2080_v8 = vrot.slane %v2078_v26, 5  ;;  %v2091_v4 = vshll.u32 %v1992_v49, 16 }
 0x13b   : > { %6974 = vmatmul.mubr.msk.bf16.gmra.mrb[28].mxu1 %vm976_vm8, %v6423_v11  ;;  %v2057_v13 = vsel %vm8683_vm10, %v2048_v37, %v2056_v63  ;;  %v2075_v7 = vor.u32 %v2074_v22, %v2071_v21  ;;  %v2083_v15 = vrot.slane %v2081_v29, 6  ;;  %v2090_v52 = vrot.slane %v2088_v31, 5  ;;  %v4613_v11 = vld [vmem:[#allocation2 + $0x84] sm:$0x8] }
 0x13c   : > { %v2067_v23 = vsel %vm8683_vm10, %v2058_v0, %v2066_v20  ;;  %v4854_v5 = vshrl.u32 %v4610_v12, 16  ;;  %v4859_v28 = vshrl.u32 %v4611_v58, 16  ;;  %v2093_v25 = vrot.slane %v2091_v4, 6  ;;  %v1996_v37 = vld [vmem:[#allocation2 + $0x24] sm:$0xe] }
 0x13d   : > { %v6441_v19 = vcombine.low %v2057_v13, %v2067_v23  ;;  %v2076_v44 = vrot.slane %v2075_v7, 4  ;;  %v2084_v6 = vor.u32 %v2083_v15, %v2080_v8  ;;  %v4862_v56 = vshll.u32 %v4611_v58, 16  ;;  %v1997_v0 = vld [vmem:[#allocation2 + $0x28] sm:$0xf]  ;;  %v1998_v15 = vld [vmem:[#allocation2 + $0x2c] sm:$0x3] }
 0x13e   : > { %7128 = vmatmul.mubr.msk.bf16.gmra.mrb[12].mxu0 %vm976_vm8, %v8652_v27  ;;  %v6615_v9 = vrot.slane %v4854_v5, 11  ;;  %v4861_v38 = vrot.slane %v4859_v28, 7  ;;  %v4868_v36 = vshrl.u32 %v4612_v1, 16  ;;  %v2094_v27 = vor.u32 %v2093_v25, %v2090_v52 }
 0x13f   : > { %7131 = vmatprep.mubr.msk.bf16.mxu0 %vm976_vm8, %v6629_v55  ;;  %6979 = vmatprep.mubr.msk.bf16.mxu1 %vm976_vm8, %v6441_v19  ;;  %v2085_v24 = vsel %vm8683_vm10, %v2076_v44, %v2084_v6  ;;  %v2086_v60 = vrot.slane %v2084_v6, 4  ;;  %v4871_v59 = vshll.u32 %v4612_v1, 16  ;;  %v4876_v17 = vshrl.u32 %v4613_v11, 16  ;;  %v4616_v19 = vld [vmem:[#allocation2 + $0x90] sm:$0x8] }
 0x140   : > { %v4864_v57 = vor.u32 %v4862_v56, %v4861_v38  ;;  %v4866_v41 = vrot.slane %v4861_v38, 4  ;;  %v4870_v40 = vrot.slane %v4868_v36, 7  ;;  %v4881_v62 = vshrl.u32 %v4614_v53, 16 }
 0x141   : > { %v2095_v32 = vsel %vm8683_vm10, %v2086_v60, %v2094_v27  ;;  %v4884_v55 = vshll.u32 %v4614_v53, 16  ;;  %v4890_v30 = vshrl.u32 %v4615_v46, 16  ;;  %v6616_v48 = vrot.slane %v4876_v17, 11  ;;  %v4617_v53 = vld [vmem:[#allocation2 + $0x94] sm:$0xf] }
 0x142   : > { %v6442_v3 = vcombine.low %v2085_v24, %v2095_v32  ;;  %v4865_v42 = vsel %vm8459_vm7, %v6615_v9, %v4864_v57  ;;  %v4873_v54 = vor.u32 %v4871_v59, %v4870_v40  ;;  %v4883_v50 = vrot.slane %v4881_v62, 7  ;;  %v4618_v27 = vld [vmem:[#allocation2 + $0x98] sm:$0xf]  ;;  %v4619_v40 = vld [vmem:[#allocation2 + $0x9c] sm:$0x8] }
 0x143   : > { %v4892_v47 = vrot.slane %v4890_v30, 7  ;;  %v4893_v34 = vshll.u32 %v4615_v46, 16  ;;  %v2097_v51 = vshrl.u32 %v1993_v39, 16  ;;  %v2100_v18 = vshll.u32 %v1993_v39, 16 }
 0x144   : > { %6980 = vmatmul.mubr.msk.bf16.vlgmr.msra.gmra.mrb[0].mxu1 %vm976_vm8, %v6442_v3  ;;  %v4874_v49 = vsel %vm8459_vm7, %v4866_v41, %v4873_v54  ;;  %v2106_v12 = vshrl.u32 %v1994_v43, 16  ;;  %v2109_v63 = vshll.u32 %v1994_v43, 16  ;;  %v4886_v45 = vor.u32 %v4884_v55, %v4883_v50 }
 0x145   : > { %7182 = vmatpush3.bf16.msra.mxu1 %v7665_v2  ;;  %v6631_v16 = vcombine.low %v4865_v42, %v4874_v49  ;;  %v4888_v26 = vrot.slane %v4883_v50, 4  ;;  %v4895_v58 = vor.u32 %v4893_v34, %v4892_v47  ;;  %v2099_v21 = vrot.slane %v2097_v51, 5  ;;  %v4621_v51 = vld [vmem:[#allocation2 + $0xa4] sm:$0xf] }
 0x146   : > { %7132 = vmatmul.mubr.msk.bf16.gmra.mrb[16].mxu0 %vm976_vm8, %v8679_v61  ;;  %v2102_v22 = vrot.slane %v2100_v18, 6  ;;  %v2108_v29 = vrot.slane %v2106_v12, 5  ;;  %v2111_v1 = vrot.slane %v2109_v63, 6  ;;  %v4887_v20 = vsel %vm8459_vm7, %v6616_v48, %v4886_v45  ;;  %v4620_v48 = vld [vmem:[#allocation2 + $0xa0] sm:$0xf] }
 0x147   : > { %7135 = vmatprep.mubr.msk.bf16.mxu0 %vm976_vm8, %v6631_v16  ;;  %v4896_v61 = vsel %vm8459_vm7, %v4888_v26, %v4895_v58  ;;  %v2116_v8 = vshrl.u32 %v1995_v35, 16  ;;  %v2119_v2 = vshll.u32 %v1995_v35, 16  ;;  %v2125_v4 = vshrl.u32 %v1996_v37, 16  ;;  %v1999_v16 = vld [vmem:[#allocation2 + $0x30] sm:$0xe] }
 0x148   : > { %v6632_v31 = vcombine.low %v4887_v20, %v4896_v61  ;;  %v2103_v13 = vor.u32 %v2102_v22, %v2099_v21  ;;  %v2112_v7 = vor.u32 %v2111_v1, %v2108_v29  ;;  %v2128_v5 = vshll.u32 %v1996_v37, 16  ;;  %v2000_v21 = vld [vmem:[#allocation2 + $0x34] sm:$0xf] }
 0x149   : > { %v2118_v23 = vrot.slane %v2116_v8, 5  ;;  %v2121_v52 = vrot.slane %v2119_v2, 6  ;;  %v2134_v28 = vshrl.u32 %v1997_v0, 16  ;;  %v2127_v25 = vrot.slane %v2125_v4, 5  ;;  %v2001_v8 = vld [vmem:[#allocation2 + $0x38] sm:$0x3] }
 0x14a   : > { %v2104_v44 = vrot.slane %v2103_v13, 4  ;;  %v2114_v6 = vrot.slane %v2112_v7, 4  ;;  %v2137_v11 = vshll.u32 %v1997_v0, 16  ;;  %v2130_v38 = vrot.slane %v2128_v5, 6 }
 0x14b   : > { %v2122_v9 = vor.u32 %v2121_v52, %v2118_v23  ;;  %v2136_v56 = vrot.slane %v2134_v28, 5  ;;  %v2144_v36 = vshrl.u32 %v1998_v15, 16  ;;  %v2147_v60 = vshll.u32 %v1998_v15, 16  ;;  %v2002_v23 = vld [vmem:[#allocation2 + $0x3c] sm:$0xe] }
 0x14c   : > { %v2113_v46 = vsel %vm8683_vm10, %v2104_v44, %v2112_v7  ;;  %v2139_v24 = vrot.slane %v2137_v11, 6  ;;  %v4898_v59 = vshrl.u32 %v4616_v19, 16  ;;  %v2131_v43 = vor.u32 %v2130_v38, %v2127_v25 }
 0x14d   : > { %v2123_v39 = vsel %vm8683_vm10, %v2114_v6, %v2122_v9  ;;  %v2146_v57 = vrot.slane %v2144_v36, 5  ;;  %v4903_v41 = vshrl.u32 %v4617_v53, 16  ;;  %v2149_v62 = vrot.slane %v2147_v60, 6 }
 0x14e   : > { %7136 = vmatmul.mubr.msk.bf16.gmra.mrb[20].mxu0 %vm976_vm8, %v6632_v31  ;;  %v6443_v17 = vcombine.low %v2113_v46, %v2123_v39  ;;  %v2140_v32 = vor.u32 %v2139_v24, %v2136_v56  ;;  %v6617_v55 = vrot.slane %v4898_v59, 11  ;;  %v2132_v30 = vrot.slane %v2131_v43, 4  ;;  %v2003_v56 = vld [vmem:[#allocation2 + $0x40] sm:$0xf] }
 0x14f   : > { %v4905_v3 = vrot.slane %v4903_v41, 7  ;;  %v4906_v42 = vshll.u32 %v4617_v53, 16  ;;  %v4912_v54 = vshrl.u32 %v4618_v27, 16  ;;  %v2150_v47 = vor.u32 %v2149_v62, %v2146_v57 }
 0x150   : > { %6983 = vmatprep.mubr.msk.bf16.mxu1 %vm976_vm8, %v6443_v17  ;;  %v2142_v50 = vrot.slane %v2140_v32, 4  ;;  %v4915_v34 = vshll.u32 %v4618_v27, 16  ;;  %v4920_v49 = vshrl.u32 %v4619_v40, 16  ;;  %v2141_v35 = vsel %vm8683_vm10, %v2132_v30, %v2140_v32  ;;  %v2004_v27 = vld [vmem:[#allocation2 + $0x44] sm:$0x3] }
 0x151   : > { %v4908_v18 = vor.u32 %v4906_v42, %v4905_v3  ;;  %v4910_v12 = vrot.slane %v4905_v3, 4  ;;  %v4914_v63 = vrot.slane %v4912_v54, 7  ;;  %v4925_v58 = vshrl.u32 %v4620_v48, 16  ;;  %v4622_v40 = vld [vmem:[#allocation2 + $0xa8] sm:$0x8] }
 0x152   : > { %v2151_v45 = vsel %vm8683_vm10, %v2142_v50, %v2150_v47  ;;  %v6618_v26 = vrot.slane %v4920_v49, 11  ;;  %v4928_v37 = vshll.u32 %v4620_v48, 16  ;;  %v4934_v0 = vshrl.u32 %v4621_v51, 16  ;;  %v4623_v48 = vld [vmem:[#allocation2 + $0xac] sm:$0xf] }
 0x153   : > { %v6444_v22 = vcombine.low %v2141_v35, %v2151_v45  ;;  %v4909_v29 = vsel %vm8459_vm7, %v6617_v55, %v4908_v18  ;;  %v4917_v1 = vor.u32 %v4915_v34, %v4914_v63  ;;  %v4927_v20 = vrot.slane %v4925_v58, 7  ;;  %v4625_v35 = vld [vmem:[#allocation2 + $0xb4] sm:$0x8]  ;;  %v4626_v45 = vld [vmem:[#allocation2 + $0xb8] sm:$0xf] }
 0x154   : > { %v4937_v61 = vshll.u32 %v4621_v51, 16  ;;  %v2153_v2 = vshrl.u32 %v1999_v16, 16  ;;  %v2156_v31 = vshll.u32 %v1999_v16, 16  ;;  %v4936_v7 = vrot.slane %v4934_v0, 7  ;;  %v4624_v51 = vld [vmem:[#allocation2 + $0xb0] sm:$0xf] }
 0x155   : > { %6984 = vmatmul.mubr.msk.bf16.gmra.mrb[4].mxu1 %vm976_vm8, %v6444_v22  ;;  %v4918_v13 = vsel %vm8459_vm7, %v4910_v12, %v4917_v1  ;;  %v2162_v15 = vshrl.u32 %v2000_v21, 16  ;;  %v2165_v4 = vshll.u32 %v2000_v21, 16  ;;  %v4930_v5 = vor.u32 %v4928_v37, %v4927_v20 }
 0x156   : > { %v6633_v52 = vcombine.low %v4909_v29, %v4918_v13  ;;  %v4932_v28 = vrot.slane %v4927_v20, 4  ;;  %v2155_v19 = vrot.slane %v2153_v2, 5  ;;  %v4939_v44 = vor.u32 %v4937_v61, %v4936_v7 }
 0x157   : > { %v2158_v6 = vrot.slane %v2156_v31, 6  ;;  %v2164_v25 = vrot.slane %v2162_v15, 5  ;;  %v2167_v11 = vrot.slane %v2165_v4, 6  ;;  %v4931_v53 = vsel %vm8459_vm7, %v6618_v26, %v4930_v5 }
 0x158   : > { %7139 = vmatprep.mubr.msk.bf16.mxu0 %vm976_vm8, %v6633_v52  ;;  %v2172_v9 = vshrl.u32 %v2001_v8, 16  ;;  %v2175_v38 = vshll.u32 %v2001_v8, 16  ;;  %v2181_v36 = vshrl.u32 %v2002_v23, 16  ;;  %v4940_v46 = vsel %vm8459_vm7, %v4932_v28, %v4939_v44  ;;  %v4627_v8 = vld [vmem:[#allocation2 + $0xbc] sm:$0xf] }
 0x159   : > { %v2159_v24 = vor.u32 %v2158_v6, %v2155_v19  ;;  %v2168_v60 = vor.u32 %v2167_v11, %v2164_v25  ;;  %v2184_v59 = vshll.u32 %v2002_v23, 16  ;;  %v6634_v39 = vcombine.low %v4931_v53, %v4940_v46  ;;  %v2005_v19 = vld [vmem:[#allocation2 + $0x48] sm:$0xe]  ;;  %v2006_v53 = vld [vmem:[#allocation2 + $0x4c] sm:$0xf] }
 0x15a   : > { %v2174_v43 = vrot.slane %v2172_v9, 5  ;;  %v2177_v57 = vrot.slane %v2175_v38, 6  ;;  %v2183_v41 = vrot.slane %v2181_v36, 5  ;;  %v2190_v55 = vshrl.u32 %v2003_v56, 16  ;;  %v2007_v46 = vld [vmem:[#allocation2 + $0x50] sm:$0x3] }
 0x15b   : > { %v2160_v17 = vrot.slane %v2159_v24, 4  ;;  %v2170_v32 = vrot.slane %v2168_v60, 4  ;;  %v2186_v62 = vrot.slane %v2184_v59, 6  ;;  %7140 = vmatmul.mubr.msk.bf16.gmra.mrb[24].mxu0 %vm976_vm8, %v6634_v39  ;;  %v2193_v3 = vshll.u32 %v2003_v56, 16  ;;  %v2008_v39 = vld [vmem:[#allocation2 + $0x54] sm:$0xe] }
 0x15c   : > { %v2178_v30 = vor.u32 %v2177_v57, %v2174_v43  ;;  %v2200_v42 = vshrl.u32 %v2004_v27, 16  ;;  %v2203_v54 = vshll.u32 %v2004_v27, 16  ;;  %v2192_v34 = vrot.slane %v2190_v55, 5 }
 0x15d   : > { %v2169_v50 = vsel %vm8683_vm10, %v2160_v17, %v2168_v60  ;;  %v2187_v47 = vor.u32 %v2186_v62, %v2183_v41  ;;  %v4942_v49 = vshrl.u32 %v4622_v40, 16  ;;  %v2195_v12 = vrot.slane %v2193_v3, 6 }
 0x15e   : > { %v2179_v18 = vsel %vm8683_vm10, %v2170_v32, %v2178_v30  ;;  %v2202_v63 = vrot.slane %v2200_v42, 5  ;;  %v2205_v16 = vrot.slane %v2203_v54, 6  ;;  %v4947_v21 = vshrl.u32 %v4623_v48, 16  ;;  %v2009_v54 = vld [vmem:[#allocation2 + $0x58] sm:$0xf] }
 0x15f   : > { %v6445_v26 = vcombine.low %v2169_v50, %v2179_v18  ;;  %v2188_v58 = vrot.slane %v2187_v47, 4  ;;  %v6619_v37 = vrot.slane %v4942_v49, 11  ;;  %v2196_v22 = vor.u32 %v2195_v12, %v2192_v34 }
 0x160   : > { %v2206_v29 = vor.u32 %v2205_v16, %v2202_v63  ;;  %v4950_v1 = vshll.u32 %v4623_v48, 16  ;;  %v4956_v0 = vshrl.u32 %v4624_v51, 16  ;;  %v4949_v20 = vrot.slane %v4947_v21, 7  ;;  %v2011_v21 = vld [vmem:[#allocation2 + $0x60] sm:$0xe] }
 0x161   : > { %6987 = vmatprep.mubr.msk.bf16.mxu1 %vm976_vm8, %v6445_v26  ;;  %v4959_v61 = vshll.u32 %v4624_v51, 16  ;;  %v4964_v2 = vshrl.u32 %v4625_v35, 16  ;;  %v4969_v31 = vshrl.u32 %v4626_v45, 16  ;;  %v2197_v13 = vsel %vm8683_vm10, %v2188_v58, %v2196_v22  ;;  %v2010_v51 = vld [vmem:[#allocation2 + $0x5c] sm:$0x3]  ;;  %v7474_v35 = vld [vmem:[#allocation2 + $0x4] sm:$0xff]  }
 0x162   : > { %v2198_v7 = vrot.slane %v2196_v22, 4  ;;  %v4958_v15 = vrot.slane %v4956_v0, 7  ;;  %v4972_v4 = vshll.u32 %v4626_v45, 16  ;;  %v4952_v23 = vor.u32 %v4950_v1, %v4949_v20 }
 0x163   : > { %v4954_v52 = vrot.slane %v4949_v20, 4  ;;  %v6620_v5 = vrot.slane %v4964_v2, 11  ;;  %v4971_v28 = vrot.slane %v4969_v31, 7  ;;  %v4978_v25 = vshrl.u32 %v4627_v8, 16  ;;  %v2012_v2 = vld [vmem:[#allocation2 + $0x64] sm:$0xf] }
 0x164   : > { %v2207_v44 = vsel %vm8683_vm10, %v2198_v7, %v2206_v29  ;;  %v4961_v6 = vor.u32 %v4959_v61, %v4958_v15  ;;  %v4981_v11 = vshll.u32 %v4627_v8, 16  ;;  %v4953_v38 = vsel %vm8459_vm7, %v6619_v37, %v4952_v23  ;;  %v2013_v15 = vld [vmem:[#allocation2 + $0x68] sm:$0x3] }
 0x165   : > { %v6446_v9 = vcombine.low %v2197_v13, %v2207_v44  ;;  %v4974_v56 = vor.u32 %v4972_v4, %v4971_v28  ;;  %v4976_v36 = vrot.slane %v4971_v28, 4  ;;  %v4980_v60 = vrot.slane %v4978_v25, 7 }
 0x166   : > { %v4962_v24 = vsel %vm8459_vm7, %v4954_v52, %v4961_v6  ;;  %v2209_v27 = vshrl.u32 %v2005_v19, 16  ;;  %v2212_v59 = vshll.u32 %v2005_v19, 16  ;;  %v2218_v41 = vshrl.u32 %v2006_v53, 16  ;;  %v2014_v19 = vld [vmem:[#allocation2 + $0x6c] sm:$0xe]  ;;  %v7475_v6 = vld [vmem:[#allocation2 + $0x10] sm:$0xff]  }
 0x167   : > { %6988 = vmatmul.mubr.msk.bf16.gmra.mrb[8].mxu1 %vm976_vm8, %v6446_v9  ;;  %v6635_v43 = vcombine.low %v4953_v38, %v4962_v24  ;;  %v4975_v57 = vsel %vm8459_vm7, %v6620_v5, %v4974_v56  ;;  %v2221_v40 = vshll.u32 %v2006_v53, 16  ;;  %v4983_v17 = vor.u32 %v4981_v11, %v4980_v60 }
 0x168   : > { %v2211_v32 = vrot.slane %v2209_v27, 5  ;;  %v2214_v62 = vrot.slane %v2212_v59, 6  ;;  %v2228_v55 = vshrl.u32 %v2007_v46, 16  ;;  %v2220_v30 = vrot.slane %v2218_v41, 5  ;;  %v2015_v59 = vld [vmem:[#allocation2 + $0x70] sm:$0xf] }
 0x169   : > { %7143 = vmatprep.mubr.msk.bf16.mxu0 %vm976_vm8, %v6635_v43  ;;  %v2223_v3 = vrot.slane %v2221_v40, 6  ;;  %v2231_v42 = vshll.u32 %v2007_v46, 16  ;;  %v2237_v48 = vshrl.u32 %v2008_v39, 16  ;;  %v4984_v50 = vsel %vm8459_vm7, %v4976_v36, %v4983_v17  ;;  %v7476_v46 = vld [vmem:[#allocation2 + $0x1c] sm:$0xff]   ;;  %v2016_v40 = vld [vmem:[#allocation2 + $0x74] sm:$0x3] }
 0x16a   : > { %v2215_v47 = vor.u32 %v2214_v62, %v2211_v32  ;;  %v2230_v34 = vrot.slane %v2228_v55, 5  ;;  %v2240_v49 = vshll.u32 %v2008_v39, 16  ;;  %v6636_v18 = vcombine.low %v4975_v57, %v4984_v50  ;;  %v2017_v50 = vld [vmem:[#allocation2 + $0x78] sm:$0xe] }
 0x16b   : > { %v2224_v12 = vor.u32 %v2223_v3, %v2220_v30  ;;  %v2233_v63 = vrot.slane %v2231_v42, 6  ;;  %v2239_v16 = vrot.slane %v2237_v48, 5  ;;  %v2246_v58 = vshrl.u32 %v2009_v54, 16 }
 0x16c   : > { %v2216_v45 = vrot.slane %v2215_v47, 4  ;;  %v2242_v26 = vrot.slane %v2240_v49, 6  ;;  %v2249_v37 = vshll.u32 %v2009_v54, 16  ;;  %7144 = vmatmul.mubr.msk.bf16.gmra.mrb[28].mxu0 %vm976_vm8, %v6636_v18  ;;  %v2256_v33 = vshrl.u32 %v2010_v51, 16 }
 0x16d   : > { %v2226_v22 = vrot.slane %v2224_v12, 4  ;;  %v2234_v29 = vor.u32 %v2233_v63, %v2230_v34  ;;  %v2259_v1 = vshll.u32 %v2010_v51, 16  ;;  %v2248_v61 = vrot.slane %v2246_v58, 5  ;;  %7149 = vmatprep.mubr.msk.bf16.mxu0 %vm976_vm8, %v7474_v35 }
 0x16e   : > { %v2225_v0 = vsel %vm8683_vm10, %v2216_v45, %v2224_v12  ;;  %v2243_v20 = vor.u32 %v2242_v26, %v2239_v16  ;;  %v2251_v8 = vrot.slane %v2249_v37, 6  ;;  %v2258_v13 = vrot.slane %v2256_v33, 5  ;;  %v2018_v16 = vld [vmem:[#allocation2 + $0x7c] sm:$0xf]  ;;  %v7477_v37 = vld [vmem:[#allocation2 + $0x28] sm:$0xff]  }
 0x16f   : > { %v2235_v31 = vsel %vm8683_vm10, %v2226_v22, %v2234_v29  ;;  %v2261_v7 = vrot.slane %v2259_v1, 6  ;;  %v2265_v4 = vshrl.u32 %v2011_v21, 16  ;;  %v2268_v28 = vshll.u32 %v2011_v21, 16  ;;  %v2019_v21 = vld [vmem:[#allocation2 + $0x80] sm:$0x3] }
 0x170   : > { %v6447_v23 = vcombine.low %v2225_v0, %v2235_v31  ;;  %v2244_v52 = vrot.slane %v2243_v20, 4  ;;  %v2252_v5 = vor.u32 %v2251_v8, %v2248_v61  ;;  %v2274_v11 = vshrl.u32 %v2012_v2, 16  ;;  %v2020_v20 = vld [vmem:[#allocation2 + $0x84] sm:$0xe]  ;;  %v7478_v61 = vld [vmem:[#allocation2 + $0x34] sm:$0xff]  }
 0x171   : > { %v2262_v44 = vor.u32 %v2261_v7, %v2258_v13  ;;  %v2267_v25 = vrot.slane %v2265_v4, 5  ;;  %v2277_v53 = vshll.u32 %v2012_v2, 16  ;;  %v2270_v56 = vrot.slane %v2268_v28, 6 }
 0x172   : > { %6991 = vmatprep.mubr.msk.bf16.mxu1 %vm976_vm8, %v6447_v23  ;;  %v2253_v9 = vsel %vm8683_vm10, %v2244_v52, %v2252_v5  ;;  %v2254_v38 = vrot.slane %v2252_v5, 4  ;;  %v2284_v36 = vshrl.u32 %v2013_v15, 16  ;;  %v2276_v24 = vrot.slane %v2274_v11, 5 }
 0x173   : > { %v2279_v60 = vrot.slane %v2277_v53, 6  ;;  %v2287_v27 = vshll.u32 %v2013_v15, 16  ;;  %v2293_v39 = vshrl.u32 %v2014_v19, 16  ;;  %v2271_v57 = vor.u32 %v2270_v56, %v2267_v25  ;;  %v2022_v53 = vld [vmem:[#allocation2 + $0x8c] sm:$0x3] }
 0x174   : > { %v2263_v43 = vsel %vm8683_vm10, %v2254_v38, %v2262_v44  ;;  %v2286_v41 = vrot.slane %v2284_v36, 5  ;;  %v2296_v17 = vshll.u32 %v2014_v19, 16  ;;  %7150 = vmatmul.mubr.msk.bf16.vlgmr.msra.gmra.mrb[0].mxu0 %vm976_vm8, %v7475_v6  ;;  %v2302_v54 = vshrl.u32 %v2015_v59, 16  ;;  %v2021_v19 = vld [vmem:[#allocation2 + $0x88] sm:$0xf] }
 0x175   : > { %v6448_v32 = vcombine.low %v2253_v9, %v2263_v43  ;;  %v2280_v62 = vor.u32 %v2279_v60, %v2276_v24  ;;  %v2289_v55 = vrot.slane %v2287_v27, 6  ;;  %v2295_v30 = vrot.slane %v2293_v39, 5  ;;  %7153 = vmatprep.mubr.msk.bf16.mxu0 %vm976_vm8, %v7476_v46  ;;  %v2023_v39 = vld [vmem:[#allocation2 + $0x90] sm:$0xe] }
 0x176   : > { %v2272_v3 = vrot.slane %v2271_v57, 4  ;;  %v2298_v42 = vrot.slane %v2296_v17, 6  ;;  %v2305_v48 = vshll.u32 %v2015_v59, 16  ;;  %v2312_v51 = vshrl.u32 %v2016_v40, 16  ;;  %v7479_v17 = vld [vmem:[#allocation2 + $0x40] sm:$0xff]  }
 0x177   : > { %6992 = vmatmul.mubr.msk.bf16.gmra.mrb[12].mxu1 %vm976_vm8, %v6448_v32  ;;  %v2282_v47 = vrot.slane %v2280_v62, 4  ;;  %v2290_v34 = vor.u32 %v2289_v55, %v2286_v41  ;;  %v2315_v49 = vshll.u32 %v2016_v40, 16  ;;  %v2304_v12 = vrot.slane %v2302_v54, 5 }
 0x178   : > { %v2281_v35 = vsel %vm8683_vm10, %v2272_v3, %v2280_v62  ;;  %v2299_v18 = vor.u32 %v2298_v42, %v2295_v30  ;;  %v2307_v63 = vrot.slane %v2305_v48, 6  ;;  %v2314_v26 = vrot.slane %v2312_v51, 5  ;;  %v2024_v3 = vld [vmem:[#allocation2 + $0x94] sm:$0xf]  ;;  %v7480_v42 = vld [vmem:[#allocation2 + $0x4c] sm:$0xff]  }
 0x179   : > { %v2291_v45 = vsel %vm8683_vm10, %v2282_v47, %v2290_v34  ;;  %v2317_v58 = vrot.slane %v2315_v49, 6  ;;  %v2321_v22 = vshrl.u32 %v2017_v50, 16  ;;  %v2324_v0 = vshll.u32 %v2017_v50, 16  ;;  %v2025_v47 = vld [vmem:[#allocation2 + $0x98] sm:$0x3] }
 0x17a   : > { %v6449_v29 = vcombine.low %v2281_v35, %v2291_v45  ;;  %v2300_v33 = vrot.slane %v2299_v18, 4  ;;  %v2308_v1 = vor.u32 %v2307_v63, %v2304_v12  ;;  %v2330_v31 = vshrl.u32 %v2018_v16, 16  ;;  %v2026_v12 = vld [vmem:[#allocation2 + $0x9c] sm:$0xe] }
 0x17b   : > { %v2318_v8 = vor.u32 %v2317_v58, %v2314_v26  ;;  %v2323_v2 = vrot.slane %v2321_v22, 5  ;;  %v2333_v13 = vshll.u32 %v2018_v16, 16  ;;  %v2326_v4 = vrot.slane %v2324_v0, 6  ;;  %v2027_v0 = vld [vmem:[#allocation2 + $0xa0] sm:$0xf] }
 0x17c   : > { %6995 = vmatprep.mubr.msk.bf16.mxu1 %vm976_vm8, %v6449_v29  ;;  %v2309_v7 = vsel %vm8683_vm10, %v2300_v33, %v2308_v1  ;;  %v2310_v15 = vrot.slane %v2308_v1, 4  ;;  %v2340_v23 = vshrl.u32 %v2019_v21, 16  ;;  %7154 = vmatmul.mubr.msk.bf16.gmra.mrb[4].mxu0 %vm976_vm8, %v7477_v37  ;;  %v2332_v52 = vrot.slane %v2330_v31, 5  ;;  %v2028_v31 = vld [vmem:[#allocation2 + $0xa4] sm:$0x3] }
 0x17d   : > { %v2335_v5 = vrot.slane %v2333_v13, 6  ;;  %v2343_v28 = vshll.u32 %v2019_v21, 16  ;;  %v2349_v44 = vshrl.u32 %v2020_v20, 16  ;;  %v2327_v25 = vor.u32 %v2326_v4, %v2323_v2  ;;  %7157 = vmatprep.mubr.msk.bf16.mxu0 %vm976_vm8, %v7478_v61 }
 0x17e   : > { %v2319_v6 = vsel %vm8683_vm10, %v2310_v15, %v2318_v8  ;;  %v2342_v11 = vrot.slane %v2340_v23, 5  ;;  %v2352_v9 = vshll.u32 %v2020_v20, 16  ;;  %v2358_v27 = vshrl.u32 %v2021_v19, 16 }
 0x17f   : > { %v6450_v38 = vcombine.low %v2309_v7, %v2319_v6  ;;  %v2336_v56 = vor.u32 %v2335_v5, %v2332_v52  ;;  %v2345_v36 = vrot.slane %v2343_v28, 6  ;;  %v2351_v46 = vrot.slane %v2349_v44, 5  ;;  %v7481_v52 = vld [vmem:[#allocation2 + $0x58] sm:$0xff]   ;;  %v7482_v5 = vld [vmem:[#allocation2 + $0x64] sm:$0xff]  }
 0x180   : > { %v2328_v24 = vrot.slane %v2327_v25, 4  ;;  %v2354_v60 = vrot.slane %v2352_v9, 6  ;;  %v2361_v59 = vshll.u32 %v2021_v19, 16  ;;  %v2368_v41 = vshrl.u32 %v2022_v53, 16  ;;  %v2029_v25 = vld [vmem:[#allocation2 + $0xa8] sm:$0xe] }
 0x181   : > { %6996 = vmatmul.mubr.msk.bf16.gmra.mrb[16].mxu1 %vm976_vm8, %v6450_v38  ;;  %v2338_v43 = vrot.slane %v2336_v56, 4  ;;  %v2346_v57 = vor.u32 %v2345_v36, %v2342_v11  ;;  %v2371_v40 = vshll.u32 %v2022_v53, 16  ;;  %v2360_v55 = vrot.slane %v2358_v27, 5 }
 0x182   : > { %v2337_v32 = vsel %vm8683_vm10, %v2328_v24, %v2336_v56  ;;  %v2355_v62 = vor.u32 %v2354_v60, %v2351_v46  ;;  %v2363_v30 = vrot.slane %v2361_v59, 6  ;;  %v2370_v48 = vrot.slane %v2368_v41, 5  ;;  %v2030_v60 = vld [vmem:[#allocation2 + $0xac] sm:$0xf] }
 0x183   : > { %v2347_v54 = vsel %vm8683_vm10, %v2338_v43, %v2346_v57  ;;  %v2373_v50 = vrot.slane %v2371_v40, 6  ;;  %v2377_v34 = vshrl.u32 %v2023_v39, 16  ;;  %v2380_v18 = vshll.u32 %v2023_v39, 16  ;;  %v2031_v43 = vld [vmem:[#allocation2 + $0xb0] sm:$0x3] }
 0x184   : > { %v6451_v51 = vcombine.low %v2337_v32, %v2347_v54  ;;  %v2356_v49 = vrot.slane %v2355_v62, 4  ;;  %v2364_v35 = vor.u32 %v2363_v30, %v2360_v55  ;;  %7158 = vmatmul.mubr.msk.bf16.gmra.mrb[8].mxu0 %vm976_vm8, %v7479_v17  ;;  %v2386_v45 = vshrl.u32 %v2024_v3, 16  ;;  %v2032_v62 = vld [vmem:[#allocation2 + $0xb4] sm:$0xe] }
 0x185   : > { %v2374_v63 = vor.u32 %v2373_v50, %v2370_v48  ;;  %v2379_v16 = vrot.slane %v2377_v34, 5  ;;  %v2389_v26 = vshll.u32 %v2024_v3, 16  ;;  %v2382_v21 = vrot.slane %v2380_v18, 6  ;;  %7161 = vmatprep.mubr.msk.bf16.mxu0 %vm976_vm8, %v7480_v42  ;;  %v7483_v34 = vld [vmem:[#allocation2 + $0x70] sm:$0xff]   ;;  %v2033_v18 = vld [vmem:[#allocation2 + $0xb8] sm:$0xf] }
 0x186   : > { %6999 = vmatprep.mubr.msk.bf16.mxu1 %vm976_vm8, %v6451_v51  ;;  %v2365_v58 = vsel %vm8683_vm10, %v2356_v49, %v2364_v35  ;;  %v2366_v37 = vrot.slane %v2364_v35, 4  ;;  %v2396_v22 = vshrl.u32 %v2025_v47, 16  ;;  %v2388_v29 = vrot.slane %v2386_v45, 5 }
 0x187   : > { %v2391_v33 = vrot.slane %v2389_v26, 6  ;;  %v2399_v1 = vshll.u32 %v2025_v47, 16  ;;  %v2405_v20 = vshrl.u32 %v2026_v12, 16  ;;  %v2383_v8 = vor.u32 %v2382_v21, %v2379_v16  ;;  %v2034_v26 = vld [vmem:[#allocation2 + $0xbc] sm:$0x3] }
 0x188   : > { %v2375_v61 = vsel %vm8683_vm10, %v2366_v37, %v2374_v63  ;;  %v2398_v2 = vrot.slane %v2396_v22, 5  ;;  %v2408_v13 = vshll.u32 %v2026_v12, 16  ;;  %v2414_v44 = vshrl.u32 %v2027_v0, 16  ;;  %v7484_v37 = vld [vmem:[#allocation2 + $0x7c] sm:$0xff]  }
 0x189   : > { %v6452_v7 = vcombine.low %v2365_v58, %v2375_v61  ;;  %v2392_v15 = vor.u32 %v2391_v33, %v2388_v29  ;;  %v2401_v4 = vrot.slane %v2399_v1, 6  ;;  %v2407_v23 = vrot.slane %v2405_v20, 5 }
 0x18a   : > { %v2384_v28 = vrot.slane %v2383_v8, 4  ;;  %v2410_v19 = vrot.slane %v2408_v13, 6  ;;  %v2417_v6 = vshll.u32 %v2027_v0, 16  ;;  %v2424_v9 = vshrl.u32 %v2028_v31, 16  ;;  %v2804_v8 = vld [vmem:[#allocation2 + $0x60] sm:$0xc] }
 0x18b   : > { %7000 = vmatmul.mubr.msk.bf16.gmra.mrb[20].mxu1 %vm976_vm8, %v6452_v7  ;;  %v2394_v11 = vrot.slane %v2392_v15, 4  ;;  %v2402_v53 = vor.u32 %v2401_v4, %v2398_v2  ;;  %v2427_v38 = vshll.u32 %v2028_v31, 16  ;;  %v2416_v46 = vrot.slane %v2414_v44, 5 }
 0x18c   : > { %v2393_v56 = vsel %vm8683_vm10, %v2384_v28, %v2392_v15  ;;  %v2411_v36 = vor.u32 %v2410_v19, %v2407_v23  ;;  %v2419_v24 = vrot.slane %v2417_v6, 6  ;;  %v2426_v59 = vrot.slane %v2424_v9, 5  ;;  %7162 = vmatmul.mubr.msk.bf16.gmra.mrb[12].mxu0 %vm976_vm8, %v7481_v52  ;;  %v2805_v15 = vld [vmem:[#allocation2 + $0x64] sm:$0xf]  ;;  %v2806_v28 = vld [vmem:[#allocation2 + $0x68] sm:$0x3] }
 0x18d   : > { %v2403_v27 = vsel %vm8683_vm10, %v2394_v11, %v2402_v53  ;;  %v2429_v39 = vrot.slane %v2427_v38, 6  ;;  %v2433_v57 = vshrl.u32 %v2029_v25, 16  ;;  %v2436_v32 = vshll.u32 %v2029_v25, 16  ;;  %7165 = vmatprep.mubr.msk.bf16.mxu0 %vm976_vm8, %v7482_v5  ;;  %v2808_v19 = vld [vmem:[#allocation2 + $0x70] sm:$0xf] }
 0x18e   : > { %v6453_v41 = vcombine.low %v2393_v56, %v2403_v27  ;;  %v2412_v40 = vrot.slane %v2411_v36, 4  ;;  %v2420_v17 = vor.u32 %v2419_v24, %v2416_v46  ;;  %v2442_v3 = vshrl.u32 %v2030_v60, 16  ;;  %v2807_v36 = vld [vmem:[#allocation2 + $0x6c] sm:$0xc]  ;;  %v2809_v46 = vld [vmem:[#allocation2 + $0x74] sm:$0x3] }
 0x18f   : > { %v2430_v55 = vor.u32 %v2429_v39, %v2426_v59  ;;  %v2435_v30 = vrot.slane %v2433_v57, 5  ;;  %v2445_v42 = vshll.u32 %v2030_v60, 16  ;;  %v2438_v50 = vrot.slane %v2436_v32, 6  ;;  %v7485_v59 = vld [vmem:[#allocation2 + $0x88] sm:$0xff]   ;;  %v2811_v39 = vld [vmem:[#allocation2 + $0x7c] sm:$0xf] }
 0x190   : > { %7003 = vmatprep.mubr.msk.bf16.mxu1 %vm976_vm8, %v6453_v41  ;;  %v2421_v54 = vsel %vm8683_vm10, %v2412_v40, %v2420_v17  ;;  %v2422_v48 = vrot.slane %v2420_v17, 4  ;;  %v2452_v47 = vshrl.u32 %v2031_v43, 16  ;;  %v2444_v51 = vrot.slane %v2442_v3, 5  ;;  %v2810_v32 = vld [vmem:[#allocation2 + $0x78] sm:$0xc] }
 0x191   : > { %v2447_v49 = vrot.slane %v2445_v42, 6  ;;  %v2455_v35 = vshll.u32 %v2031_v43, 16  ;;  %v2461_v12 = vshrl.u32 %v2032_v62, 16  ;;  %v2439_v16 = vor.u32 %v2438_v50, %v2435_v30  ;;  %v7486_v43 = vld [vmem:[#allocation2 + $0x94] sm:$0xff]  }
 0x192   : > { %v2431_v63 = vsel %vm8683_vm10, %v2422_v48, %v2430_v55  ;;  %v2454_v45 = vrot.slane %v2452_v47, 5  ;;  %v2464_v58 = vshll.u32 %v2032_v62, 16  ;;  %v2470_v20 = vshrl.u32 %v2033_v18, 16  ;;  %v2812_v62 = vld [vmem:[#allocation2 + $0x80] sm:$0x3] }
 0x193   : > { %v6454_v21 = vcombine.low %v2421_v54, %v2431_v63  ;;  %v2448_v22 = vor.u32 %v2447_v49, %v2444_v51  ;;  %v2457_v29 = vrot.slane %v2455_v35, 6  ;;  %v2463_v33 = vrot.slane %v2461_v12, 5  ;;  %v2814_v49 = vld [vmem:[#allocation2 + $0x88] sm:$0xf] }
 0x194   : > { %v2440_v1 = vrot.slane %v2439_v16, 4  ;;  %v2466_v0 = vrot.slane %v2464_v58, 6  ;;  %v2473_v61 = vshll.u32 %v2033_v18, 16  ;;  %v2480_v13 = vshrl.u32 %v2034_v26, 16  ;;  %7166 = vmatmul.mubr.msk.bf16.gmra.mrb[16].mxu0 %vm976_vm8, %v7483_v34  ;;  %v2817_v18 = vld [vmem:[#allocation2 + $0x94] sm:$0xf] }
 0x195   : > { %7004 = vmatmul.mubr.msk.bf16.gmra.mrb[24].mxu1 %vm976_vm8, %v6454_v21  ;;  %v2450_v2 = vrot.slane %v2448_v22, 4  ;;  %v2458_v31 = vor.u32 %v2457_v29, %v2454_v45  ;;  %v2483_v7 = vshll.u32 %v2034_v26, 16  ;;  %v2472_v52 = vrot.slane %v2470_v20, 5  ;;  %7169 = vmatprep.mubr.msk.bf16.mxu0 %vm976_vm8, %v7484_v37  ;;  %v2813_v26 = vld [vmem:[#allocation2 + $0x84] sm:$0xc] }
 0x196   : > { %v2449_v4 = vsel %vm8683_vm10, %v2440_v1, %v2448_v22  ;;  %v2467_v23 = vor.u32 %v2466_v0, %v2463_v33  ;;  %v2475_v5 = vrot.slane %v2473_v61, 6  ;;  %v2482_v6 = vrot.slane %v2480_v13, 5  ;;  %v2815_v58 = vld [vmem:[#allocation2 + $0x8c] sm:$0x3]  ;;  %v7487_v37 = vld [vmem:[#allocation2 + $0xa0] sm:$0xff]  }
 0x197   : > { %v2459_v44 = vsel %vm8683_vm10, %v2450_v2, %v2458_v31  ;;  %v2485_v25 = vrot.slane %v2483_v7, 6  ;;  %v6482_v11 = vrot.slane %v2804_v8, 10  ;;  %v2936_v56 = vrot.slane %v2805_v15, 6  ;;  %v2816_v22 = vld [vmem:[#allocation2 + $0x90] sm:$0xc] }
 0x198   : > { %v6455_v53 = vcombine.low %v2449_v4, %v2459_v44  ;;  %v2468_v9 = vrot.slane %v2467_v23, 4  ;;  %v2476_v38 = vor.u32 %v2475_v5, %v2472_v52  ;;  %v2939_v60 = vrot.slane %v2806_v28, 6  ;;  %v2818_v29 = vld [vmem:[#allocation2 + $0x98] sm:$0x3]  ;;  %v7488_v33 = vld [vmem:[#allocation2 + $0xac] sm:$0xff]  }
 0x199   : > { %v2486_v24 = vor.u32 %v2485_v25, %v2482_v6  ;;  %v2943_v27 = vrot.slane %v2808_v19, 6  ;;  %v2937_v40 = vsel %vm7729_vm4, %v6482_v11, %v2936_v56  ;;  %v2938_v17 = vrot.slane %v2936_v56, 4  ;;  %v2820_v7 = vld [vmem:[#allocation2 + $0xa0] sm:$0xf]  ;;  %v2823_v15 = vld [vmem:[#allocation2 + $0xac] sm:$0xf] }
 0x19a   : > { %7007 = vmatprep.mubr.msk.bf16.mxu1 %vm976_vm8, %v6455_v53  ;;  %v2477_v57 = vsel %vm8683_vm10, %v2468_v9, %v2476_v38  ;;  %v2478_v41 = vrot.slane %v2476_v38, 4  ;;  %v6483_v55 = vrot.slane %v2807_v36, 10  ;;  %v2946_v54 = vrot.slane %v2809_v46, 6  ;;  %v2819_v19 = vld [vmem:[#allocation2 + $0x9c] sm:$0xc] }
 0x19b   : > { %v2945_v30 = vrot.slane %v2943_v27, 4  ;;  %v2940_v42 = vsel %vm7729_vm4, %v2938_v17, %v2939_v60  ;;  %v2950_v48 = vrot.slane %v2811_v39, 6  ;;  %v6484_v34 = vrot.slane %v2810_v32, 10  ;;  %v2821_v44 = vld [vmem:[#allocation2 + $0xa4] sm:$0x3]  ;;  %v7489_v6 = vld [vmem:[#allocation2 + $0xb8] sm:$0xff]  }
 0x19c   : > { %v2487_v3 = vsel %vm8683_vm10, %v2478_v41, %v2486_v24  ;;  %v6498_v47 = vcombine.low %v2937_v40, %v2940_v42  ;;  %7170 = vmatmul.mubr.msk.bf16.gmra.mrb[20].mxu0 %vm976_vm8, %v7485_v59  ;;  %v2953_v51 = vrot.slane %v2812_v62, 6  ;;  %v2944_v10 = vsel %vm7729_vm4, %v6483_v55, %v2943_v27  ;;  %v2822_v11 = vld [vmem:[#allocation2 + $0xa8] sm:$0xc]  ;;  %v2824_v53 = vld [vmem:[#allocation2 + $0xb0] sm:$0x3] }
 0x19d   : > { %v6456_v50 = vcombine.low %v2477_v57, %v2487_v3  ;;  %v2952_v35 = vrot.slane %v2950_v48, 4  ;;  %7173 = vmatprep.mubr.msk.bf16.mxu0 %vm976_vm8, %v7486_v43  ;;  %v2947_v12 = vsel %vm7729_vm4, %v2945_v30, %v2946_v54  ;;  %v2957_v63 = vrot.slane %v2814_v49, 6  ;;  %v2826_v59 = vld [vmem:[#allocation2 + $0xb8] sm:$0xf]  ;;  %v2825_v17 = vld [vmem:[#allocation2 + $0xb4] sm:$0xc] }
 0x19e   : > { %v2951_v16 = vsel %vm7729_vm4, %v6484_v34, %v2950_v48  ;;  %v2964_v21 = vrot.slane %v2817_v18, 6  ;;  %v6499_v1 = vcombine.low %v2944_v10, %v2947_v12  ;;  %v6485_v20 = vrot.slane %v2813_v26, 10  ;;  %v2827_v32 = vld [vmem:[#allocation2 + $0xbc] sm:$0x3] }
 0x19f   : > { %7008 = vmatmul.mubr.msk.bf16.gmra.mrb[28].mxu1 %vm976_vm8, %v6456_v50  ;;  %v2954_v45 = vsel %vm7729_vm4, %v2952_v35, %v2953_v51  ;;  %v2959_v61 = vrot.slane %v2957_v63, 4  ;;  %v2960_v8 = vrot.slane %v2815_v58, 6  ;;  %v6486_v2 = vrot.slane %v2816_v22, 10 }
 0x1a0   : > { %7029 = vmatprep.mubr.msk.bf16.mxu1 %vm976_vm8, %v6498_v47  ;;  %v6500_v0 = vcombine.low %v2951_v16, %v2954_v45  ;;  %v2966_v31 = vrot.slane %v2964_v21, 4  ;;  %v2967_v13 = vrot.slane %v2818_v29, 6  ;;  %v2958_v4 = vsel %vm7729_vm4, %v6485_v20, %v2957_v63 }
 0x1a1   : > { %v2961_v23 = vsel %vm7729_vm4, %v2959_v61, %v2960_v8  ;;  %v2971_v52 = vrot.slane %v2820_v7, 6  ;;  %v2965_v5 = vsel %vm7729_vm4, %v6486_v2, %v2964_v21  ;;  %v2978_v25 = vrot.slane %v2823_v15, 6  ;;  %v8870_v21 = vld [vmem:[%s9550_s2] sm:$0x7] }
 0x1a2   : > { %v2968_v28 = vsel %vm7729_vm4, %v2966_v31, %v2967_v13  ;;  %v6501_v9 = vcombine.low %v2958_v4, %v2961_v23  ;;  %v6487_v56 = vrot.slane %v2819_v19, 10  ;;  %v2974_v46 = vrot.slane %v2821_v44, 6 }
 0x1a3   : > { %v6502_v38 = vcombine.low %v2965_v5, %v2968_v28  ;;  %v2973_v36 = vrot.slane %v2971_v52, 4  ;;  %v6488_v24 = vrot.slane %v2822_v11, 10  ;;  %v2980_v60 = vrot.slane %v2978_v25, 4 }
 0x1a4   : > { %7174 = vmatmul.mubr.msk.bf16.gmra.mrb[24].mxu0 %vm976_vm8, %v7487_v37  ;;  %v2981_v27 = vrot.slane %v2824_v53, 6  ;;  %v2972_v39 = vsel %vm7729_vm4, %v6487_v56, %v2971_v52  ;;  %v2985_v57 = vrot.slane %v2826_v59, 6  ;;  %v6489_v30 = vrot.slane %v2825_v17, 10 }
 0x1a5   : > { %7177 = vmatprep.mubr.msk.bf16.mxu0 %vm976_vm8, %v7488_v33  ;;  %v2975_v43 = vsel %vm7729_vm4, %v2973_v36, %v2974_v46  ;;  %v2979_v41 = vsel %vm7729_vm4, %v6488_v24, %v2978_v25  ;;  %v2988_v42 = vrot.slane %v2827_v32, 6  ;;  %v5636_v45 = vlaneseq }
 0x1a6   : > { %v2982_v40 = vsel %vm7729_vm4, %v2980_v60, %v2981_v27  ;;  %v6503_v62 = vcombine.low %v2972_v39, %v2975_v43  ;;  %v2987_v3 = vrot.slane %v2985_v57, 4  ;;  %v2986_v54 = vsel %vm7729_vm4, %v6489_v30, %v2985_v57 }
 0x1a7   : > { %7030 = vmatmul.mubr.msk.bf16.vlgmr.msra.gmra.mrb[16].mxu1 %vm976_vm8, %v6499_v1  ;;  %v6504_v55 = vcombine.low %v2979_v41, %v2982_v40  ;;  %v8864_v14 = vshrl.u32 %v5636_v45, 7  ;;  %vm6224_vm12 = vcmask 64512  }
 0x1a8   : > { %7033 = vmatprep.mubr.msk.bf16.mxu1 %vm976_vm8, %v6500_v0  ;;  %v2989_v48 = vsel %vm7729_vm4, %v2987_v3, %v2988_v42 }
 0x1a9   : > { %v6505_v50 = vcombine.low %v2986_v54, %v2989_v48  ;;  %v5638_v37 = vsub.s32 0, %v8864_v14 }
 0x1ab   : > { %v8873_v22 = vrot.slane %v8870_v21, %v5638_v37 }
 0x1ac   : > { %7178 = vmatmul.mubr.msk.bf16.gmra.mrb[28].mxu0 %vm976_vm8, %v7489_v6 }
 0x1af   : > { %7034 = vmatmul.mubr.msk.bf16.gmra.mrb[20].mxu1 %vm976_vm8, %v6501_v9 }
 0x1b0   : > { %7037 = vmatprep.mubr.msk.bf16.mxu1 %vm976_vm8, %v6502_v38 }
 0x1b7   : > { %7038 = vmatmul.mubr.msk.bf16.gmra.mrb[24].mxu1 %vm976_vm8, %v6503_v62 }
 0x1b8   : > { %7041 = vmatprep.mubr.msk.bf16.mxu1 %vm976_vm8, %v6504_v55 }
 0x1bf   : > { %7042 = vmatmul.mubr.msk.bf16.gmra.mrb[28].mxu1 %vm976_vm8, %v6505_v50 }
 0x217   : > { %v6981_v47 = vpop.f32.mrb[0].mxu1 }
 0x218   : > { %v2621_v34 = vpop.f32.mrb[1].mxu1 }
 0x219   : > { %v6982_v51 = vpop.f32.mrb[2].mxu1 }
 0x21a   : > { %v2624_v49 = vpop.f32.mrb[3].mxu1 }
 0x228   : > { %v6985_v35 = vpop.f32.mrb[4].mxu1 }
 0x229   : > { %v2637_v18 = vpop.f32.mrb[5].mxu1 }
 0x22a   : > { %v6986_v10 = vpop.f32.mrb[6].mxu1 }
 0x22b   : > { %v2640_v12 = vpop.f32.mrb[7].mxu1 }
 0x23a   : > { %v6989_v63 = vpop.f32.mrb[8].mxu1 }
 0x23b   : > { %v2653_v16 = vpop.f32.mrb[9].mxu1 }
 0x23c   : > { %v8860_v26 = vpop.f32.mrb[10].mxu1 }
 0x23d   : > { %v8862_v58 = vpop.f32.mrb[11].mxu1 }
 0x247   : > { %v7151_v29 = vpop.f32.mrb[0].mxu0 }
 0x248   : > { %v7183_v33 = vadd.f32 %v7151_v29, %v6981_v47  ;;  %v5476_v1 = vpop.f32.mrb[1].mxu0 }
 0x249   : > { %v7184_v20 = vadd.f32 %v5476_v1, %v2621_v34  ;;  %v7152_v61 = vpop.f32.mrb[2].mxu0 }
 0x24a   : > { %v8875_v0 = vpop.f32.mrb[12].mxu1  ;;  %v8880_v2 = vadd.f32 %v7183_v33, %v8873_v22  ;;  %v7185_v31 = vadd.f32 %v7152_v61, %v6982_v51  ;;  %v5479_v13 = vpop.f32.mrb[3].mxu0 }
 0x24b   : > { %v8877_v8 = vpop.f32.mrb[13].mxu1  ;;  %v8885_v15 = vadd.f32 %v7184_v20, %v8873_v22  ;;  %v7186_v4 = vadd.f32 %v5479_v13, %v2624_v49 }
 0x24c   : > { %v8882_v7 = vpop.f32.mrb[14].mxu1  ;;  %v5674_v52 = vmin.f32 %v8880_v2, 20.0  ;;  %v8891_v5 = vadd.f32 %v7185_v31, %v8873_v22  ;;  %vm5994_vm4 = vcmp.gt.f32.partialorder %v8880_v2, 20.0 }
 0x24d   : > { %v8887_v23 = vpop.f32.mrb[15].mxu1  ;;  %v5672_v28 = vmin.f32 %v8885_v15, 20.0  ;;  %v8895_v19 = vadd.f32 %v7186_v4, %v8873_v22  ;;  %vm5992_vm8 = vcmp.gt.f32.partialorder %v8885_v15, 20.0 }
 0x24e   : > { %v5708_v44 = vmul.f32 1.442695, %v5674_v52  ;;  %v5675_v6 = vmin.f32 %v8891_v5, 20.0  ;;  %vm5995_vm11 = vcmp.gt.f32.partialorder %v8891_v5, 20.0 }
 0x24f   : > { %v5704_v25 = vmul.f32 1.442695, %v5672_v28  ;;  %v5673_v11 = vmin.f32 %v8895_v19, 20.0  ;;  %v7155_v53 = vpop.f32.mrb[4].mxu0  ;;  %vm5993_vm13 = vcmp.gt.f32.partialorder %v8895_v19, 20.0 }
 0x250   : > { %7490 = vpow2.f32 %v5708_v44  ;;  %v5710_v9 = vmul.f32 1.442695, %v5675_v6  ;;  %v7187_v38 = vadd.f32 %v7155_v53, %v6985_v35  ;;  %v5492_v56 = vpop.f32.mrb[5].mxu0  ;;  %v6154_v53 = vsub.s32 1, %v8864_v14 }
 0x251   : > { %7492 = vpow2.f32 %v5704_v25  ;;  %v5706_v36 = vmul.f32 1.442695, %v5673_v11  ;;  %v7188_v46 = vadd.f32 %v5492_v56, %v2637_v18  ;;  %v7156_v24 = vpop.f32.mrb[6].mxu0 }
 0x252   : > { %7494 = vpow2.f32 %v5710_v9  ;;  %v8900_v60 = vadd.f32 %v7187_v38, %v8873_v22  ;;  %v7189_v27 = vadd.f32 %v7156_v24, %v6986_v10  ;;  %v5495_v59 = vpop.f32.mrb[7].mxu0 }
 0x253   : > { %7496 = vpow2.f32 %v5706_v36  ;;  %v8903_v39 = vadd.f32 %v7188_v46, %v8873_v22  ;;  %v7190_v43 = vadd.f32 %v5495_v59, %v2640_v12  ;;  %v6190_v46 = vsub.s32 2, %v8864_v14 }
 0x254   : > { %v5678_v57 = vmin.f32 %v8900_v60, 20.0  ;;  %v8907_v41 = vadd.f32 %v7189_v27, %v8873_v22  ;;  %vm5998_vm14 = vcmp.gt.f32.partialorder %v8900_v60, 20.0 }
 0x255   : > { %v5676_v40 = vmin.f32 %v8903_v39, 20.0  ;;  %v8911_v17 = vadd.f32 %v7190_v43, %v8873_v22  ;;  %vm5996_vm15 = vcmp.gt.f32.partialorder %v8903_v39, 20.0 }
 0x256   : > { %v5716_v32 = vmul.f32 1.442695, %v5678_v57  ;;  %v5679_v62 = vmin.f32 %v8907_v41, 20.0  ;;  %vm5999_vm1 = vcmp.gt.f32.partialorder %v8907_v41, 20.0 }
 0x257   : > { %v5712_v55 = vmul.f32 1.442695, %v5676_v40  ;;  %v5677_v30 = vmin.f32 %v8911_v17, 20.0  ;;  %v7159_v3 = vpop.f32.mrb[8].mxu0  ;;  %vm5997_vm2 = vcmp.gt.f32.partialorder %v8911_v17, 20.0 }
 0x258   : > { %7498 = vpow2.f32 %v5716_v32  ;;  %v5718_v42 = vmul.f32 1.442695, %v5679_v62  ;;  %v7191_v54 = vadd.f32 %v7159_v3, %v6989_v63  ;;  %v5508_v48 = vpop.f32.mrb[9].mxu0 }
 0x259   : > { %7500 = vpow2.f32 %v5712_v55  ;;  %v5714_v50 = vmul.f32 1.442695, %v5677_v30  ;;  %v7192_v47 = vadd.f32 %v5508_v48, %v2653_v16  ;;  %v7160_v34 = vpop.f32.mrb[10].mxu0 }
 0x25a   : > { %v7491_v51 = vpop.eup %7490  ;;  %7502 = vpow2.f32 %v5718_v42  ;;  %v8916_v49 = vadd.f32 %v7191_v54, %v8873_v22  ;;  %v7193_v35 = vadd.f32 %v7160_v34, %v8860_v26  ;;  %v5511_v18 = vpop.f32.mrb[11].mxu0  ;;  %v8954_v42 = vrot.slane %v8870_v21, %v6154_v53 }
 0x25b   : > { %v7493_v10 = vpop.eup %7492  ;;  %v5770_v12 = vadd.f32 1.0, %v7491_v51  ;;  %7504 = vpow2.f32 %v5714_v50  ;;  %v8920_v45 = vadd.f32 %v7192_v47, %v8873_v22  ;;  %v7194_v63 = vadd.f32 %v5511_v18, %v8862_v58 }
 0x25c   : > { %v7495_v37 = vpop.eup %7494  ;;  %v5768_v29 = vadd.f32 1.0, %v7493_v10  ;;  %v5682_v16 = vmin.f32 %v8916_v49, 20.0  ;;  %v8925_v33 = vadd.f32 %v7193_v35, %v8873_v22  ;;  %v8960_v51 = vrot.slane %v8870_v21, %v6190_v46 }
 0x25d   : > { %v7497_v1 = vpop.eup %7496  ;;  %v5802_v20 = vmul.f32 %v5770_v12, %v5770_v12  ;;  %v5771_v61 = vadd.f32 1.0, %v7495_v37  ;;  %v5680_v26 = vmin.f32 %v8920_v45, 20.0  ;;  %v8945_v40 = vadd.f32 %v7194_v63, %v8873_v22 }
 0x25e   : > { %v5800_v31 = vmul.f32 %v5768_v29, %v5768_v29  ;;  %v5769_v13 = vadd.f32 1.0, %v7497_v1  ;;  %v5724_v4 = vmul.f32 1.442695, %v5682_v16  ;;  %v5683_v52 = vmin.f32 %v8925_v33, 20.0 }
 0x25f   : > { %v8929_v28 = vadd.f32 1.0, %v5802_v20  ;;  %v5803_v58 = vmul.f32 %v5771_v61, %v5771_v61  ;;  %v7163_v44 = vpop.f32.mrb[12].mxu0  ;;  %v5720_v38 = vmul.f32 1.442695, %v5680_v26  ;;  %v8957_v34 = vadd.f32 -1.0, %v5802_v20 }
 0x260   : > { %v8931_v6 = vadd.f32 1.0, %v5800_v31  ;;  %v5801_v25 = vmul.f32 %v5769_v13, %v5769_v13  ;;  %7506 = vpow2.f32 %v5724_v4  ;;  %v5524_v11 = vpop.f32.mrb[13].mxu0  ;;  %v5726_v27 = vmul.f32 1.442695, %v5683_v52 }
 0x261   : > { %7508 = vrcp.f32 %v8929_v28  ;;  %v8935_v9 = vadd.f32 1.0, %v5803_v58  ;;  %v7164_v56 = vpop.f32.mrb[14].mxu0  ;;  %v7195_v32 = vadd.f32 %v7163_v44, %v8875_v0  ;;  %v7196_v55 = vadd.f32 %v5524_v11, %v8877_v8 }
 0x262   : > { %v7499_v36 = vpop.eup %7498  ;;  %7510 = vrcp.f32 %v8931_v6  ;;  %v8939_v24 = vadd.f32 1.0, %v5801_v25  ;;  %v8941_v59 = vpop.f32.mrb[15].mxu0  ;;  %v8951_v30 = vadd.f32 %v7164_v56, %v8882_v7  ;;  %v5681_v0 = vmin.f32 %v8945_v40, 20.0 }
 0x263   : > { %v7501_v43 = vpop.eup %7500  ;;  %7512 = vrcp.f32 %v8935_v9  ;;  %v5774_v57 = vadd.f32 1.0, %v7499_v36  ;;  %v8966_v18 = vadd.f32 -1.0, %v5800_v31  ;;  %v8971_v63 = vadd.f32 %v7195_v32, %v8873_v22 }
 0x264   : > { %v7503_v62 = vpop.eup %7502  ;;  %7514 = vrcp.f32 %v8939_v24  ;;  %v5772_v14 = vadd.f32 1.0, %v7501_v43  ;;  %v8975_v29 = vadd.f32 -1.0, %v5803_v58  ;;  %v8981_v16 = vadd.f32 %v7196_v55, %v8873_v22 }
 0x265   : > { %v7505_v3 = vpop.eup %7504  ;;  %v5806_v54 = vmul.f32 %v5774_v57, %v5774_v57  ;;  %v5775_v48 = vadd.f32 1.0, %v7503_v62  ;;  %7516 = vpow2.f32 %v5720_v38  ;;  %v5722_v26 = vmul.f32 1.442695, %v5681_v0 }
 0x266   : > { %v5804_v50 = vmul.f32 %v5772_v14, %v5772_v14  ;;  %v5773_v47 = vadd.f32 1.0, %v7505_v3  ;;  %7518 = vpow2.f32 %v5726_v27  ;;  %v5686_v31 = vmin.f32 %v8971_v63, 20.0 }
 0x267   : > { %v8962_v8 = vadd.f32 1.0, %v5806_v54  ;;  %v5807_v7 = vmul.f32 %v5775_v48, %v5775_v48  ;;  %v8964_v35 = vpop.f32.mrb[16].mxu0  ;;  %v6687_v52 = vadd.f32 -1.0, %v5801_v25  ;;  %v5684_v44 = vmin.f32 %v8981_v16, 20.0 }
 0x268   : > { %v8968_v10 = vadd.f32 1.0, %v5804_v50  ;;  %v5805_v12 = vmul.f32 %v5773_v47, %v5773_v47  ;;  %v8973_v37 = vpop.f32.mrb[17].mxu0  ;;  %v8994_v38 = vadd.f32 -1.0, %v5806_v54  ;;  %v8996_v56 = vadd.f32 -1.0, %v5804_v50 }
 0x269   : > { %7520 = vrcp.f32 %v8962_v8  ;;  %v8978_v21 = vadd.f32 1.0, %v5807_v7  ;;  %v8983_v1 = vpop.f32.mrb[18].mxu0  ;;  %v5732_v36 = vmul.f32 1.442695, %v5686_v31  ;;  %v9000_v43 = vadd.f32 -1.0, %v5807_v7 }
 0x26a   : > { %v7507_v20 = vpop.eup %7506  ;;  %7522 = vrcp.f32 %v8968_v10  ;;  %v8986_v61 = vadd.f32 1.0, %v5805_v12  ;;  %v8989_v13 = vpop.f32.mrb[19].mxu0  ;;  %v9005_v62 = vadd.f32 -1.0, %v5805_v12  ;;  %v5728_v54 = vmul.f32 1.442695, %v5684_v44 }
 0x26b   : > { %v7509_v4 = vpop.eup %7508  ;;  %7524 = vrcp.f32 %v8978_v21  ;;  %v5778_v58 = vadd.f32 1.0, %v7507_v20  ;;  %v9024_v44 = vadd.f32 %v8951_v30, %v8873_v22  ;;  %vm6002_vm3 = vcmp.gt.f32.partialorder %v8916_v49, 20.0 }
 0x26c   : > { %v7511_v11 = vpop.eup %7510  ;;  %v5898_v53 = vmul.f32 %v7509_v4, %v8929_v28  ;;  %7526 = vrcp.f32 %v8986_v61  ;;  %vm6000_vm5 = vcmp.gt.f32.partialorder %v8920_v45, 20.0  ;;  %vm6003_vm6 = vcmp.gt.f32.partialorder %v8925_v33, 20.0 }
 0x26d   : > { %v7513_v46 = vpop.eup %7512  ;;  %v5896_v27 = vmul.f32 %v7511_v11, %v8931_v6  ;;  %v5810_v25 = vmul.f32 %v5778_v58, %v5778_v58  ;;  %7528 = vpow2.f32 %v5722_v26  ;;  %vm6001_vm7 = vcmp.gt.f32.partialorder %v8945_v40, 20.0 }
 0x26e   : > { %v7515_v57 = vpop.eup %7514  ;;  %v5930_v32 = vsub.f32 2.0, %v5898_v53  ;;  %v5899_v28 = vmul.f32 %v7513_v46, %v8935_v9  ;;  %7530 = vpow2.f32 %v5732_v36  ;;  %vm6006_vm0 = vcmp.gt.f32.partialorder %v8971_v63, 20.0 }
 0x26f   : > { %v7517_v14 = vpop.eup %7516  ;;  %v5928_v55 = vsub.f32 2.0, %v5896_v27  ;;  %v5897_v6 = vmul.f32 %v7515_v57, %v8939_v24  ;;  %v9009_v3 = vadd.f32 1.0, %v5810_v25  ;;  %v9011_v48 = vpop.f32.mrb[20].mxu0  ;;  %vm6004_vm9 = vcmp.gt.f32.partialorder %v8981_v16, 20.0 }
 0x270   : > { %v7519_v50 = vpop.eup %7518  ;;  %v5962_v47 = vmul.f32 %v7509_v4, %v5930_v32  ;;  %v5931_v0 = vsub.f32 2.0, %v5899_v28  ;;  %v5776_v9 = vadd.f32 1.0, %v7517_v14  ;;  %v9014_v7 = vpop.f32.mrb[21].mxu0  ;;  %v9029_v32 = vadd.f32 -1.0, %v5810_v25 }
 0x271   : > { %v5960_v12 = vmul.f32 %v7511_v11, %v5928_v55  ;;  %v5929_v20 = vsub.f32 2.0, %v5897_v6  ;;  %7532 = vrcp.f32 %v9009_v3  ;;  %v5779_v24 = vadd.f32 1.0, %v7519_v50  ;;  %v9017_v26 = vpop.f32.mrb[22].mxu0 }
 0x272   : > { %v6058_v31 = vmul.f32 %v8957_v34, %v5962_v47  ;;  %v5963_v58 = vmul.f32 %v7513_v46, %v5931_v0  ;;  %v9020_v4 = vmul.f32 %v5776_v9, %v5776_v9  ;;  %v9026_v53 = vpop.f32.mrb[23].mxu0  ;;  %7534 = vpow2.f32 %v5728_v54 }
 0x273   : > { %v7521_v36 = vpop.eup %7520  ;;  %v6056_v11 = vmul.f32 %v8966_v18, %v5960_v12  ;;  %v5961_v27 = vmul.f32 %v7515_v57, %v5929_v20  ;;  %v9034_v55 = vmul.f32 %v5779_v24, %v5779_v24  ;;  %vm6007_vm10 = vcmp.gt.f32.partialorder %v9024_v44, 20.0 }
 0x274   : > { %v7523_v28 = vpop.eup %7522  ;;  %v6090_v34 = vmul.f32 %v6058_v31, %v8880_v2  ;;  %v6059_v46 = vmul.f32 %v8975_v29, %v5963_v58  ;;  %v5902_v14 = vmul.f32 %v7521_v36, %v8962_v8  ;;  %v9041_v25 = vadd.f32 1.0, %v9020_v4 }
 0x275   : > { %v7525_v30 = vpop.eup %7524  ;;  %v6088_v6 = vmul.f32 %v6056_v11, %v8885_v15  ;;  %v6057_v50 = vmul.f32 %v6687_v52, %v5961_v27  ;;  %v5900_v18 = vmul.f32 %v7523_v28, %v8968_v10 }
 0x276   : > { %v6122_v29 = vsel %vm5994_vm4, %v8880_v2, %v6090_v34  ;;  %v6091_v8 = vmul.f32 %v6059_v46, %v8891_v5  ;;  %v5934_v57 = vsub.f32 2.0, %v5902_v14  ;;  %v5903_v54 = vmul.f32 %v7525_v30, %v8978_v21  ;;  %v7527_v47 = vpop.eup %7526 }
 0x277   : > { %v6158_v52 = vmul.f32 %v8954_v42, %v6122_v29  ;;  %v6120_v10 = vsel %vm5992_vm8, %v8885_v15, %v6088_v6  ;;  %v6089_v0 = vmul.f32 %v6057_v50, %v8895_v19  ;;  %v5932_v9 = vsub.f32 2.0, %v5900_v18  ;;  %v9055_v2 = vpop.f32.mrb[24].mxu0  ;;  %v7529_v12 = vpop.eup %7528 }
 0x278   : > { %v6156_v21 = vmul.f32 %v8954_v42, %v6120_v10  ;;  %v6123_v20 = vsel %vm5995_vm11, %v8891_v5, %v6091_v8  ;;  %v5966_v15 = vmul.f32 %v7521_v36, %v5934_v57  ;;  %v5935_v24 = vsub.f32 2.0, %v5903_v54  ;;  %v9066_v31 = vpop.f32.mrb[25].mxu0  ;;  %v7531_v5 = vpop.eup %7530 }
 0x279   : > { %v6194_v58 = vadd.f32 %v8960_v51, %v6158_v52  ;;  %v6159_v11 = vmul.f32 %v8954_v42, %v6123_v20  ;;  %v6121_v27 = vsel %vm5993_vm13, %v8895_v19, %v6089_v0  ;;  %v5964_v34 = vmul.f32 %v7523_v28, %v5932_v9  ;;  %v9075_v14 = vpop.f32.mrb[26].mxu0 }
 0x27a   : > { %v9073_v46 = vpop.f32.mrb[16].mxu1  ;;  %v6192_v36 = vadd.f32 %v8960_v51, %v6156_v21  ;;  %v6157_v6 = vmul.f32 %v8954_v42, %v6121_v27  ;;  %v6062_v50 = vmul.f32 %v8994_v38, %v5966_v15  ;;  %v5967_v18 = vmul.f32 %v7525_v30, %v5935_v24  ;;  %v9082_v8 = vpop.f32.mrb[27].mxu0 }
 0x27b   : > { %v9080_v29 = vpop.f32.mrb[17].mxu1  ;;  %v7533_v19 = vpop.eup %7532  ;;  %6227 = vst.msk [vmem:[%s9060_s20 + $0x10] sm:$0xff] %vm6224_vm12, %v6194_v58  ;;  %v6195_v28 = vadd.f32 %v8960_v51, %v6159_v11  ;;  %v6060_v57 = vmul.f32 %v8996_v56, %v5964_v34  ;;  %v5901_v54 = vmul.f32 %v7527_v47, %v8986_v61  ;;  %7536 = vrcp.f32 %v9041_v25 }
 0x27c   : > { %v9090_v52 = vpop.f32.mrb[18].mxu1  ;;  %6225 = vst.msk [vmem:[%s9060_s20] sm:$0xff] %vm6224_vm12, %v6192_v36  ;;  %v6193_v38 = vadd.f32 %v8960_v51, %v6157_v6  ;;  %v6094_v30 = vmul.f32 %v6062_v50, %v8900_v60  ;;  %v6063_v10 = vmul.f32 %v9000_v43, %v5967_v18  ;;  %v5906_v0 = vmul.f32 %v7533_v19, %v9009_v3  ;;  %v7535_v56 = vpop.eup %7534 }
 0x27d   : > { %v9098_v9 = vpop.f32.mrb[19].mxu1  ;;  %6228 = vst.msk [vmem:[%s9060_s20 + $0x18] sm:$0xff] %vm6224_vm12, %v6195_v28  ;;  %v6092_v61 = vmul.f32 %v6060_v57, %v8903_v39  ;;  %v5933_v21 = vsub.f32 2.0, %v5901_v54  ;;  %v9104_v20 = vadd.f32 1.0, %v9034_v55  ;;  %v5687_v15 = vmin.f32 %v9024_v44, 20.0 }
 0x27e   : > { %6226 = vst.msk [vmem:[%s9060_s20 + $0x8] sm:$0xff] %vm6224_vm12, %v6193_v38  ;;  %v6126_v43 = vsel %vm5998_vm14, %v8900_v60, %v6094_v30  ;;  %v6095_v3 = vmul.f32 %v6063_v10, %v8907_v41  ;;  %v5938_v24 = vsub.f32 2.0, %v5906_v0  ;;  %v5777_v58 = vadd.f32 1.0, %v7529_v12 }
 0x27f   : > { %v6162_v11 = vmul.f32 %v8954_v42, %v6126_v43  ;;  %v6124_v27 = vsel %vm5996_vm15, %v8903_v39, %v6092_v61  ;;  %v5965_v34 = vmul.f32 %v7527_v47, %v5933_v21  ;;  %7538 = vrcp.f32 %v9104_v20  ;;  %v9118_v36 = vpop.f32.mrb[28].mxu0 }
 0x280   : > { %v6160_v6 = vmul.f32 %v8954_v42, %v6124_v27  ;;  %v6127_v60 = vsel %vm5999_vm1, %v8907_v41, %v6095_v3  ;;  %v5970_v50 = vmul.f32 %v7533_v19, %v5938_v24  ;;  %v9124_v12 = vmul.f32 %v5777_v58, %v5777_v58  ;;  %v9126_v18 = vpop.f32.mrb[29].mxu0 }
 0x281   : > { %v6198_v28 = vadd.f32 %v8960_v51, %v6162_v11  ;;  %v6163_v39 = vmul.f32 %v8954_v42, %v6127_v60  ;;  %v6061_v47 = vmul.f32 %v9005_v62, %v5965_v34  ;;  %v5782_v57 = vadd.f32 1.0, %v7531_v5  ;;  %v9131_v38 = vpop.f32.mrb[30].mxu0 }
 0x282   : > { %v7035_v54 = vpop.f32.mrb[20].mxu1  ;;  %v6196_v30 = vadd.f32 %v8960_v51, %v6160_v6  ;;  %v6066_v41 = vmul.f32 %v9029_v32, %v5970_v50  ;;  %v9137_v19 = vadd.f32 1.0, %v9124_v12  ;;  %v9141_v0 = vpop.f32.mrb[31].mxu0  ;;  %v5780_v21 = vadd.f32 1.0, %v7535_v56 }
 0x283   : > { %v9139_v10 = vpop.f32.mrb[21].mxu1  ;;  %6231 = vst.msk [vmem:[%s9060_s20 + $0x30] sm:$0xff] %vm6224_vm12, %v6198_v28  ;;  %v6199_v62 = vadd.f32 %v8960_v51, %v6163_v39  ;;  %v6093_v5 = vmul.f32 %v6061_v47, %v8911_v17  ;;  %v9147_v61 = vmul.f32 %v5782_v57, %v5782_v57  ;;  %v5734_v3 = vmul.f32 1.442695, %v5687_v15 }
 0x284   : > { %v9149_v43 = vpop.f32.mrb[22].mxu1  ;;  %6229 = vst.msk [vmem:[%s9060_s20 + $0x20] sm:$0xff] %vm6224_vm12, %v6196_v30  ;;  %v6098_v32 = vmul.f32 %v6066_v41, %v8916_v49  ;;  %7540 = vrcp.f32 %v9137_v19  ;;  %v7198_v24 = vadd.f32 %v8941_v59, %v8887_v23  ;;  %v9168_v34 = vmul.f32 %v5780_v21, %v5780_v21 }
 0x285   : > { %v9157_v58 = vpop.f32.mrb[23].mxu1  ;;  %v7537_v11 = vpop.eup %7536  ;;  %6232 = vst.msk [vmem:[%s9060_s20 + $0x38] sm:$0xff] %vm6224_vm12, %v6199_v62  ;;  %v6125_v56 = vsel %vm5997_vm2, %v8911_v17, %v6093_v5  ;;  %v9166_v27 = vadd.f32 1.0, %v9147_v61  ;;  %7542 = vpow2.f32 %v5734_v3  ;;  %v7200_v47 = vadd.f32 %v8973_v37, %v9080_v29 }
 0x286   : > { %v6161_v15 = vmul.f32 %v8954_v42, %v6125_v56  ;;  %v6130_v23 = vsel %vm6002_vm3, %v8916_v49, %v6098_v32  ;;  %v5904_v59 = vmul.f32 %v7537_v11, %v9041_v25  ;;  %v9177_v17 = vadd.f32 1.0, %v9168_v34 }
 0x287   : > { %v6166_v6 = vmul.f32 %v8954_v42, %v6130_v23  ;;  %7544 = vrcp.f32 %v9166_v27  ;;  %v9181_v28 = vadd.f32 %v7198_v24, %v8873_v22  ;;  %v7199_v49 = vadd.f32 %v8964_v35, %v9073_v46 }
 0x288   : > { %v6197_v60 = vadd.f32 %v8960_v51, %v6161_v15  ;;  %v5936_v50 = vsub.f32 2.0, %v5904_v59  ;;  %7546 = vrcp.f32 %v9177_v17  ;;  %v7201_v57 = vadd.f32 %v8983_v1, %v9090_v52 }
 0x289   : > { %v7539_v25 = vpop.eup %7538  ;;  %v6202_v39 = vadd.f32 %v8960_v51, %v6166_v6  ;;  %v6694_v62 = vadd.f32 -1.0, %v9020_v4  ;;  %v5685_v46 = vmin.f32 %v9181_v28, 20.0  ;;  %v9203_v37 = vadd.f32 %v7199_v49, %v8873_v22 }
 0x28a   : > { %v9191_v30 = vpop.f32.mrb[24].mxu1  ;;  %6230 = vst.msk [vmem:[%s9060_s20 + $0x28] sm:$0xff] %vm6224_vm12, %v6197_v60  ;;  %v5968_v41 = vmul.f32 %v7537_v11, %v5936_v50  ;;  %v5907_v35 = vmul.f32 %v7539_v25, %v9104_v20  ;;  %v9206_v1 = vadd.f32 %v7200_v47, %v8873_v22  ;;  %v9209_v29 = vadd.f32 %v7201_v57, %v8873_v22 }
 0x28b   : > { %v9198_v5 = vpop.f32.mrb[25].mxu1  ;;  %6235 = vst.msk [vmem:[%s9060_s20 + $0x50] sm:$0xff] %vm6224_vm12, %v6202_v39  ;;  %v7202_v4 = vadd.f32 %v8989_v13, %v9098_v9  ;;  %v5730_v32 = vmul.f32 1.442695, %v5685_v46  ;;  %v7203_v3 = vadd.f32 %v9011_v48, %v7035_v54  ;;  %v6697_v11 = vadd.f32 -1.0, %v9034_v55 }
 0x28c   : > { %v9213_v52 = vpop.f32.mrb[26].mxu1  ;;  %v6064_v20 = vmul.f32 %v6694_v62, %v5968_v41  ;;  %v5939_v21 = vsub.f32 2.0, %v5907_v35  ;;  %v5690_v56 = vmin.f32 %v9203_v37, 20.0  ;;  %v5688_v15 = vmin.f32 %v9206_v1, 20.0 }
 0x28d   : > { %v9216_v24 = vpop.f32.mrb[27].mxu1  ;;  %7548 = vpow2.f32 %v5730_v32  ;;  %v5691_v59 = vmin.f32 %v9209_v29, 20.0  ;;  %v6695_v48 = vadd.f32 -1.0, %v9124_v12  ;;  %vm6005_vm4 = vcmp.gt.f32.partialorder %v9181_v28, 20.0 }
 0x28e   : > { %v7541_v23 = vpop.eup %7540  ;;  %v6096_v13 = vmul.f32 %v6064_v20, %v8920_v45  ;;  %v5971_v9 = vmul.f32 %v7539_v25, %v5939_v21  ;;  %v5740_v54 = vmul.f32 1.442695, %v5690_v56  ;;  %v5736_v60 = vmul.f32 1.442695, %v5688_v15 }
 0x28f   : > { %v5905_v6 = vmul.f32 %v7541_v23, %v9137_v19  ;;  %v7543_v50 = vpop.eup %7542  ;;  %v5742_v39 = vmul.f32 1.442695, %v5691_v59  ;;  %v9231_v25 = vadd.f32 %v7202_v4, %v8873_v22  ;;  %vm6010_vm8 = vcmp.gt.f32.partialorder %v9203_v37, 20.0 }
 0x290   : > { %v6128_v55 = vsel %vm6000_vm5, %v8920_v45, %v6096_v13  ;;  %v6067_v49 = vmul.f32 %v6697_v11, %v5971_v9  ;;  %v5783_v41 = vadd.f32 1.0, %v7543_v50  ;;  %7550 = vpow2.f32 %v5740_v54 }
 0x291   : > { %v7545_v47 = vpop.eup %7544  ;;  %v6164_v57 = vmul.f32 %v8954_v42, %v6128_v55  ;;  %v5937_v19 = vsub.f32 2.0, %v5905_v6  ;;  %7552 = vpow2.f32 %v5736_v60  ;;  %v5689_v35 = vmin.f32 %v9231_v25, 20.0 }
 0x292   : > { %v9234_v12 = vpop.f32.mrb[28].mxu1  ;;  %v6099_v62 = vmul.f32 %v6067_v49, %v8925_v33  ;;  %v5910_v45 = vmul.f32 %v7545_v47, %v9166_v27  ;;  %v7547_v4 = vpop.eup %7546  ;;  %v9242_v32 = vmul.f32 %v5783_v41, %v5783_v41  ;;  %7554 = vpow2.f32 %v5742_v39 }
 0x293   : > { %v9239_v46 = vpop.f32.mrb[29].mxu1  ;;  %v6200_v20 = vadd.f32 %v8960_v51, %v6164_v57  ;;  %v5969_v21 = vmul.f32 %v7541_v23, %v5937_v19  ;;  %v5908_v27 = vmul.f32 %v7547_v4, %v9177_v17  ;;  %v5738_v13 = vmul.f32 1.442695, %v5689_v35 }
 0x294   : > { %v9244_v11 = vpop.f32.mrb[30].mxu1  ;;  %v6131_v56 = vsel %vm6003_vm6, %v8925_v33, %v6099_v62  ;;  %v5942_v15 = vsub.f32 2.0, %v5910_v45  ;;  %v6700_v6 = vadd.f32 -1.0, %v9147_v61  ;;  %v5847_v54 = vadd.f32 1.0, %v9242_v32 }
 0x295   : > { %v9250_v9 = vpop.f32.mrb[31].mxu1  ;;  %6233 = vst.msk [vmem:[%s9060_s20 + $0x40] sm:$0xff] %vm6224_vm12, %v6200_v20  ;;  %v6167_v59 = vmul.f32 %v8954_v42, %v6131_v56  ;;  %v6065_v23 = vmul.f32 %v6695_v48, %v5969_v21  ;;  %v5940_v50 = vsub.f32 2.0, %v5908_v27  ;;  %v6698_v33 = vadd.f32 -1.0, %v9168_v34 }
 0x296   : > { %v5974_v60 = vmul.f32 %v7545_v47, %v5942_v15  ;;  %7556 = vpow2.f32 %v5738_v13  ;;  %v9261_v49 = vadd.f32 %v7203_v3, %v8873_v22  ;;  %v7204_v61 = vadd.f32 %v9014_v7, %v9139_v10 }
 0x297   : > { %v6203_v17 = vadd.f32 %v8960_v51, %v6167_v59  ;;  %v6097_v55 = vmul.f32 %v6065_v23, %v8945_v40  ;;  %7558 = vrcp.f32 %v5847_v54  ;;  %v7549_v39 = vpop.eup %7548  ;;  %v5972_v57 = vmul.f32 %v7547_v4, %v5940_v50 }
 0x298   : > { %v6070_v48 = vmul.f32 %v6700_v6, %v5974_v60  ;;  %v7205_v47 = vadd.f32 %v9017_v26, %v9149_v43  ;;  %v5781_v19 = vadd.f32 1.0, %v7549_v39  ;;  %v5694_v41 = vmin.f32 %v9261_v49, 20.0 }
 0x299   : > { %6236 = vst.msk [vmem:[%s9060_s20 + $0x58] sm:$0xff] %vm6224_vm12, %v6203_v17  ;;  %v6129_v34 = vsel %vm6001_vm7, %v8945_v40, %v6097_v55  ;;  %v6068_v45 = vmul.f32 %v6698_v33, %v5972_v57  ;;  %v9279_v43 = vadd.f32 %v7204_v61, %v8873_v22  ;;  %v7206_v40 = vadd.f32 %v9026_v53, %v9157_v58 }
 0x29a   : > { %v6165_v3 = vmul.f32 %v8954_v42, %v6129_v34  ;;  %v6102_v62 = vmul.f32 %v6070_v48, %v8971_v63  ;;  %v7551_v7 = vpop.eup %7550  ;;  %v9276_v10 = vmul.f32 %v5781_v19, %v5781_v19  ;;  %v5748_v26 = vmul.f32 1.442695, %v5694_v41 }
 0x29b   : > { %v7553_v35 = vpop.eup %7552  ;;  %v6100_v21 = vmul.f32 %v6068_v45, %v8981_v16  ;;  %v5786_v56 = vadd.f32 1.0, %v7551_v7  ;;  %v5692_v55 = vmin.f32 %v9279_v43, 20.0  ;;  %v9298_v39 = vadd.f32 %v7205_v47, %v8873_v22 }
 0x29c   : > { %v6201_v4 = vadd.f32 %v8960_v51, %v6165_v3  ;;  %v6134_v20 = vsel %vm6006_vm0, %v8971_v63, %v6102_v62  ;;  %v7555_v15 = vpop.eup %7554  ;;  %v5845_v13 = vadd.f32 1.0, %v9276_v10  ;;  %v5784_v59 = vadd.f32 1.0, %v7553_v35 }
 0x29d   : > { %v6170_v27 = vmul.f32 %v8954_v42, %v6134_v20  ;;  %v6132_v53 = vsel %vm6004_vm9, %v8981_v16, %v6100_v21  ;;  %v5818_v58 = vmul.f32 %v5786_v56, %v5786_v56  ;;  %v5787_v23 = vadd.f32 1.0, %v7555_v15 }
 0x29e   : > { %6234 = vst.msk [vmem:[%s9060_s20 + $0x48] sm:$0xff] %vm6224_vm12, %v6201_v4  ;;  %7560 = vpow2.f32 %v5748_v26  ;;  %v6168_v6 = vmul.f32 %v8954_v42, %v6132_v53  ;;  %v5816_v60 = vmul.f32 %v5784_v59, %v5784_v59  ;;  %v5744_v3 = vmul.f32 1.442695, %v5692_v55 }
 0x29f   : > { %v6206_v63 = vadd.f32 %v8960_v51, %v6170_v27  ;;  %7562 = vrcp.f32 %v5845_v13  ;;  %v5850_v33 = vadd.f32 1.0, %v5818_v58  ;;  %v9294_v17 = vmul.f32 %v5787_v23, %v5787_v23 }
 0x2a0   : > { %v7557_v50 = vpop.eup %7556  ;;  %v6204_v48 = vadd.f32 %v8960_v51, %v6168_v6  ;;  %v5848_v57 = vadd.f32 1.0, %v5816_v60  ;;  %v5695_v47 = vmin.f32 %v9298_v39, 20.0  ;;  %v6701_v45 = vadd.f32 -1.0, %v9242_v32 }
 0x2a1   : > { %v7559_v16 = vpop.eup %7558  ;;  %6239 = vst.msk [vmem:[%s9060_s20 + $0x70] sm:$0xff] %vm6224_vm12, %v6206_v63  ;;  %v5785_v61 = vadd.f32 1.0, %v7557_v50  ;;  %7564 = vrcp.f32 %v5850_v33  ;;  %v5851_v19 = vadd.f32 1.0, %v9294_v17  ;;  %v7207_v4 = vadd.f32 %v9055_v2, %v9191_v30 }
 0x2a2   : > { %v5911_v34 = vmul.f32 %v7559_v16, %v5847_v54  ;;  %6237 = vst.msk [vmem:[%s9060_s20 + $0x60] sm:$0xff] %vm6224_vm12, %v6204_v48  ;;  %7566 = vrcp.f32 %v5848_v57  ;;  %v9314_v54 = vadd.f32 %v7206_v40, %v8873_v22  ;;  %v5750_v35 = vmul.f32 1.442695, %v5695_v47 }
 0x2a3   : > { %v9306_v41 = vmul.f32 %v5785_v61, %v5785_v61  ;;  %7568 = vrcp.f32 %v5851_v19  ;;  %v7208_v20 = vadd.f32 %v9066_v31, %v9198_v5  ;;  %v7209_v21 = vadd.f32 %v9075_v14, %v9213_v52 }
 0x2a4   : > { %v5943_v62 = vsub.f32 2.0, %v5911_v34  ;;  %7570 = vpow2.f32 %v5744_v3  ;;  %v5693_v32 = vmin.f32 %v9314_v54, 20.0  ;;  %v9326_v15 = vadd.f32 %v7207_v4, %v8873_v22 }
 0x2a5   : > { %v9311_v7 = vadd.f32 1.0, %v9306_v41  ;;  %v9329_v2 = vadd.f32 %v7208_v20, %v8873_v22  ;;  %v9332_v27 = vadd.f32 %v7209_v21, %v8873_v22  ;;  %v9336_v59 = vadd.f32 %v9082_v8, %v9216_v24 }
 0x2a6   : > { %v5975_v26 = vmul.f32 %v7559_v16, %v5943_v62  ;;  %v5746_v5 = vmul.f32 1.442695, %v5693_v32  ;;  %v6699_v53 = vadd.f32 -1.0, %v9276_v10  ;;  %v5698_v23 = vmin.f32 %v9326_v15, 20.0 }
 0x2a7   : > { %7572 = vrcp.f32 %v9311_v7  ;;  %v6704_v63 = vadd.f32 -1.0, %v5818_v58  ;;  %v5696_v50 = vmin.f32 %v9329_v2, 20.0  ;;  %v6702_v16 = vadd.f32 -1.0, %v5816_v60 }
 0x2a8   : > { %v7561_v56 = vpop.eup %7560  ;;  %v6071_v40 = vmul.f32 %v6701_v45, %v5975_v26  ;;  %7574 = vpow2.f32 %v5750_v35  ;;  %v5699_v58 = vmin.f32 %v9332_v27, 20.0  ;;  %vm6008_vm11 = vcmp.gt.f32.partialorder %v9206_v1, 20.0 }
 0x2a9   : > { %v7563_v30 = vpop.eup %7562  ;;  %v5790_v31 = vadd.f32 1.0, %v7561_v56  ;;  %7576 = vpow2.f32 %v5746_v5  ;;  %vm6011_vm13 = vcmp.gt.f32.partialorder %v9209_v29, 20.0  ;;  %v6705_v56 = vadd.f32 -1.0, %v9294_v17 }
 0x2aa   : > { %v6103_v14 = vmul.f32 %v6071_v40, %v9024_v44  ;;  %v5909_v52 = vmul.f32 %v7563_v30, %v5845_v13  ;;  %v5756_v13 = vmul.f32 1.442695, %v5698_v23  ;;  %v5758_v40 = vmul.f32 1.442695, %v5699_v58 }
 0x2ab   : > { %v9342_v6 = vmul.f32 %v5790_v31, %v5790_v31  ;;  %v7565_v55 = vpop.eup %7564  ;;  %vm6009_vm14 = vcmp.gt.f32.partialorder %v9231_v25, 20.0  ;;  %vm6014_vm15 = vcmp.gt.f32.partialorder %v9261_v49, 20.0  ;;  %vm6012_vm1 = vcmp.gt.f32.partialorder %v9279_v43, 20.0 }
 0x2ac   : > { %v6135_v8 = vsel %vm6007_vm10, %v9024_v44, %v6103_v14  ;;  %v5941_v24 = vsub.f32 2.0, %v5909_v52  ;;  %v7567_v48 = vpop.eup %7566  ;;  %v5914_v61 = vmul.f32 %v7565_v55, %v5850_v33  ;;  %7578 = vpow2.f32 %v5756_v13 }
 0x2ad   : > { %v6171_v10 = vmul.f32 %v8954_v42, %v6135_v8  ;;  %v9350_v34 = vadd.f32 1.0, %v9342_v6  ;;  %v7569_v3 = vpop.eup %7568  ;;  %v5912_v47 = vmul.f32 %v7567_v48, %v5848_v57  ;;  %v5752_v44 = vmul.f32 1.442695, %v5696_v50 }
 0x2ae   : > { %v5973_v62 = vmul.f32 %v7563_v30, %v5941_v24  ;;  %v7571_v45 = vpop.eup %7570  ;;  %v5946_v26 = vsub.f32 2.0, %v5914_v61  ;;  %v5915_v33 = vmul.f32 %v7569_v3, %v5851_v19  ;;  %vm6015_vm2 = vcmp.gt.f32.partialorder %v9298_v39, 20.0 }
 0x2af   : > { %v6207_v60 = vadd.f32 %v8960_v51, %v6171_v10  ;;  %7580 = vrcp.f32 %v9350_v34  ;;  %v5944_v4 = vsub.f32 2.0, %v5912_v47  ;;  %v5788_v20 = vadd.f32 1.0, %v7571_v45 }
 0x2b0   : > { %v6069_v35 = vmul.f32 %v6699_v53, %v5973_v62  ;;  %7582 = vpow2.f32 %v5752_v44  ;;  %v5978_v57 = vmul.f32 %v7565_v55, %v5946_v26  ;;  %v5947_v21 = vsub.f32 2.0, %v5915_v33 }
 0x2b1   : > { %v7573_v32 = vpop.eup %7572  ;;  %6240 = vst.msk [vmem:[%s9060_s20 + $0x78] sm:$0xff] %vm6224_vm12, %v6207_v60  ;;  %v5976_v19 = vmul.f32 %v7567_v48, %v5944_v4  ;;  %v9363_v14 = vmul.f32 %v5788_v20, %v5788_v20  ;;  %7584 = vpow2.f32 %v5758_v40  ;;  %vm6013_vm3 = vcmp.gt.f32.partialorder %v9314_v54, 20.0 }
 0x2b2   : > { %v7575_v30 = vpop.eup %7574  ;;  %v6101_v31 = vmul.f32 %v6069_v35, %v9181_v28  ;;  %v5913_v5 = vmul.f32 %v7573_v32, %v9311_v7  ;;  %v6074_v52 = vmul.f32 %v6704_v63, %v5978_v57  ;;  %v5979_v53 = vmul.f32 %v7569_v3, %v5947_v21 }
 0x2b3   : > { %v5791_v23 = vadd.f32 1.0, %v7575_v30  ;;  %v6072_v55 = vmul.f32 %v6702_v16, %v5976_v19  ;;  %v5852_v17 = vadd.f32 1.0, %v9363_v14  ;;  %v7577_v24 = vpop.eup %7576  ;;  %v6703_v63 = vadd.f32 -1.0, %v9306_v41 }
 0x2b4   : > { %v6133_v50 = vsel %vm6005_vm4, %v9181_v28, %v6101_v31  ;;  %v5945_v8 = vsub.f32 2.0, %v5913_v5  ;;  %v6106_v48 = vmul.f32 %v6074_v52, %v9203_v37  ;;  %v6075_v7 = vmul.f32 %v6705_v56, %v5979_v53 }
 0x2b5   : > { %v6169_v13 = vmul.f32 %v8954_v42, %v6133_v50  ;;  %v6104_v10 = vmul.f32 %v6072_v55, %v9206_v1  ;;  %7586 = vrcp.f32 %v5852_v17  ;;  %v9373_v58 = vmul.f32 %v5791_v23, %v5791_v23 }
 0x2b6   : > { %v5977_v61 = vmul.f32 %v7573_v32, %v5945_v8  ;;  %v6138_v16 = vsel %vm6010_vm8, %v9203_v37, %v6106_v48  ;;  %v6107_v3 = vmul.f32 %v6075_v7, %v9209_v29  ;;  %v5789_v62 = vadd.f32 1.0, %v7577_v24  ;;  %v7579_v47 = vpop.eup %7578 }
 0x2b7   : > { %v6205_v28 = vadd.f32 %v8960_v51, %v6169_v13  ;;  %v6174_v44 = vmul.f32 %v8954_v42, %v6138_v16  ;;  %v6136_v41 = vsel %vm6008_vm11, %v9206_v1, %v6104_v10  ;;  %v5855_v60 = vadd.f32 1.0, %v9373_v58 }
 0x2b8   : > { %v6073_v45 = vmul.f32 %v6703_v63, %v5977_v61  ;;  %v6172_v33 = vmul.f32 %v8954_v42, %v6136_v41  ;;  %v6139_v37 = vsel %vm6011_vm13, %v9209_v29, %v6107_v3  ;;  %v9392_v35 = vmul.f32 %v5789_v62, %v5789_v62 }
 0x2b9   : > { %v7581_v26 = vpop.eup %7580  ;;  %6238 = vst.msk [vmem:[%s9060_s20 + $0x68] sm:$0xff] %vm6224_vm12, %v6205_v28  ;;  %v6210_v1 = vadd.f32 %v8960_v51, %v6174_v44  ;;  %v6175_v20 = vmul.f32 %v8954_v42, %v6139_v37  ;;  %v6708_v56 = vadd.f32 -1.0, %v9342_v6  ;;  %7588 = vrcp.f32 %v5855_v60 }
 0x2ba   : > { %v7583_v4 = vpop.eup %7582  ;;  %v6105_v32 = vmul.f32 %v6073_v45, %v9231_v25  ;;  %v5918_v57 = vmul.f32 %v7581_v26, %v9350_v34  ;;  %v6208_v21 = vadd.f32 %v8960_v51, %v6172_v33  ;;  %v5853_v29 = vadd.f32 1.0, %v9392_v35 }
 0x2bb   : > { %6243 = vst.msk [vmem:[%s9060_s20 + $0x90] sm:$0xff] %vm6224_vm12, %v6210_v1  ;;  %v6211_v40 = vadd.f32 %v8960_v51, %v6175_v20  ;;  %v5794_v19 = vadd.f32 1.0, %v7579_v47  ;;  %v7585_v5 = vpop.eup %7584  ;;  %v5792_v52 = vadd.f32 1.0, %v7583_v4  ;;  %v9410_v6 = vadd.f32 %v9336_v59, %v8873_v22 }
 0x2bc   : > { %v6137_v30 = vsel %vm6009_vm14, %v9231_v25, %v6105_v32  ;;  %v5950_v31 = vsub.f32 2.0, %v5918_v57  ;;  %6241 = vst.msk [vmem:[%s9060_s20 + $0x80] sm:$0xff] %vm6224_vm12, %v6208_v21  ;;  %7590 = vrcp.f32 %v5853_v29  ;;  %v5795_v25 = vadd.f32 1.0, %v7585_v5 }
 0x2bd   : > { %v6173_v34 = vmul.f32 %v8954_v42, %v6137_v30  ;;  %6244 = vst.msk [vmem:[%s9060_s20 + $0x98] sm:$0xff] %vm6224_vm12, %v6211_v40  ;;  %v9414_v23 = vmul.f32 %v5794_v19, %v5794_v19  ;;  %v7211_v50 = vadd.f32 %v9118_v36, %v9234_v12  ;;  %v9419_v8 = vmul.f32 %v5792_v52, %v5792_v52 }
 0x2be   : > { %v5982_v53 = vmul.f32 %v7581_v26, %v5950_v31  ;;  %v5697_v24 = vmin.f32 %v9410_v6, 20.0  ;;  %v9423_v7 = vmul.f32 %v5795_v25, %v5795_v25  ;;  %v6706_v61 = vadd.f32 -1.0, %v9363_v14 }
 0x2bf   : > { %v6209_v55 = vadd.f32 %v8960_v51, %v6173_v34  ;;  %v7587_v13 = vpop.eup %7586  ;;  %v5858_v59 = vadd.f32 1.0, %v9414_v23  ;;  %v5856_v10 = vadd.f32 1.0, %v9419_v8  ;;  %v9433_v3 = vadd.f32 %v7211_v50, %v8873_v22 }
 0x2c0   : > { %v6078_v48 = vmul.f32 %v6708_v56, %v5982_v53  ;;  %v5916_v63 = vmul.f32 %v7587_v13, %v5852_v17  ;;  %v5754_v36 = vmul.f32 1.442695, %v5697_v24  ;;  %v5859_v28 = vadd.f32 1.0, %v9423_v7 }
 0x2c1   : > { %6242 = vst.msk [vmem:[%s9060_s20 + $0x88] sm:$0xff] %vm6224_vm12, %v6209_v55  ;;  %7592 = vrcp.f32 %v5858_v59  ;;  %v7212_v62 = vadd.f32 %v9126_v18, %v9239_v46  ;;  %v7213_v47 = vadd.f32 %v9131_v38, %v9244_v11  ;;  %v7214_v14 = vadd.f32 %v9141_v0, %v9250_v9 }
 0x2c2   : > { %v6110_v12 = vmul.f32 %v6078_v48, %v9261_v49  ;;  %v5948_v16 = vsub.f32 2.0, %v5916_v63  ;;  %7594 = vrcp.f32 %v5856_v10  ;;  %v5702_v26 = vmin.f32 %v9433_v3, 20.0 }
 0x2c3   : > { %7596 = vrcp.f32 %v5859_v28  ;;  %v7589_v44 = vpop.eup %7588  ;;  %v9445_v18 = vadd.f32 %v7212_v62, %v8873_v22  ;;  %v9448_v46 = vadd.f32 %v7213_v47, %v8873_v22  ;;  %v9452_v9 = vadd.f32 %v7214_v14, %v8873_v22 }
 0x2c4   : > { %v6142_v17 = vsel %vm6014_vm15, %v9261_v49, %v6110_v12  ;;  %v5980_v45 = vmul.f32 %v7587_v13, %v5948_v16  ;;  %7598 = vpow2.f32 %v5754_v36  ;;  %v5919_v33 = vmul.f32 %v7589_v44, %v5855_v60 }
 0x2c5   : > { %v6178_v41 = vmul.f32 %v8954_v42, %v6142_v17  ;;  %v5764_v0 = vmul.f32 1.442695, %v5702_v26  ;;  %v5700_v60 = vmin.f32 %v9445_v18, 20.0  ;;  %v6709_v20 = vadd.f32 -1.0, %v9373_v58 }
 0x2c6   : > { %v7591_v49 = vpop.eup %7590  ;;  %v6076_v11 = vmul.f32 %v6706_v61, %v5980_v45  ;;  %v5951_v37 = vsub.f32 2.0, %v5919_v33  ;;  %v5703_v32 = vmin.f32 %v9448_v46, 20.0  ;;  %v5701_v22 = vmin.f32 %v9452_v9, 20.0 }
 0x2c7   : > { %v6214_v38 = vadd.f32 %v8960_v51, %v6178_v41  ;;  %v5917_v4 = vmul.f32 %v7591_v49, %v5853_v29  ;;  %7600 = vpow2.f32 %v5764_v0  ;;  %v5760_v56 = vmul.f32 1.442695, %v5700_v60 }
 0x2c8   : > { %v6108_v1 = vmul.f32 %v6076_v11, %v9279_v43  ;;  %v5983_v57 = vmul.f32 %v7589_v44, %v5951_v37  ;;  %v6707_v29 = vadd.f32 -1.0, %v9392_v35  ;;  %v5766_v30 = vmul.f32 1.442695, %v5703_v32 }
 0x2c9   : > { %6247 = vst.msk [vmem:[%s9060_s20 + $0xb0] sm:$0xff] %vm6224_vm12, %v6214_v38  ;;  %v5949_v21 = vsub.f32 2.0, %v5917_v4  ;;  %7602 = vpow2.f32 %v5760_v56  ;;  %v5762_v53 = vmul.f32 1.442695, %v5701_v22  ;;  %v6712_v48 = vadd.f32 -1.0, %v9414_v23 }
 0x2ca   : > { %v6140_v40 = vsel %vm6012_vm1, %v9279_v43, %v6108_v1  ;;  %v6079_v5 = vmul.f32 %v6709_v20, %v5983_v57  ;;  %7604 = vpow2.f32 %v5766_v30  ;;  %v6710_v62 = vadd.f32 -1.0, %v9419_v8 }
 0x2cb   : > { %v7593_v31 = vpop.eup %7592  ;;  %v6176_v19 = vmul.f32 %v8954_v42, %v6140_v40  ;;  %v5981_v58 = vmul.f32 %v7591_v49, %v5949_v21  ;;  %7606 = vpow2.f32 %v5762_v53  ;;  %v6713_v47 = vadd.f32 -1.0, %v9423_v7 }
 0x2cc   : > { %v7595_v34 = vpop.eup %7594  ;;  %v5922_v52 = vmul.f32 %v7593_v31, %v5858_v59  ;;  %v6111_v50 = vmul.f32 %v6079_v5, %v9298_v39  ;;  %vm6018_vm5 = vcmp.gt.f32.partialorder %v9326_v15, 20.0  ;;  %vm6016_vm6 = vcmp.gt.f32.partialorder %v9329_v2, 20.0 }
 0x2cd   : > { %v7597_v25 = vpop.eup %7596  ;;  %v6212_v43 = vadd.f32 %v8960_v51, %v6176_v19  ;;  %v6077_v35 = vmul.f32 %v6707_v29, %v5981_v58  ;;  %v5920_v55 = vmul.f32 %v7595_v34, %v5856_v10  ;;  %vm6019_vm7 = vcmp.gt.f32.partialorder %v9332_v27, 20.0 }
 0x2ce   : > { %v7599_v24 = vpop.eup %7598  ;;  %v5954_v13 = vsub.f32 2.0, %v5922_v52  ;;  %v5923_v63 = vmul.f32 %v7597_v25, %v5859_v28  ;;  %v6143_v59 = vsel %vm6015_vm2, %v9298_v39, %v6111_v50  ;;  %vm6017_vm0 = vcmp.gt.f32.partialorder %v9410_v6, 20.0 }
 0x2cf   : > { %6245 = vst.msk [vmem:[%s9060_s20 + $0xa0] sm:$0xff] %vm6224_vm12, %v6212_v43  ;;  %v6109_v36 = vmul.f32 %v6077_v35, %v9314_v54  ;;  %v5952_v12 = vsub.f32 2.0, %v5920_v55  ;;  %v5793_v61 = vadd.f32 1.0, %v7599_v24  ;;  %v6179_v16 = vmul.f32 %v8954_v42, %v6143_v59 }
 0x2d0   : > { %v5986_v10 = vmul.f32 %v7593_v31, %v5954_v13  ;;  %v5955_v17 = vsub.f32 2.0, %v5923_v63  ;;  %vm6022_vm9 = vcmp.gt.f32.partialorder %v9433_v3, 20.0  ;;  %vm6020_vm10 = vcmp.gt.f32.partialorder %v9445_v18, 20.0 }
 0x2d1   : > { %v6141_v23 = vsel %vm6013_vm3, %v9314_v54, %v6109_v36  ;;  %v5984_v28 = vmul.f32 %v7595_v34, %v5952_v12  ;;  %v5825_v14 = vmul.f32 %v5793_v61, %v5793_v61  ;;  %v7601_v39 = vpop.eup %7600  ;;  %v6215_v44 = vadd.f32 %v8960_v51, %v6179_v16 }
 0x2d2   : > { %v6177_v41 = vmul.f32 %v8954_v42, %v6141_v23  ;;  %v6082_v45 = vmul.f32 %v6712_v48, %v5986_v10  ;;  %v5987_v26 = vmul.f32 %v7597_v25, %v5955_v17  ;;  %v5798_v8 = vadd.f32 1.0, %v7601_v39 }
 0x2d3   : > { %v6080_v33 = vmul.f32 %v6710_v62, %v5984_v28  ;;  %v5857_v49 = vadd.f32 1.0, %v5825_v14  ;;  %6248 = vst.msk [vmem:[%s9060_s20 + $0xb8] sm:$0xff] %vm6224_vm12, %v6215_v44  ;;  %v7603_v7 = vpop.eup %7602  ;;  %v6711_v24 = vadd.f32 -1.0, %v5825_v14  ;;  %vm6023_vm4 = vcmp.gt.f32.partialorder %v9448_v46, 20.0 }
 0x2d4   : > { %v6213_v38 = vadd.f32 %v8960_v51, %v6177_v41  ;;  %v6114_v54 = vmul.f32 %v6082_v45, %v9326_v15  ;;  %v6083_v11 = vmul.f32 %v6713_v47, %v5987_v26  ;;  %v5830_v37 = vmul.f32 %v5798_v8, %v5798_v8  ;;  %v7605_v4 = vpop.eup %7604 }
 0x2d5   : > { %v6112_v0 = vmul.f32 %v6080_v33, %v9329_v2  ;;  %7608 = vrcp.f32 %v5857_v49  ;;  %v5796_v20 = vadd.f32 1.0, %v7603_v7  ;;  %v7607_v56 = vpop.eup %7606  ;;  %v5799_v29 = vadd.f32 1.0, %v7605_v4 }
 0x2d6   : > { %6246 = vst.msk [vmem:[%s9060_s20 + $0xa8] sm:$0xff] %vm6224_vm12, %v6213_v38  ;;  %v6146_v60 = vsel %vm6018_vm5, %v9326_v15, %v6114_v54  ;;  %v6115_v1 = vmul.f32 %v6083_v11, %v9332_v27  ;;  %v5862_v21 = vadd.f32 1.0, %v5830_v37  ;;  %v5797_v19 = vadd.f32 1.0, %v7607_v56 }
 0x2d7   : > { %v6182_v32 = vmul.f32 %v8954_v42, %v6146_v60  ;;  %v6144_v57 = vsel %vm6016_vm6, %v9329_v2, %v6112_v0  ;;  %v5828_v15 = vmul.f32 %v5796_v20, %v5796_v20  ;;  %v5831_v58 = vmul.f32 %v5799_v29, %v5799_v29 }
 0x2d8   : > { %v6180_v22 = vmul.f32 %v8954_v42, %v6144_v57  ;;  %v6147_v40 = vsel %vm6019_vm7, %v9332_v27, %v6115_v1  ;;  %7610 = vrcp.f32 %v5862_v21  ;;  %v5829_v52 = vmul.f32 %v5797_v19, %v5797_v19 }
 0x2d9   : > { %v6218_v30 = vadd.f32 %v8960_v51, %v6182_v32  ;;  %v6183_v31 = vmul.f32 %v8954_v42, %v6147_v40  ;;  %v5860_v5 = vadd.f32 1.0, %v5828_v15  ;;  %v5863_v27 = vadd.f32 1.0, %v5831_v58 }
 0x2da   : > { %v6216_v2 = vadd.f32 %v8960_v51, %v6180_v22  ;;  %v5861_v53 = vadd.f32 1.0, %v5829_v52  ;;  %v6716_v10 = vadd.f32 -1.0, %v5830_v37  ;;  %v6714_v41 = vadd.f32 -1.0, %v5828_v15 }
 0x2db   : > { %6251 = vst.msk [vmem:[%s9060_s20 + $0xd0] sm:$0xff] %vm6224_vm12, %v6218_v30  ;;  %v6219_v34 = vadd.f32 %v8960_v51, %v6183_v31  ;;  %7612 = vrcp.f32 %v5860_v5  ;;  %v6717_v54 = vadd.f32 -1.0, %v5831_v58  ;;  %v6715_v7 = vadd.f32 -1.0, %v5829_v52 }
 0x2dc   : > { %6249 = vst.msk [vmem:[%s9060_s20 + $0xc0] sm:$0xff] %vm6224_vm12, %v6216_v2  ;;  %7614 = vrcp.f32 %v5863_v27  ;;  %vm6021_vm8 = vcmp.gt.f32.partialorder %v9452_v9, 20.0 }
 0x2dd   : > { %6252 = vst.msk [vmem:[%s9060_s20 + $0xd8] sm:$0xff] %vm6224_vm12, %v6219_v34  ;;  %7616 = vrcp.f32 %v5861_v53 }
 0x2df   : > { %v7609_v25 = vpop.eup %7608 }
 0x2e0   : > { %v5921_v43 = vmul.f32 %v7609_v25, %v5857_v49 }
 0x2e2   : > { %v5953_v50 = vsub.f32 2.0, %v5921_v43  ;;  %v7611_v35 = vpop.eup %7610 }
 0x2e3   : > { %v5926_v13 = vmul.f32 %v7611_v35, %v5862_v21 }
 0x2e4   : > { %v5985_v55 = vmul.f32 %v7609_v25, %v5953_v50 }
 0x2e5   : > { %v7613_v48 = vpop.eup %7612  ;;  %v5958_v59 = vsub.f32 2.0, %v5926_v13 }
 0x2e6   : > { %v6081_v63 = vmul.f32 %v6711_v24, %v5985_v55  ;;  %v5924_v36 = vmul.f32 %v7613_v48, %v5860_v5  ;;  %v7615_v12 = vpop.eup %7614 }
 0x2e7   : > { %v5990_v16 = vmul.f32 %v7611_v35, %v5958_v59  ;;  %v7617_v62 = vpop.eup %7616  ;;  %v5927_v23 = vmul.f32 %v7615_v12, %v5863_v27 }
 0x2e8   : > { %v6113_v61 = vmul.f32 %v6081_v63, %v9410_v6  ;;  %v5956_v17 = vsub.f32 2.0, %v5924_v36  ;;  %v5925_v14 = vmul.f32 %v7617_v62, %v5861_v53 }
 0x2e9   : > { %v6086_v47 = vmul.f32 %v6716_v10, %v5990_v16  ;;  %v5959_v45 = vsub.f32 2.0, %v5927_v23 }
 0x2ea   : > { %v6145_v28 = vsel %vm6017_vm0, %v9410_v6, %v6113_v61  ;;  %v5988_v44 = vmul.f32 %v7613_v48, %v5956_v17  ;;  %v5957_v33 = vsub.f32 2.0, %v5925_v14 }
 0x2eb   : > { %v6181_v39 = vmul.f32 %v8954_v42, %v6145_v28  ;;  %v6118_v26 = vmul.f32 %v6086_v47, %v9433_v3  ;;  %v5991_v38 = vmul.f32 %v7615_v12, %v5959_v45 }
 0x2ec   : > { %v6084_v8 = vmul.f32 %v6714_v41, %v5988_v44  ;;  %v5989_v11 = vmul.f32 %v7617_v62, %v5957_v33 }
 0x2ed   : > { %v6217_v49 = vadd.f32 %v8960_v51, %v6181_v39  ;;  %v6150_v6 = vsel %vm6022_vm9, %v9433_v3, %v6118_v26  ;;  %v6087_v4 = vmul.f32 %v6717_v54, %v5991_v38 }
 0x2ee   : > { %v6186_v0 = vmul.f32 %v8954_v42, %v6150_v6  ;;  %v6116_v37 = vmul.f32 %v6084_v8, %v9445_v18  ;;  %v6085_v60 = vmul.f32 %v6715_v7, %v5989_v11 }
 0x2ef   : > { %6250 = vst.msk [vmem:[%s9060_s20 + $0xc8] sm:$0xff] %vm6224_vm12, %v6217_v49  ;;  %v6119_v3 = vmul.f32 %v6087_v4, %v9448_v46 }
 0x2f0   : > { %v6222_v1 = vadd.f32 %v8960_v51, %v6186_v0  ;;  %v6148_v20 = vsel %vm6020_vm10, %v9445_v18, %v6116_v37  ;;  %v6117_v57 = vmul.f32 %v6085_v60, %v9452_v9 }
 0x2f1   : > { %v6184_v32 = vmul.f32 %v8954_v42, %v6148_v20  ;;  %v6151_v21 = vsel %vm6023_vm4, %v9448_v46, %v6119_v3 }
 0x2f2   : > { %6255 = vst.msk [vmem:[%s9060_s20 + $0xf0] sm:$0xff] %vm6224_vm12, %v6222_v1  ;;  %v6187_v22 = vmul.f32 %v8954_v42, %v6151_v21  ;;  %v6149_v18 = vsel %vm6021_vm8, %v9452_v9, %v6117_v57 }
 0x2f3   : > { %v6220_v56 = vadd.f32 %v8960_v51, %v6184_v32  ;;  %v6185_v40 = vmul.f32 %v8954_v42, %v6149_v18 }
 0x2f4   : > { %v6223_v15 = vadd.f32 %v8960_v51, %v6187_v22 }
 0x2f5   : > { %6253 = vst.msk [vmem:[%s9060_s20 + $0xe0] sm:$0xff] %vm6224_vm12, %v6220_v56  ;;  %v6221_v29 = vadd.f32 %v8960_v51, %v6185_v40 }
 0x2f6   : > { %6256 = vst.msk [vmem:[%s9060_s20 + $0xf8] sm:$0xff] %vm6224_vm12, %v6223_v15 }
 0x2f7   : > { %6254 = vst.msk [vmem:[%s9060_s20 + $0xe8] sm:$0xff] %vm6224_vm12, %v6221_v29 }
 0x2f8 PF: > { %s13_s12 = sadd.s32 1, %s7626_s12  }
 0x2f9   : > { %p10_p4 = scmp.ge.s32.totalorder %s13_s12, 4  }
 0x2fb   :  { %12 = sbr.rel (!%p10_p4) target bundleno = 1 (0x1), region = 70 }

</bundles_post_ra>
